<compile_context>
chip_gen: v7x
topology: tpu7x:2x2x1
jax: 0.10.0
libtpu: 0.0.40
codegen_flags: <defaults>
</compile_context>

<pallas_src>
import jax
import jax.numpy as jnp
from jax.experimental import pallas as pl
from jax.experimental.pallas import tpu as pltpu


def _make_fused_decoder_kernel(L, C0, Cmax, Cout, H, W):
    HH, WW = 2 * H, 2 * W          # spatial size after 2x upsample
    Wp, Hp = WW + 2, HH + 2        # padded sizes (1-px zero halo)
    M = HH * Wp                    # length of a flat shifted-slab window
    NPAD = Hp * Wp + 2             # flat padded activation length (+2: max-shift overrun)

    def kernel(x_ref, w_ref, b_ref, up_ref, mask_ref, sel_ref, o_ref, act_ref):
        # x_ref   : (1, C0, H*W)       input, channels-first, spatial flattened
        # w_ref   : (L, Cout, 9*Cmax)  packed conv weights (K ordered ky,kx,cin)
        # b_ref   : (L, Cout, 1)       biases
        # up_ref  : (H*W, M)           0/1 matrix: 2x nearest upsample + halo placement
        # mask_ref: (1, M)             0/1 validity of flat columns (kills row-wrap cols)
        # sel_ref : (M, HH*WW)         0/1 matrix: padded/strided -> dense compaction
        # o_ref   : (1, Cout, HH*WW)   output, channels-first, dense lanes
        # act_ref : (Cmax, NPAD)       VMEM-resident flat padded activation

        # Zero the padded activation buffer (halo + channels beyond C0; layer-0 weights
        # are zero-padded for those channels as well).
        act_ref[...] = jnp.zeros_like(act_ref)

        # Fused 2x nearest-neighbour upsample: one matmul scatters the input straight into
        # the zero-padded interior of the flat activation buffer.
        x_up = jnp.dot(x_ref[0], up_ref[...], preferred_element_type=jnp.float32)
        act_ref[0:C0, Wp + 1:Wp + 1 + M] = x_up

        mask = mask_ref[...]                                       # (1, M)

        y = None
        for l in range(L):                 # all conv3x3+ReLU layers, activations stay in VMEM
            a = act_ref[...]                                       # (Cmax, NPAD)
            # 9 shifted slabs stacked along K -> one fat contraction (K = 9*Cmax).
            patch = jnp.concatenate(
                [a[:, ky * Wp + kx:ky * Wp + kx + M]
                 for ky in range(3) for kx in range(3)],
                axis=0)                                            # (9*Cmax, M)
            acc = jnp.dot(w_ref[l], patch,
                          preferred_element_type=jnp.float32)      # (Cout, M)
            # bias + ReLU; mask zeroes row-wrap columns so the halo stays zero.
            y = jnp.maximum(acc + b_ref[l], 0.0) * mask
            act_ref[:, Wp + 1:Wp + 1 + M] = y                      # Cout == Cmax

        # Strided/padded -> dense compaction with one matmul, then a single lane-dense store.
        o_ref[0] = jnp.dot(y, sel_ref[...],
                           preferred_element_type=jnp.float32).astype(o_ref.dtype)

    return kernel, (HH, WW, Hp, Wp, M, NPAD)


def _pack_params(params, Cmax):
    """Pack per-layer HWIO weights into (L, Cout, 9*Cmax) with zero-padded input channels."""
    ws, bs = [], []
    for (w, b) in params:                      # w: (3, 3, Cin, Cout), b: (Cout,)
        Cout, cin = w.shape[-1], w.shape[2]
        wp = jnp.pad(w, ((0, 0), (0, 0), (0, Cmax - cin), (0, 0)))      # (3,3,Cmax,Cout)
        wp = jnp.transpose(wp, (3, 0, 1, 2)).reshape(Cout, 9 * Cmax)    # K = (ky,kx,cin)
        ws.append(wp)
        bs.append(b.reshape(Cout, 1))
    return jnp.stack(ws), jnp.stack(bs)


def decoder_forward(x_nchw, params):
    N, C0, H, W = x_nchw.shape
    L = len(params)
    assert L >= 1
    Cout = params[0][0].shape[-1]
    Cmax = Cout                                # all layers output Cout = Cmax channels
    assert params[0][0].shape[2] == C0
    assert all(p[0].shape[2] == Cmax for p in params[1:])
    assert all(p[0].shape[-1] == Cout for p in params)

    kernel, (HH, WW, Hp, Wp, M, NPAD) = _make_fused_decoder_kernel(L, C0, Cmax, Cout, H, W)
    w_packed, b_packed = _pack_params(params, Cmax)

    dtype = x_nchw.dtype
    HW = H * W

    # Constant 0/1 matrices (host-built once, tiny).
    p = jnp.arange(M)
    row, col = p // Wp, p % Wp
    valid = col < WW
    src = (row // 2) * W + (col // 2)                              # 2x-nearest source pixel
    up = ((jnp.arange(HW)[:, None] == src[None, :]) & valid[None, :]).astype(dtype)
    mask = valid.astype(jnp.float32)[None, :]                      # (1, M)
    q = jnp.arange(HH * WW)
    sel = (p[:, None] == ((q // WW) * Wp + (q % WW))[None, :]).astype(jnp.float32)

    x_flat = x_nchw.reshape(N, C0, HW)

    out_flat = pl.pallas_call(
        kernel,
        out_shape=jax.ShapeDtypeStruct((N, Cout, HH * WW), dtype),
        grid=(N,),
        in_specs=[
            pl.BlockSpec((1, C0, HW), lambda n: (n, 0, 0)),
            pl.BlockSpec((L, Cout, 9 * Cmax), lambda n: (0, 0, 0)),
            pl.BlockSpec((L, Cout, 1), lambda n: (0, 0, 0)),
            pl.BlockSpec((HW, M), lambda n: (0, 0)),
            pl.BlockSpec((1, M), lambda n: (0, 0)),
            pl.BlockSpec((M, HH * WW), lambda n: (0, 0)),
        ],
        out_specs=pl.BlockSpec((1, Cout, HH * WW), lambda n: (n, 0, 0)),
        scratch_shapes=[pltpu.VMEM((Cmax, NPAD), jnp.float32)],
        compiler_params=pltpu.CompilerParams(dimension_semantics=("parallel",)),
    )(x_flat, w_packed, b_packed, up, mask, sel)

    return out_flat.reshape(N, Cout, HH, WW)


def init_decoder_params(key, layersize=6, numoffilters=8):
    """Deterministic init mirroring the Conv2d shapes in the module (HWIO weights)."""
    params = []
    for i in range(layersize * 4):
        cin = numoffilters if i == 0 else numoffilters * 2
        cout = numoffilters * 2
        key, kw, kb = jax.random.split(key, 3)
        bound = 1.0 / (cin * 9) ** 0.5
        w = jax.random.uniform(kw, (3, 3, cin, cout), jnp.float32, -bound, bound)
        b = jax.random.uniform(kb, (cout,), jnp.float32, -bound, bound)
        params.append((w, b))
    return params


def decoder_reference(x_nchw, params):
    """Pure-JAX reference (XLA conv) for correctness checking."""
    x = jnp.repeat(jnp.repeat(x_nchw, 2, axis=2), 2, axis=3)
    x = jnp.transpose(x, (0, 2, 3, 1))
    for w, b in params:
        x = jax.lax.conv_general_dilated(
            x, w, window_strides=(1, 1), padding='SAME',
            dimension_numbers=('NHWC', 'HWIO', 'NHWC'))
        x = jnp.maximum(x + b, 0.0)
    return jnp.transpose(x, (0, 3, 1, 2))


if __name__ == "__main__":
    key = jax.random.PRNGKey(0)
    kx, kp = jax.random.split(key)

    layersize = 2              # -> 8 conv+relu layers (small but nontrivial)
    numoffilters = 8
    N, H, W = 2, 8, 8          # NCHW input, C must equal numoffilters
    x = jax.random.normal(kx, (N, numoffilters, H, W), jnp.float32)

    params = init_decoder_params(kp, layersize=layersize, numoffilters=numoffilters)

    fwd = jax.jit(decoder_forward)
    out = jax.block_until_ready(fwd(x, params))

    ref = jax.block_until_ready(decoder_reference(x, params))

    assert out.shape == (N, numoffilters * 2, 2 * H, 2 * W), out.shape
    max_err = float(jnp.max(jnp.abs(out - ref)))
    assert jnp.allclose(out, ref, rtol=1e-4, atol=1e-4), max_err

    print("KERNEL_OK")
</pallas_src>

<mosaic_0001>
module attributes {stable_mosaic.version = 11 : i64} {
  func.func @kernel(%arg0: i32, %arg1: memref<1x8x64xf32, #tpu.memory_space<vmem>>, %arg2: memref<8x16x144xf32, #tpu.memory_space<vmem>>, %arg3: memref<8x16x1xf32, #tpu.memory_space<vmem>>, %arg4: memref<64x288xf32, #tpu.memory_space<vmem>>, %arg5: memref<1x288xf32, #tpu.memory_space<vmem>>, %arg6: memref<288x256xf32, #tpu.memory_space<vmem>>, %arg7: memref<1x16x256xf32, #tpu.memory_space<vmem>>, %arg8: memref<16x326xf32, #tpu.memory_space<vmem>>) attributes {dimension_semantics = [#tpu.dimension_semantics<parallel>], iteration_bounds = array<i64: 2>, scalar_prefetch = 0 : i64, scratch_operands = 1 : i64, tpu.core_type = #tpu.core_type<tc>, window_params = [{transform_indices = @transform_0, window_bounds = array<i64: 1, 8, 64>}, {pipeline_mode = #tpu.pipeline_mode<synchronous>, transform_indices = @transform_1, window_bounds = array<i64: 8, 16, 144>}, {pipeline_mode = #tpu.pipeline_mode<synchronous>, transform_indices = @transform_2, window_bounds = array<i64: 8, 16, 1>}, {pipeline_mode = #tpu.pipeline_mode<synchronous>, transform_indices = @transform_3, window_bounds = array<i64: 64, 288>}, {pipeline_mode = #tpu.pipeline_mode<synchronous>, transform_indices = @transform_4, window_bounds = array<i64: 1, 288>}, {pipeline_mode = #tpu.pipeline_mode<synchronous>, transform_indices = @transform_5, window_bounds = array<i64: 288, 256>}, {transform_indices = @transform_6, window_bounds = array<i64: 1, 16, 256>}]} {
    %cst = arith.constant 0.000000e+00 : f32
    %0 = vector.broadcast %cst : f32 to vector<16x326xf32>
    %c0 = arith.constant 0 : index
    %c0_0 = arith.constant 0 : index
    %1 = vector.load %arg8[%c0, %c0_0] : memref<16x326xf32, #tpu.memory_space<vmem>>, vector<16x326xf32>
    tpu.vector_store %arg8[%c0, %c0_0], %0 {strides = array<i32>} : memref<16x326xf32, #tpu.memory_space<vmem>>, vector<16x326xf32>,
    %c0_1 = arith.constant 0 : index
    %c0_2 = arith.constant 0 : index
    %c0_3 = arith.constant 0 : index
    %2 = vector.load %arg1[%c0_1, %c0_2, %c0_3] : memref<1x8x64xf32, #tpu.memory_space<vmem>>, vector<1x8x64xf32>
    %3 = vector.shape_cast %2 : vector<1x8x64xf32> to vector<8x64xf32>
    %c0_4 = arith.constant 0 : index
    %c0_5 = arith.constant 0 : index
    %4 = vector.load %arg4[%c0_4, %c0_5] : memref<64x288xf32, #tpu.memory_space<vmem>>, vector<64x288xf32>
    %cst_6 = arith.constant dense<0.000000e+00> : vector<8x288xf32>
    %5 = tpu.matmul %3, %4, %cst_6 {dimension_numbers = #tpu.dot_dimension_numbers<[1], [0], [0], [1], [0, 0, 1, 1], [], []>} : vector<8x64xf32>, vector<64x288xf32>, vector<8x288xf32> -> vector<8x288xf32>
    %c0_7 = arith.constant 0 : index
    %c19 = arith.constant 19 : index
    %6 = vector.load %arg8[%c0_7, %c19] : memref<16x326xf32, #tpu.memory_space<vmem>>, vector<8x288xf32>
    tpu.vector_store %arg8[%c0_7, %c19], %5 {strides = array<i32>} : memref<16x326xf32, #tpu.memory_space<vmem>>, vector<8x288xf32>,
    %c0_8 = arith.constant 0 : index
    %c0_9 = arith.constant 0 : index
    %7 = vector.load %arg5[%c0_8, %c0_9] : memref<1x288xf32, #tpu.memory_space<vmem>>, vector<1x288xf32>
    %c0_10 = arith.constant 0 : index
    %c0_11 = arith.constant 0 : index
    %8 = vector.load %arg8[%c0_10, %c0_11] : memref<16x326xf32, #tpu.memory_space<vmem>>, vector<16x326xf32>
    %9 = vector.extract_strided_slice %8 {offsets = [0, 0], sizes = [16, 288], strides = [1, 1]} : vector<16x326xf32> to vector<16x288xf32>
    %10 = vector.extract_strided_slice %8 {offsets = [0, 1], sizes = [16, 288], strides = [1, 1]} : vector<16x326xf32> to vector<16x288xf32>
    %11 = vector.extract_strided_slice %8 {offsets = [0, 2], sizes = [16, 288], strides = [1, 1]} : vector<16x326xf32> to vector<16x288xf32>
    %12 = vector.extract_strided_slice %8 {offsets = [0, 18], sizes = [16, 288], strides = [1, 1]} : vector<16x326xf32> to vector<16x288xf32>
    %13 = vector.extract_strided_slice %8 {offsets = [0, 19], sizes = [16, 288], strides = [1, 1]} : vector<16x326xf32> to vector<16x288xf32>
    %14 = vector.extract_strided_slice %8 {offsets = [0, 20], sizes = [16, 288], strides = [1, 1]} : vector<16x326xf32> to vector<16x288xf32>
    %15 = vector.extract_strided_slice %8 {offsets = [0, 36], sizes = [16, 288], strides = [1, 1]} : vector<16x326xf32> to vector<16x288xf32>
    %16 = vector.extract_strided_slice %8 {offsets = [0, 37], sizes = [16, 288], strides = [1, 1]} : vector<16x326xf32> to vector<16x288xf32>
    %17 = vector.extract_strided_slice %8 {offsets = [0, 38], sizes = [16, 288], strides = [1, 1]} : vector<16x326xf32> to vector<16x288xf32>
    %18 = tpu.concatenate %9, %10, %11, %12, %13, %14, %15, %16, %17 in 0 : vector<16x288xf32>, vector<16x288xf32>, vector<16x288xf32>, vector<16x288xf32>, vector<16x288xf32>, vector<16x288xf32>, vector<16x288xf32>, vector<16x288xf32>, vector<16x288xf32> -> vector<144x288xf32>
    %c0_12 = arith.constant 0 : index
    %c0_13 = arith.constant 0 : index
    %c0_14 = arith.constant 0 : index
    %19 = vector.load %arg2[%c0_12, %c0_13, %c0_14] : memref<8x16x144xf32, #tpu.memory_space<vmem>>, vector<1x16x144xf32>
    %20 = vector.shape_cast %19 : vector<1x16x144xf32> to vector<16x144xf32>
    %cst_15 = arith.constant dense<0.000000e+00> : vector<16x288xf32>
    %21 = tpu.matmul %20, %18, %cst_15 {dimension_numbers = #tpu.dot_dimension_numbers<[1], [0], [0], [1], [0, 0, 1, 1], [], []>} : vector<16x144xf32>, vector<144x288xf32>, vector<16x288xf32> -> vector<16x288xf32>
    %c0_16 = arith.constant 0 : index
    %c0_17 = arith.constant 0 : index
    %c0_18 = arith.constant 0 : index
    %22 = vector.load %arg3[%c0_16, %c0_17, %c0_18] : memref<8x16x1xf32, #tpu.memory_space<vmem>>, vector<1x16x1xf32>
    %23 = vector.shape_cast %22 : vector<1x16x1xf32> to vector<16x1xf32>
    %24 = vector.broadcast %23 : vector<16x1xf32> to vector<16x288xf32>
    %25 = arith.addf %21, %24 : vector<16x288xf32>
    %cst_19 = arith.constant 0.000000e+00 : f32
    %26 = vector.broadcast %cst_19 : f32 to vector<16x288xf32>
    %27 = arith.maximumf %25, %26 : vector<16x288xf32>
    %28 = vector.broadcast %7 : vector<1x288xf32> to vector<16x288xf32>
    %29 = arith.mulf %27, %28 : vector<16x288xf32>
    %c0_20 = arith.constant 0 : index
    %c19_21 = arith.constant 19 : index
    %30 = vector.load %arg8[%c0_20, %c19_21] : memref<16x326xf32, #tpu.memory_space<vmem>>, vector<16x288xf32>
    tpu.vector_store %arg8[%c0_20, %c19_21], %29 {strides = array<i32>} : memref<16x326xf32, #tpu.memory_space<vmem>>, vector<16x288xf32>,
    %c0_22 = arith.constant 0 : index
    %c0_23 = arith.constant 0 : index
    %31 = vector.load %arg8[%c0_22, %c0_23] : memref<16x326xf32, #tpu.memory_space<vmem>>, vector<16x326xf32>
    %32 = vector.extract_strided_slice %31 {offsets = [0, 0], sizes = [16, 288], strides = [1, 1]} : vector<16x326xf32> to vector<16x288xf32>
    %33 = vector.extract_strided_slice %31 {offsets = [0, 1], sizes = [16, 288], strides = [1, 1]} : vector<16x326xf32> to vector<16x288xf32>
    %34 = vector.extract_strided_slice %31 {offsets = [0, 2], sizes = [16, 288], strides = [1, 1]} : vector<16x326xf32> to vector<16x288xf32>
    %35 = vector.extract_strided_slice %31 {offsets = [0, 18], sizes = [16, 288], strides = [1, 1]} : vector<16x326xf32> to vector<16x288xf32>
    %36 = vector.extract_strided_slice %31 {offsets = [0, 19], sizes = [16, 288], strides = [1, 1]} : vector<16x326xf32> to vector<16x288xf32>
    %37 = vector.extract_strided_slice %31 {offsets = [0, 20], sizes = [16, 288], strides = [1, 1]} : vector<16x326xf32> to vector<16x288xf32>
    %38 = vector.extract_strided_slice %31 {offsets = [0, 36], sizes = [16, 288], strides = [1, 1]} : vector<16x326xf32> to vector<16x288xf32>
    %39 = vector.extract_strided_slice %31 {offsets = [0, 37], sizes = [16, 288], strides = [1, 1]} : vector<16x326xf32> to vector<16x288xf32>
    %40 = vector.extract_strided_slice %31 {offsets = [0, 38], sizes = [16, 288], strides = [1, 1]} : vector<16x326xf32> to vector<16x288xf32>
    %41 = tpu.concatenate %32, %33, %34, %35, %36, %37, %38, %39, %40 in 0 : vector<16x288xf32>, vector<16x288xf32>, vector<16x288xf32>, vector<16x288xf32>, vector<16x288xf32>, vector<16x288xf32>, vector<16x288xf32>, vector<16x288xf32>, vector<16x288xf32> -> vector<144x288xf32>
    %c1 = arith.constant 1 : index
    %c0_24 = arith.constant 0 : index
    %c0_25 = arith.constant 0 : index
    %42 = vector.load %arg2[%c1, %c0_24, %c0_25] : memref<8x16x144xf32, #tpu.memory_space<vmem>>, vector<1x16x144xf32>
    %43 = vector.shape_cast %42 : vector<1x16x144xf32> to vector<16x144xf32>
    %cst_26 = arith.constant dense<0.000000e+00> : vector<16x288xf32>
    %44 = tpu.matmul %43, %41, %cst_26 {dimension_numbers = #tpu.dot_dimension_numbers<[1], [0], [0], [1], [0, 0, 1, 1], [], []>} : vector<16x144xf32>, vector<144x288xf32>, vector<16x288xf32> -> vector<16x288xf32>
    %c1_27 = arith.constant 1 : index
    %c0_28 = arith.constant 0 : index
    %c0_29 = arith.constant 0 : index
    %45 = vector.load %arg3[%c1_27, %c0_28, %c0_29] : memref<8x16x1xf32, #tpu.memory_space<vmem>>, vector<1x16x1xf32>
    %46 = vector.shape_cast %45 : vector<1x16x1xf32> to vector<16x1xf32>
    %47 = vector.broadcast %46 : vector<16x1xf32> to vector<16x288xf32>
    %48 = arith.addf %44, %47 : vector<16x288xf32>
    %cst_30 = arith.constant 0.000000e+00 : f32
    %49 = vector.broadcast %cst_30 : f32 to vector<16x288xf32>
    %50 = arith.maximumf %48, %49 : vector<16x288xf32>
    %51 = vector.broadcast %7 : vector<1x288xf32> to vector<16x288xf32>
    %52 = arith.mulf %50, %51 : vector<16x288xf32>
    %c0_31 = arith.constant 0 : index
    %c19_32 = arith.constant 19 : index
    %53 = vector.load %arg8[%c0_31, %c19_32] : memref<16x326xf32, #tpu.memory_space<vmem>>, vector<16x288xf32>
    tpu.vector_store %arg8[%c0_31, %c19_32], %52 {strides = array<i32>} : memref<16x326xf32, #tpu.memory_space<vmem>>, vector<16x288xf32>,
    %c0_33 = arith.constant 0 : index
    %c0_34 = arith.constant 0 : index
    %54 = vector.load %arg8[%c0_33, %c0_34] : memref<16x326xf32, #tpu.memory_space<vmem>>, vector<16x326xf32>
    %55 = vector.extract_strided_slice %54 {offsets = [0, 0], sizes = [16, 288], strides = [1, 1]} : vector<16x326xf32> to vector<16x288xf32>
    %56 = vector.extract_strided_slice %54 {offsets = [0, 1], sizes = [16, 288], strides = [1, 1]} : vector<16x326xf32> to vector<16x288xf32>
    %57 = vector.extract_strided_slice %54 {offsets = [0, 2], sizes = [16, 288], strides = [1, 1]} : vector<16x326xf32> to vector<16x288xf32>
    %58 = vector.extract_strided_slice %54 {offsets = [0, 18], sizes = [16, 288], strides = [1, 1]} : vector<16x326xf32> to vector<16x288xf32>
    %59 = vector.extract_strided_slice %54 {offsets = [0, 19], sizes = [16, 288], strides = [1, 1]} : vector<16x326xf32> to vector<16x288xf32>
    %60 = vector.extract_strided_slice %54 {offsets = [0, 20], sizes = [16, 288], strides = [1, 1]} : vector<16x326xf32> to vector<16x288xf32>
    %61 = vector.extract_strided_slice %54 {offsets = [0, 36], sizes = [16, 288], strides = [1, 1]} : vector<16x326xf32> to vector<16x288xf32>
    %62 = vector.extract_strided_slice %54 {offsets = [0, 37], sizes = [16, 288], strides = [1, 1]} : vector<16x326xf32> to vector<16x288xf32>
    %63 = vector.extract_strided_slice %54 {offsets = [0, 38], sizes = [16, 288], strides = [1, 1]} : vector<16x326xf32> to vector<16x288xf32>
    %64 = tpu.concatenate %55, %56, %57, %58, %59, %60, %61, %62, %63 in 0 : vector<16x288xf32>, vector<16x288xf32>, vector<16x288xf32>, vector<16x288xf32>, vector<16x288xf32>, vector<16x288xf32>, vector<16x288xf32>, vector<16x288xf32>, vector<16x288xf32> -> vector<144x288xf32>
    %c2 = arith.constant 2 : index
    %c0_35 = arith.constant 0 : index
    %c0_36 = arith.constant 0 : index
    %65 = vector.load %arg2[%c2, %c0_35, %c0_36] : memref<8x16x144xf32, #tpu.memory_space<vmem>>, vector<1x16x144xf32>
    %66 = vector.shape_cast %65 : vector<1x16x144xf32> to vector<16x144xf32>
    %cst_37 = arith.constant dense<0.000000e+00> : vector<16x288xf32>
    %67 = tpu.matmul %66, %64, %cst_37 {dimension_numbers = #tpu.dot_dimension_numbers<[1], [0], [0], [1], [0, 0, 1, 1], [], []>} : vector<16x144xf32>, vector<144x288xf32>, vector<16x288xf32> -> vector<16x288xf32>
    %c2_38 = arith.constant 2 : index
    %c0_39 = arith.constant 0 : index
    %c0_40 = arith.constant 0 : index
    %68 = vector.load %arg3[%c2_38, %c0_39, %c0_40] : memref<8x16x1xf32, #tpu.memory_space<vmem>>, vector<1x16x1xf32>
    %69 = vector.shape_cast %68 : vector<1x16x1xf32> to vector<16x1xf32>
    %70 = vector.broadcast %69 : vector<16x1xf32> to vector<16x288xf32>
    %71 = arith.addf %67, %70 : vector<16x288xf32>
    %cst_41 = arith.constant 0.000000e+00 : f32
    %72 = vector.broadcast %cst_41 : f32 to vector<16x288xf32>
    %73 = arith.maximumf %71, %72 : vector<16x288xf32>
    %74 = vector.broadcast %7 : vector<1x288xf32> to vector<16x288xf32>
    %75 = arith.mulf %73, %74 : vector<16x288xf32>
    %c0_42 = arith.constant 0 : index
    %c19_43 = arith.constant 19 : index
    %76 = vector.load %arg8[%c0_42, %c19_43] : memref<16x326xf32, #tpu.memory_space<vmem>>, vector<16x288xf32>
    tpu.vector_store %arg8[%c0_42, %c19_43], %75 {strides = array<i32>} : memref<16x326xf32, #tpu.memory_space<vmem>>, vector<16x288xf32>,
    %c0_44 = arith.constant 0 : index
    %c0_45 = arith.constant 0 : index
    %77 = vector.load %arg8[%c0_44, %c0_45] : memref<16x326xf32, #tpu.memory_space<vmem>>, vector<16x326xf32>
    %78 = vector.extract_strided_slice %77 {offsets = [0, 0], sizes = [16, 288], strides = [1, 1]} : vector<16x326xf32> to vector<16x288xf32>
    %79 = vector.extract_strided_slice %77 {offsets = [0, 1], sizes = [16, 288], strides = [1, 1]} : vector<16x326xf32> to vector<16x288xf32>
    %80 = vector.extract_strided_slice %77 {offsets = [0, 2], sizes = [16, 288], strides = [1, 1]} : vector<16x326xf32> to vector<16x288xf32>
    %81 = vector.extract_strided_slice %77 {offsets = [0, 18], sizes = [16, 288], strides = [1, 1]} : vector<16x326xf32> to vector<16x288xf32>
    %82 = vector.extract_strided_slice %77 {offsets = [0, 19], sizes = [16, 288], strides = [1, 1]} : vector<16x326xf32> to vector<16x288xf32>
    %83 = vector.extract_strided_slice %77 {offsets = [0, 20], sizes = [16, 288], strides = [1, 1]} : vector<16x326xf32> to vector<16x288xf32>
    %84 = vector.extract_strided_slice %77 {offsets = [0, 36], sizes = [16, 288], strides = [1, 1]} : vector<16x326xf32> to vector<16x288xf32>
    %85 = vector.extract_strided_slice %77 {offsets = [0, 37], sizes = [16, 288], strides = [1, 1]} : vector<16x326xf32> to vector<16x288xf32>
    %86 = vector.extract_strided_slice %77 {offsets = [0, 38], sizes = [16, 288], strides = [1, 1]} : vector<16x326xf32> to vector<16x288xf32>
    %87 = tpu.concatenate %78, %79, %80, %81, %82, %83, %84, %85, %86 in 0 : vector<16x288xf32>, vector<16x288xf32>, vector<16x288xf32>, vector<16x288xf32>, vector<16x288xf32>, vector<16x288xf32>, vector<16x288xf32>, vector<16x288xf32>, vector<16x288xf32> -> vector<144x288xf32>
    %c3 = arith.constant 3 : index
    %c0_46 = arith.constant 0 : index
    %c0_47 = arith.constant 0 : index
    %88 = vector.load %arg2[%c3, %c0_46, %c0_47] : memref<8x16x144xf32, #tpu.memory_space<vmem>>, vector<1x16x144xf32>
    %89 = vector.shape_cast %88 : vector<1x16x144xf32> to vector<16x144xf32>
    %cst_48 = arith.constant dense<0.000000e+00> : vector<16x288xf32>
    %90 = tpu.matmul %89, %87, %cst_48 {dimension_numbers = #tpu.dot_dimension_numbers<[1], [0], [0], [1], [0, 0, 1, 1], [], []>} : vector<16x144xf32>, vector<144x288xf32>, vector<16x288xf32> -> vector<16x288xf32>
    %c3_49 = arith.constant 3 : index
    %c0_50 = arith.constant 0 : index
    %c0_51 = arith.constant 0 : index
    %91 = vector.load %arg3[%c3_49, %c0_50, %c0_51] : memref<8x16x1xf32, #tpu.memory_space<vmem>>, vector<1x16x1xf32>
    %92 = vector.shape_cast %91 : vector<1x16x1xf32> to vector<16x1xf32>
    %93 = vector.broadcast %92 : vector<16x1xf32> to vector<16x288xf32>
    %94 = arith.addf %90, %93 : vector<16x288xf32>
    %cst_52 = arith.constant 0.000000e+00 : f32
    %95 = vector.broadcast %cst_52 : f32 to vector<16x288xf32>
    %96 = arith.maximumf %94, %95 : vector<16x288xf32>
    %97 = vector.broadcast %7 : vector<1x288xf32> to vector<16x288xf32>
    %98 = arith.mulf %96, %97 : vector<16x288xf32>
    %c0_53 = arith.constant 0 : index
    %c19_54 = arith.constant 19 : index
    %99 = vector.load %arg8[%c0_53, %c19_54] : memref<16x326xf32, #tpu.memory_space<vmem>>, vector<16x288xf32>
    tpu.vector_store %arg8[%c0_53, %c19_54], %98 {strides = array<i32>} : memref<16x326xf32, #tpu.memory_space<vmem>>, vector<16x288xf32>,
    %c0_55 = arith.constant 0 : index
    %c0_56 = arith.constant 0 : index
    %100 = vector.load %arg8[%c0_55, %c0_56] : memref<16x326xf32, #tpu.memory_space<vmem>>, vector<16x326xf32>
    %101 = vector.extract_strided_slice %100 {offsets = [0, 0], sizes = [16, 288], strides = [1, 1]} : vector<16x326xf32> to vector<16x288xf32>
    %102 = vector.extract_strided_slice %100 {offsets = [0, 1], sizes = [16, 288], strides = [1, 1]} : vector<16x326xf32> to vector<16x288xf32>
    %103 = vector.extract_strided_slice %100 {offsets = [0, 2], sizes = [16, 288], strides = [1, 1]} : vector<16x326xf32> to vector<16x288xf32>
    %104 = vector.extract_strided_slice %100 {offsets = [0, 18], sizes = [16, 288], strides = [1, 1]} : vector<16x326xf32> to vector<16x288xf32>
    %105 = vector.extract_strided_slice %100 {offsets = [0, 19], sizes = [16, 288], strides = [1, 1]} : vector<16x326xf32> to vector<16x288xf32>
    %106 = vector.extract_strided_slice %100 {offsets = [0, 20], sizes = [16, 288], strides = [1, 1]} : vector<16x326xf32> to vector<16x288xf32>
    %107 = vector.extract_strided_slice %100 {offsets = [0, 36], sizes = [16, 288], strides = [1, 1]} : vector<16x326xf32> to vector<16x288xf32>
    %108 = vector.extract_strided_slice %100 {offsets = [0, 37], sizes = [16, 288], strides = [1, 1]} : vector<16x326xf32> to vector<16x288xf32>
    %109 = vector.extract_strided_slice %100 {offsets = [0, 38], sizes = [16, 288], strides = [1, 1]} : vector<16x326xf32> to vector<16x288xf32>
    %110 = tpu.concatenate %101, %102, %103, %104, %105, %106, %107, %108, %109 in 0 : vector<16x288xf32>, vector<16x288xf32>, vector<16x288xf32>, vector<16x288xf32>, vector<16x288xf32>, vector<16x288xf32>, vector<16x288xf32>, vector<16x288xf32>, vector<16x288xf32> -> vector<144x288xf32>
    %c4 = arith.constant 4 : index
    %c0_57 = arith.constant 0 : index
    %c0_58 = arith.constant 0 : index
    %111 = vector.load %arg2[%c4, %c0_57, %c0_58] : memref<8x16x144xf32, #tpu.memory_space<vmem>>, vector<1x16x144xf32>
    %112 = vector.shape_cast %111 : vector<1x16x144xf32> to vector<16x144xf32>
    %cst_59 = arith.constant dense<0.000000e+00> : vector<16x288xf32>
    %113 = tpu.matmul %112, %110, %cst_59 {dimension_numbers = #tpu.dot_dimension_numbers<[1], [0], [0], [1], [0, 0, 1, 1], [], []>} : vector<16x144xf32>, vector<144x288xf32>, vector<16x288xf32> -> vector<16x288xf32>
    %c4_60 = arith.constant 4 : index
    %c0_61 = arith.constant 0 : index
    %c0_62 = arith.constant 0 : index
    %114 = vector.load %arg3[%c4_60, %c0_61, %c0_62] : memref<8x16x1xf32, #tpu.memory_space<vmem>>, vector<1x16x1xf32>
    %115 = vector.shape_cast %114 : vector<1x16x1xf32> to vector<16x1xf32>
    %116 = vector.broadcast %115 : vector<16x1xf32> to vector<16x288xf32>
    %117 = arith.addf %113, %116 : vector<16x288xf32>
    %cst_63 = arith.constant 0.000000e+00 : f32
    %118 = vector.broadcast %cst_63 : f32 to vector<16x288xf32>
    %119 = arith.maximumf %117, %118 : vector<16x288xf32>
    %120 = vector.broadcast %7 : vector<1x288xf32> to vector<16x288xf32>
    %121 = arith.mulf %119, %120 : vector<16x288xf32>
    %c0_64 = arith.constant 0 : index
    %c19_65 = arith.constant 19 : index
    %122 = vector.load %arg8[%c0_64, %c19_65] : memref<16x326xf32, #tpu.memory_space<vmem>>, vector<16x288xf32>
    tpu.vector_store %arg8[%c0_64, %c19_65], %121 {strides = array<i32>} : memref<16x326xf32, #tpu.memory_space<vmem>>, vector<16x288xf32>,
    %c0_66 = arith.constant 0 : index
    %c0_67 = arith.constant 0 : index
    %123 = vector.load %arg8[%c0_66, %c0_67] : memref<16x326xf32, #tpu.memory_space<vmem>>, vector<16x326xf32>
    %124 = vector.extract_strided_slice %123 {offsets = [0, 0], sizes = [16, 288], strides = [1, 1]} : vector<16x326xf32> to vector<16x288xf32>
    %125 = vector.extract_strided_slice %123 {offsets = [0, 1], sizes = [16, 288], strides = [1, 1]} : vector<16x326xf32> to vector<16x288xf32>
    %126 = vector.extract_strided_slice %123 {offsets = [0, 2], sizes = [16, 288], strides = [1, 1]} : vector<16x326xf32> to vector<16x288xf32>
    %127 = vector.extract_strided_slice %123 {offsets = [0, 18], sizes = [16, 288], strides = [1, 1]} : vector<16x326xf32> to vector<16x288xf32>
    %128 = vector.extract_strided_slice %123 {offsets = [0, 19], sizes = [16, 288], strides = [1, 1]} : vector<16x326xf32> to vector<16x288xf32>
    %129 = vector.extract_strided_slice %123 {offsets = [0, 20], sizes = [16, 288], strides = [1, 1]} : vector<16x326xf32> to vector<16x288xf32>
    %130 = vector.extract_strided_slice %123 {offsets = [0, 36], sizes = [16, 288], strides = [1, 1]} : vector<16x326xf32> to vector<16x288xf32>
    %131 = vector.extract_strided_slice %123 {offsets = [0, 37], sizes = [16, 288], strides = [1, 1]} : vector<16x326xf32> to vector<16x288xf32>
    %132 = vector.extract_strided_slice %123 {offsets = [0, 38], sizes = [16, 288], strides = [1, 1]} : vector<16x326xf32> to vector<16x288xf32>
    %133 = tpu.concatenate %124, %125, %126, %127, %128, %129, %130, %131, %132 in 0 : vector<16x288xf32>, vector<16x288xf32>, vector<16x288xf32>, vector<16x288xf32>, vector<16x288xf32>, vector<16x288xf32>, vector<16x288xf32>, vector<16x288xf32>, vector<16x288xf32> -> vector<144x288xf32>
    %c5 = arith.constant 5 : index
    %c0_68 = arith.constant 0 : index
    %c0_69 = arith.constant 0 : index
    %134 = vector.load %arg2[%c5, %c0_68, %c0_69] : memref<8x16x144xf32, #tpu.memory_space<vmem>>, vector<1x16x144xf32>
    %135 = vector.shape_cast %134 : vector<1x16x144xf32> to vector<16x144xf32>
    %cst_70 = arith.constant dense<0.000000e+00> : vector<16x288xf32>
    %136 = tpu.matmul %135, %133, %cst_70 {dimension_numbers = #tpu.dot_dimension_numbers<[1], [0], [0], [1], [0, 0, 1, 1], [], []>} : vector<16x144xf32>, vector<144x288xf32>, vector<16x288xf32> -> vector<16x288xf32>
    %c5_71 = arith.constant 5 : index
    %c0_72 = arith.constant 0 : index
    %c0_73 = arith.constant 0 : index
    %137 = vector.load %arg3[%c5_71, %c0_72, %c0_73] : memref<8x16x1xf32, #tpu.memory_space<vmem>>, vector<1x16x1xf32>
    %138 = vector.shape_cast %137 : vector<1x16x1xf32> to vector<16x1xf32>
    %139 = vector.broadcast %138 : vector<16x1xf32> to vector<16x288xf32>
    %140 = arith.addf %136, %139 : vector<16x288xf32>
    %cst_74 = arith.constant 0.000000e+00 : f32
    %141 = vector.broadcast %cst_74 : f32 to vector<16x288xf32>
    %142 = arith.maximumf %140, %141 : vector<16x288xf32>
    %143 = vector.broadcast %7 : vector<1x288xf32> to vector<16x288xf32>
    %144 = arith.mulf %142, %143 : vector<16x288xf32>
    %c0_75 = arith.constant 0 : index
    %c19_76 = arith.constant 19 : index
    %145 = vector.load %arg8[%c0_75, %c19_76] : memref<16x326xf32, #tpu.memory_space<vmem>>, vector<16x288xf32>
    tpu.vector_store %arg8[%c0_75, %c19_76], %144 {strides = array<i32>} : memref<16x326xf32, #tpu.memory_space<vmem>>, vector<16x288xf32>,
    %c0_77 = arith.constant 0 : index
    %c0_78 = arith.constant 0 : index
    %146 = vector.load %arg8[%c0_77, %c0_78] : memref<16x326xf32, #tpu.memory_space<vmem>>, vector<16x326xf32>
    %147 = vector.extract_strided_slice %146 {offsets = [0, 0], sizes = [16, 288], strides = [1, 1]} : vector<16x326xf32> to vector<16x288xf32>
    %148 = vector.extract_strided_slice %146 {offsets = [0, 1], sizes = [16, 288], strides = [1, 1]} : vector<16x326xf32> to vector<16x288xf32>
    %149 = vector.extract_strided_slice %146 {offsets = [0, 2], sizes = [16, 288], strides = [1, 1]} : vector<16x326xf32> to vector<16x288xf32>
    %150 = vector.extract_strided_slice %146 {offsets = [0, 18], sizes = [16, 288], strides = [1, 1]} : vector<16x326xf32> to vector<16x288xf32>
    %151 = vector.extract_strided_slice %146 {offsets = [0, 19], sizes = [16, 288], strides = [1, 1]} : vector<16x326xf32> to vector<16x288xf32>
    %152 = vector.extract_strided_slice %146 {offsets = [0, 20], sizes = [16, 288], strides = [1, 1]} : vector<16x326xf32> to vector<16x288xf32>
    %153 = vector.extract_strided_slice %146 {offsets = [0, 36], sizes = [16, 288], strides = [1, 1]} : vector<16x326xf32> to vector<16x288xf32>
    %154 = vector.extract_strided_slice %146 {offsets = [0, 37], sizes = [16, 288], strides = [1, 1]} : vector<16x326xf32> to vector<16x288xf32>
    %155 = vector.extract_strided_slice %146 {offsets = [0, 38], sizes = [16, 288], strides = [1, 1]} : vector<16x326xf32> to vector<16x288xf32>
    %156 = tpu.concatenate %147, %148, %149, %150, %151, %152, %153, %154, %155 in 0 : vector<16x288xf32>, vector<16x288xf32>, vector<16x288xf32>, vector<16x288xf32>, vector<16x288xf32>, vector<16x288xf32>, vector<16x288xf32>, vector<16x288xf32>, vector<16x288xf32> -> vector<144x288xf32>
    %c6 = arith.constant 6 : index
    %c0_79 = arith.constant 0 : index
    %c0_80 = arith.constant 0 : index
    %157 = vector.load %arg2[%c6, %c0_79, %c0_80] : memref<8x16x144xf32, #tpu.memory_space<vmem>>, vector<1x16x144xf32>
    %158 = vector.shape_cast %157 : vector<1x16x144xf32> to vector<16x144xf32>
    %cst_81 = arith.constant dense<0.000000e+00> : vector<16x288xf32>
    %159 = tpu.matmul %158, %156, %cst_81 {dimension_numbers = #tpu.dot_dimension_numbers<[1], [0], [0], [1], [0, 0, 1, 1], [], []>} : vector<16x144xf32>, vector<144x288xf32>, vector<16x288xf32> -> vector<16x288xf32>
    %c6_82 = arith.constant 6 : index
    %c0_83 = arith.constant 0 : index
    %c0_84 = arith.constant 0 : index
    %160 = vector.load %arg3[%c6_82, %c0_83, %c0_84] : memref<8x16x1xf32, #tpu.memory_space<vmem>>, vector<1x16x1xf32>
    %161 = vector.shape_cast %160 : vector<1x16x1xf32> to vector<16x1xf32>
    %162 = vector.broadcast %161 : vector<16x1xf32> to vector<16x288xf32>
    %163 = arith.addf %159, %162 : vector<16x288xf32>
    %cst_85 = arith.constant 0.000000e+00 : f32
    %164 = vector.broadcast %cst_85 : f32 to vector<16x288xf32>
    %165 = arith.maximumf %163, %164 : vector<16x288xf32>
    %166 = vector.broadcast %7 : vector<1x288xf32> to vector<16x288xf32>
    %167 = arith.mulf %165, %166 : vector<16x288xf32>
    %c0_86 = arith.constant 0 : index
    %c19_87 = arith.constant 19 : index
    %168 = vector.load %arg8[%c0_86, %c19_87] : memref<16x326xf32, #tpu.memory_space<vmem>>, vector<16x288xf32>
    tpu.vector_store %arg8[%c0_86, %c19_87], %167 {strides = array<i32>} : memref<16x326xf32, #tpu.memory_space<vmem>>, vector<16x288xf32>,
    %c0_88 = arith.constant 0 : index
    %c0_89 = arith.constant 0 : index
    %169 = vector.load %arg8[%c0_88, %c0_89] : memref<16x326xf32, #tpu.memory_space<vmem>>, vector<16x326xf32>
    %170 = vector.extract_strided_slice %169 {offsets = [0, 0], sizes = [16, 288], strides = [1, 1]} : vector<16x326xf32> to vector<16x288xf32>
    %171 = vector.extract_strided_slice %169 {offsets = [0, 1], sizes = [16, 288], strides = [1, 1]} : vector<16x326xf32> to vector<16x288xf32>
    %172 = vector.extract_strided_slice %169 {offsets = [0, 2], sizes = [16, 288], strides = [1, 1]} : vector<16x326xf32> to vector<16x288xf32>
    %173 = vector.extract_strided_slice %169 {offsets = [0, 18], sizes = [16, 288], strides = [1, 1]} : vector<16x326xf32> to vector<16x288xf32>
    %174 = vector.extract_strided_slice %169 {offsets = [0, 19], sizes = [16, 288], strides = [1, 1]} : vector<16x326xf32> to vector<16x288xf32>
    %175 = vector.extract_strided_slice %169 {offsets = [0, 20], sizes = [16, 288], strides = [1, 1]} : vector<16x326xf32> to vector<16x288xf32>
    %176 = vector.extract_strided_slice %169 {offsets = [0, 36], sizes = [16, 288], strides = [1, 1]} : vector<16x326xf32> to vector<16x288xf32>
    %177 = vector.extract_strided_slice %169 {offsets = [0, 37], sizes = [16, 288], strides = [1, 1]} : vector<16x326xf32> to vector<16x288xf32>
    %178 = vector.extract_strided_slice %169 {offsets = [0, 38], sizes = [16, 288], strides = [1, 1]} : vector<16x326xf32> to vector<16x288xf32>
    %179 = tpu.concatenate %170, %171, %172, %173, %174, %175, %176, %177, %178 in 0 : vector<16x288xf32>, vector<16x288xf32>, vector<16x288xf32>, vector<16x288xf32>, vector<16x288xf32>, vector<16x288xf32>, vector<16x288xf32>, vector<16x288xf32>, vector<16x288xf32> -> vector<144x288xf32>
    %c7 = arith.constant 7 : index
    %c0_90 = arith.constant 0 : index
    %c0_91 = arith.constant 0 : index
    %180 = vector.load %arg2[%c7, %c0_90, %c0_91] : memref<8x16x144xf32, #tpu.memory_space<vmem>>, vector<1x16x144xf32>
    %181 = vector.shape_cast %180 : vector<1x16x144xf32> to vector<16x144xf32>
    %cst_92 = arith.constant dense<0.000000e+00> : vector<16x288xf32>
    %182 = tpu.matmul %181, %179, %cst_92 {dimension_numbers = #tpu.dot_dimension_numbers<[1], [0], [0], [1], [0, 0, 1, 1], [], []>} : vector<16x144xf32>, vector<144x288xf32>, vector<16x288xf32> -> vector<16x288xf32>
    %c7_93 = arith.constant 7 : index
    %c0_94 = arith.constant 0 : index
    %c0_95 = arith.constant 0 : index
    %183 = vector.load %arg3[%c7_93, %c0_94, %c0_95] : memref<8x16x1xf32, #tpu.memory_space<vmem>>, vector<1x16x1xf32>
    %184 = vector.shape_cast %183 : vector<1x16x1xf32> to vector<16x1xf32>
    %185 = vector.broadcast %184 : vector<16x1xf32> to vector<16x288xf32>
    %186 = arith.addf %182, %185 : vector<16x288xf32>
    %cst_96 = arith.constant 0.000000e+00 : f32
    %187 = vector.broadcast %cst_96 : f32 to vector<16x288xf32>
    %188 = arith.maximumf %186, %187 : vector<16x288xf32>
    %189 = vector.broadcast %7 : vector<1x288xf32> to vector<16x288xf32>
    %190 = arith.mulf %188, %189 : vector<16x288xf32>
    %c0_97 = arith.constant 0 : index
    %c19_98 = arith.constant 19 : index
    %191 = vector.load %arg8[%c0_97, %c19_98] : memref<16x326xf32, #tpu.memory_space<vmem>>, vector<16x288xf32>
    tpu.vector_store %arg8[%c0_97, %c19_98], %190 {strides = array<i32>} : memref<16x326xf32, #tpu.memory_space<vmem>>, vector<16x288xf32>,
    %c0_99 = arith.constant 0 : index
    %c0_100 = arith.constant 0 : index
    %192 = vector.load %arg6[%c0_99, %c0_100] : memref<288x256xf32, #tpu.memory_space<vmem>>, vector<288x256xf32>
    %cst_101 = arith.constant dense<0.000000e+00> : vector<16x256xf32>
    %193 = tpu.matmul %190, %192, %cst_101 {dimension_numbers = #tpu.dot_dimension_numbers<[1], [0], [0], [1], [0, 0, 1, 1], [], []>} : vector<16x288xf32>, vector<288x256xf32>, vector<16x256xf32> -> vector<16x256xf32>
    %c0_102 = arith.constant 0 : index
    %c0_103 = arith.constant 0 : index
    %c0_104 = arith.constant 0 : index
    %194 = vector.load %arg7[%c0_102, %c0_103, %c0_104] : memref<1x16x256xf32, #tpu.memory_space<vmem>>, vector<1x16x256xf32>
    %195 = vector.shape_cast %194 : vector<1x16x256xf32> to vector<16x256xf32>
    %196 = vector.shape_cast %193 : vector<16x256xf32> to vector<1x16x256xf32>
    tpu.vector_store %arg7[%c0_102, %c0_103, %c0_104], %196 {strides = array<i32>} : memref<1x16x256xf32, #tpu.memory_space<vmem>>, vector<1x16x256xf32>,
    return
  }
  func.func @transform_0(%arg0: i32) -> (i32, i32, i32) {
    %c0_i32 = arith.constant 0 : i32
    %c0_i32_0 = arith.constant 0 : i32
    %c0_i32_1 = arith.constant 0 : i32
    return %arg0, %c0_i32, %c0_i32_0 : i32, i32, i32
  }
  func.func @transform_1(%arg0: i32) -> (i32, i32, i32) {
    %c0_i32 = arith.constant 0 : i32
    %c0_i32_0 = arith.constant 0 : i32
    %c0_i32_1 = arith.constant 0 : i32
    %c0_i32_2 = arith.constant 0 : i32
    return %c0_i32, %c0_i32_0, %c0_i32_1 : i32, i32, i32
  }
  func.func @transform_2(%arg0: i32) -> (i32, i32, i32) {
    %c0_i32 = arith.constant 0 : i32
    %c0_i32_0 = arith.constant 0 : i32
    %c0_i32_1 = arith.constant 0 : i32
    %c0_i32_2 = arith.constant 0 : i32
    return %c0_i32, %c0_i32_0, %c0_i32_1 : i32, i32, i32
  }
  func.func @transform_3(%arg0: i32) -> (i32, i32) {
    %c0_i32 = arith.constant 0 : i32
    %c0_i32_0 = arith.constant 0 : i32
    %c0_i32_1 = arith.constant 0 : i32
    return %c0_i32, %c0_i32_0 : i32, i32
  }
  func.func @transform_4(%arg0: i32) -> (i32, i32) {
    %c0_i32 = arith.constant 0 : i32
    %c0_i32_0 = arith.constant 0 : i32
    %c0_i32_1 = arith.constant 0 : i32
    return %c0_i32, %c0_i32_0 : i32, i32
  }
  func.func @transform_5(%arg0: i32) -> (i32, i32) {
    %c0_i32 = arith.constant 0 : i32
    %c0_i32_0 = arith.constant 0 : i32
    %c0_i32_1 = arith.constant 0 : i32
    return %c0_i32, %c0_i32_0 : i32, i32
  }
  func.func @transform_6(%arg0: i32) -> (i32, i32, i32) {
    %c0_i32 = arith.constant 0 : i32
    %c0_i32_0 = arith.constant 0 : i32
    %c0_i32_1 = arith.constant 0 : i32
    return %arg0, %c0_i32, %c0_i32_0 : i32, i32, i32
  }
}

</mosaic_0001>

<bundles_post_ra>
// kernel: decoder_forward.1
= control target key start
LH: loop header
LB: loop body
LE: loop exit
PB: predicated region body
PF: predicated region fallthrough
CT: control target
= control target key end

     0   :  { %s5804_s21 = smov 0   ;;  %s7245_s0 = inlined_call_operand.vmem [shape: f32[2,8,64], index: 0, kind: input, shape index: {}]   ;;  %s7246_s1 = inlined_call_operand.vmem [shape: f32[8,16,144], index: 1, kind: input, shape index: {}]   ;;  %s7247_s2 = inlined_call_operand.vmem [shape: f32[8,16,1], index: 2, kind: input, shape index: {}]   ;;  %s7248_s3 = inlined_call_operand.vmem [shape: f32[64,288], index: 3, kind: input, shape index: {}]   ;;  %s7249_s4 = inlined_call_operand.vmem [shape: f32[1,288], index: 4, kind: input, shape index: {}]   ;;  %s7250_s5 = inlined_call_operand.vmem [shape: f32[288,256], index: 5, kind: input, shape index: {}]   ;;  %s7251_s6 = inlined_call_operand.vmem [shape: f32[2,16,256], index: 6, kind: output, shape index: {}]  }
   0x1 LB: > { %s4040_s22 = sadd.s32 4294967295, %s5754_s21   ;;  %p4044_p0 = scmp.ge.s32.totalorder %s5754_s21, 1  ;;  %s5754_s21 = sphi %s5804_s21, %s16_s21  }
   0x2   : > { %p211_p1 = scmp.lt.s32.totalorder %s5754_s21, 3 }
   0x4   : > { %p212_p2 = pnand %p4044_p0, %p211_p1 }
   0x5   : > { %v258_v0 = vld [vmem:[%s7248_s3 + $0x8] sm:$0xff] (!%p212_p2)  ;;  %v261_v1 = vld [vmem:[%s7248_s3 + $0x20] sm:$0xff] (!%p212_p2)  ;;  %vm251_vm0 = vcmask (!%p212_p2), 572416   ;;  %v260_v4 = vld [vmem:[%s7248_s3 + $0x18] sm:$0xff] (!%p212_p2)  ;;  %v5756_v7 = vmov (!%p212_p2), 0.0|0.0   ;;  %v5757_v8 = vmov (!%p212_p2), 0.0  }
   0x6   : > { %215 = sbr.rel (%p212_p2) target bundleno = 4593 (0x11f1), region = 44  ;;  %v257_v2 = vld [vmem:[%s7248_s3] sm:$0xff] (!%p212_p2)  ;;  %v4157_v3 = vpack.c.bf16 (!%p212_p2), %v261_v1, %v258_v0  ;;  %v264_v5 = vld [vmem:[%s7248_s3 + $0x38] sm:$0xff] (!%p212_p2)  ;;  %v267_v6 = vld [vmem:[%s7248_s3 + $0x50] sm:$0xff] (!%p212_p2)  ;;  %4173 = vmatprep.subr.bf16.mxu1 (!%p212_p2), %v5756_v7  ;;  %253 = vst [vmem:[#allocation2 + $0x18] sm:$0xff] (!%p212_p2), %v5757_v8  ;;  %349 = vmatprep.mubr.f32.mxu0 (!%p212_p2), %v5757_v8  ;;  %p5847_p3 = scmp.lt.s32.totalorder (!%p212_p2), %s4040_s22, 1 }
   0x7   : > { %255 = vst.msk [vmem:[#allocation2 + $0x28] sm:$0xff] (!%p212_p2), %vm251_vm0, %v5757_v8  ;;  %249 = vst [vmem:[#allocation2] sm:$0xff] (!%p212_p2), %v5757_v8  ;;  %v4159_v9 = vpack.c.bf16 (!%p212_p2), %v260_v4, %v257_v2  ;;  %v4161_v10 = vpack.c.bf16 (!%p212_p2), %v267_v6, %v264_v5  ;;  %v263_v11 = vld [vmem:[%s7248_s3 + $0x30] sm:$0xff] (!%p212_p2)  ;;  %v266_v12 = vld [vmem:[%s7248_s3 + $0x48] sm:$0xff] (!%p212_p2)  ;;  %vm5758_vm1 = vmmov (!%p212_p2), 0   ;;  %vm281_vm2 = vcmask (!%p212_p2), 523264  }
   0x8   : > { %252 = vst.msk [vmem:[#allocation2 + $0x10] sm:$0xff] (!%p212_p2), %vm251_vm0, %v5757_v8  ;;  %v259_v13 = vld [vmem:[%s7248_s3 + $0x10] sm:$0xff] (!%p212_p2)  ;;  %4154 = vmatprep.mubr.msk.f32.mxu1 (!%p212_p2), %vm5758_vm1, %v5757_v8  ;;  %4158 = vmatprep.subr.bf16.mxu0 (!%p212_p2), %v4157_v3  ;;  %v262_v14 = vld [vmem:[%s7248_s3 + $0x28] sm:$0xff] (!%p212_p2)  ;;  %v273_v16 = vld [vmem:[%s7248_s3 + $0x80] sm:$0xff] (!%p212_p2)  ;;  %v4163_v17 = vpack.c.bf16 (!%p212_p2), %v266_v12, %v263_v11  ;;  %s5759_s8 = smov (!%p212_p2), 19   ;;  %s5760_s9 = smov (!%p212_p2), 126  }
   0x9   : > { %v270_v15 = vld [vmem:[%s7248_s3 + $0x68] sm:$0xff] (!%p212_p2)  ;;  %4160 = vmatpush1.bf16.msra.mxu0 (!%p212_p2), %v4159_v9  ;;  %v4174_v18 = vpack.c.bf16 (!%p212_p2), %v262_v14, %v259_v13  ;;  %v265_v19 = vld [vmem:[%s7248_s3 + $0x40] sm:$0xff] (!%p212_p2)  ;;  %v272_v22 = vld [vmem:[%s7248_s3 + $0x78] sm:$0xff] (!%p212_p2)  ;;  %s5761_s10 = smov (!%p212_p2), 127   ;;  %s5762_s11 = smov (!%p212_p2), 109   ;;  %vm441_vm3 = vcmask (!%p212_p2), 1047704  }
   0xa   : > { %4162 = vmatprep.subr.bf16.mxu0 (!%p212_p2), %v4161_v10  ;;  %v4165_v20 = vpack.c.bf16 (!%p212_p2), %v273_v16, %v270_v15  ;;  %v269_v21 = vld [vmem:[%s7248_s3 + $0x60] sm:$0xff] (!%p212_p2)  ;;  %v268_v23 = vld [vmem:[%s7248_s3 + $0x58] sm:$0xff] (!%p212_p2)  ;;  %v279_v26 = vld [vmem:[%s7248_s3 + $0xb0] sm:$0xff] (!%p212_p2)  ;;  %s5763_s12 = smov (!%p212_p2), 110   ;;  %vm435_vm4 = vcmask (!%p212_p2), 154624   ;;  %vm444_vm5 = vcmask (!%p212_p2), 416768  }
   0xb   : > { %4175 = vmatpush3.bf16.msra.mxu1 (!%p212_p2), %v4174_v18  ;;  %v4177_v24 = vpack.c.bf16 (!%p212_p2), %v268_v23, %v265_v19  ;;  %v276_v25 = vld [vmem:[%s7248_s3 + $0x98] sm:$0xff] (!%p212_p2)  ;;  %v271_v27 = vld [vmem:[%s7248_s3 + $0x70] sm:$0xff] (!%p212_p2)  ;;  %v274_v28 = vld [vmem:[%s7248_s3 + $0x88] sm:$0xff] (!%p212_p2)  ;;  %v4167_v29 = vpack.c.bf16 (!%p212_p2), %v272_v22, %v269_v21  ;;  %s5764_s13 = smov (!%p212_p2), 108   ;;  %s5765_s14 = smov (!%p212_p2), 92   ;;  %vm659_vm6 = vcmask (!%p212_p2), 130048  }
   0xc   : > { %4176 = vmatprep.subr.bf16.mxu1 (!%p212_p2), %v5756_v7  ;;  %v4169_v30 = vpack.c.bf16 (!%p212_p2), %v279_v26, %v276_v25  ;;  %v275_v31 = vld [vmem:[%s7248_s3 + $0x90] sm:$0xff] (!%p212_p2)  ;;  %v278_v32 = vld [vmem:[%s7248_s3 + $0xa8] sm:$0xff] (!%p212_p2)  ;;  %v4180_v33 = vpack.c.bf16 (!%p212_p2), %v274_v28, %v271_v27  ;;  %v277_v34 = vld [vmem:[%s7248_s3 + $0xa0] sm:$0xff] (!%p212_p2)  ;;  %s5766_s15 = smov (!%p212_p2), 91   ;;  %s5767_s19 = smov (!%p212_p2), 90   ;;  %v5768_v59 = vmov (!%p212_p2), 0  }
   0xd   : > { %s7254_s22 = smov (!%p5847_p3, %s4040_s22), 1  ;;  %4164 = vmatpush1.bf16.msra.mxu0 %v4163_v17  ;;  %v280_v35 = vld [vmem:[%s7248_s3 + $0xb8] sm:$0xff]  ;;  %v4171_v36 = vpack.c.bf16 %v278_v32, %v275_v31  ;;  %v5950_v56 = vld [vmem:[%s7246_s1 + $0x8] sm:$0xff]  ;;  %v647_v57 = vld [vmem:[%s7247_s2] sm:$0xff]  ;;  %4906 = vset.pattern.permute.xlu1 %v5768_v59  ;;  %vm471_vm7 = vcmask 1039360   ;;  %vm494_vm8 = vcmask 1031168  }
   0xe   : > { %4166 = vmatprep.subr.bf16.mxu0 %v4165_v20  ;;  %s4045_s24 = sshll.u32 %s7254_s22, 3  ;;  %v4183_v37 = vpack.c.bf16 %v280_v35, %v277_v34  ;;  %v5910_v40 = vld [vmem:[#allocation2 + $0x28] sm:$0xff]  ;;  %4907 = vset.pattern.permute.xlu0 %v5768_v59  ;;  %vm517_vm9 = vcmask 900096   ;;  %vm540_vm10 = vcmask 891904   ;;  %vm563_vm11 = vcmask 883712  }
   0xf   : > { %4178 = vmatpush3.bf16.msra.mxu1 %v4177_v24  ;;  %s243_s7 = scalar_lea.vmem %s7245_s0, %s4045_s24  ;;  %v4791_v44 = vpack.i.bf16 %v5910_v40, %v5757_v8  ;;  %v648_v58 = vld [vmem:[%s7247_s2 + $0x8] sm:$0xff]  ;;  %vm586_vm12 = vcmask 752640   ;;  %vm609_vm13 = vcmask 744448   ;;  %vm632_vm14 = vcmask 736256  }
  0x10   : > { %4179 = vmatprep.subr.bf16.mxu1 %v5756_v7  ;;  %v256_v38 = vld [vmem:[%s243_s7] sm:$0xff]  ;;  %vm3822_vm15 = vcmask 261120  }
  0x11   : > { %4168 = vmatpush1.bf16.msra.mxu0 %v4167_v29 }
  0x12   : > { %4170 = vmatprep.subr.bf16.mxu0 %v4169_v30 }
  0x13   : > { %4181 = vmatpush3.bf16.msra.mxu1 %v4180_v33 }
  0x14   : > { %4182 = vmatprep.subr.bf16.mxu1 %v5756_v7 }
  0x15   : > { %4172 = vmatpush1.bf16.msra.mxu0 %v4171_v36 }
  0x17   : > { %4184 = vmatpush3.bf16.msra.mxu1 %v4183_v37 }
  0x18   : > { %4048 = vmatmul.mubr.msk.f32.vlgmr.msra.gmra.mrb[0].mxu0 %vm281_vm2, %v256_v38 }
  0x1a   : > { %4155 = vmatmul.mubr.msk.f32.vlgmr.msra.gmra.mrb[0].mxu1 %vm281_vm2, %v256_v38 }
  0x1b   : > { %4050 = vmatprep.mubr.msk.f32.mxu1 %vm659_vm6, %v5950_v56 }
  0xeb   : > { %v351_v39 = vpop.f32.mrb[0].mxu0 }
  0xec   : > { %429 = vrot.lane.b32.xlu0 %v351_v39, %s5759_s8  ;;  %v353_v41 = vpop.f32.mrb[1].mxu0 }
  0xed   : > { %v422_v42 = vpop.f32.mrb[0].mxu1 }
  0xee   : > { %433 = vrot.lane.b32.xlu1 %v422_v42, %s5759_s8  ;;  %v4156_v43 = vpop.f32.mrb[1].mxu1 }
  0xf0   : > { %431 = vrot.lane.b32.xlu0 %v353_v41, %s5759_s8 }
  0xf2   : > { %4792 = vrot.lane.b32.xlu1 %v4791_v44, %s5760_s9 }
  0xf4   : > { %4787 = vrot.lane.b32.xlu0 %v4791_v44, %s5761_s10 }
  0xf6   : > { %4802 = vrot.lane.b32.xlu1 %v4791_v44, %s5762_s11 }
  0xf8   : > { %4797 = vrot.lane.b32.xlu0 %v4791_v44, %s5763_s12 }
 0x15e   : > { %v430_v45 = vpop.permute.xlu0 %429 }
 0x15f   : > { %442 = vst.msk [vmem:[#allocation2] sm:$0xff] %vm441_vm3, %v430_v45 }
 0x160   : > { %v434_v46 = vpop.permute.xlu1 %433 }
 0x162   : > { %v432_v47 = vpop.permute.xlu0 %431 }
 0x163   : > { %v436_v48 = vsel %vm435_vm4, %v430_v45, %v432_v47  ;;  %v437_v49 = vsel %vm435_vm4, %v432_v47, %v434_v46 }
 0x164   : > { %445 = vst.msk [vmem:[#allocation2 + $0x10] sm:$0xff] %vm444_vm5, %v437_v49  ;;  %v4185_v50 = vpack.c.bf16 %v5757_v8, %v436_v48  ;;  %v5964_v60 = vpop.permute.xlu1 %4792 }
 0x165   : > { %v4795_v16 = vunpack.i.h.bf16 %v5964_v60  ;;  %v4794_v17 = vunpack.i.l.bf16 %v5964_v60 }
 0x166   : > { %v447_v51 = vld [vmem:[#allocation2] sm:$0xff]  ;;  %4186 = vmatprep.subr.bf16.mxu1 %v4185_v50  ;;  %v5966_v61 = vpop.permute.xlu0 %4787 }
 0x167   : > { %v4806_v52 = vpack.i.bf16 %v5757_v8, %v447_v51  ;;  %v4187_v53 = vpack.c.bf16 %v5757_v8, %v447_v51  ;;  %v4790_v4 = vunpack.i.h.bf16 %v5966_v61  ;;  %v4789_v5 = vunpack.i.l.bf16 %v5966_v61 }
 0x168   : > { %v5968_v62 = vpop.permute.xlu1 %4802  ;;  %v498_v31 = vsel %vm494_vm8, %v4794_v17, %v4795_v16 }
 0x169   : > { %4807 = vrot.lane.b32.xlu1 %v4806_v52, %s5761_s10  ;;  %4812 = vrot.lane.b32.xlu0 %v4806_v52, %s5760_s9  ;;  %v475_v23 = vsel %vm471_vm7, %v4789_v5, %v4790_v4  ;;  %v4804_v45 = vunpack.i.l.bf16 %v5968_v62 }
 0x16a   : > { %4188 = vmatpush1.bf16.msra.mxu1 %v4187_v53  ;;  %v5970_v63 = vpop.permute.xlu0 %4797 }
 0x16b   : > { %v5930_v54 = vld [vmem:[#allocation2 + $0x10] sm:$0xff]  ;;  %v4800_v29 = vunpack.i.h.bf16 %v5970_v63  ;;  %v4799_v30 = vunpack.i.l.bf16 %v5970_v63 }
 0x16c   : > { %v4831_v55 = vpack.i.bf16 %v5930_v54, %v436_v48 }
 0x16d   : > { %4817 = vrot.lane.b32.xlu1 %v4806_v52, %s5763_s12  ;;  %4822 = vrot.lane.b32.xlu0 %v4806_v52, %s5762_s11 }
 0x171   : > { %4832 = vrot.lane.b32.xlu0 %v4831_v55, %s5760_s9  ;;  %4827 = vrot.lane.b32.xlu1 %v4831_v55, %s5761_s10 }
 0x175   : > { %4837 = vrot.lane.b32.xlu0 %v4791_v44, %s5764_s13  ;;  %4842 = vrot.lane.b32.xlu1 %v4806_v52, %s5764_s13 }
 0x179   : > { %4857 = vrot.lane.b32.xlu0 %v4831_v55, %s5762_s11  ;;  %4847 = vrot.lane.b32.xlu1 %v4831_v55, %s5763_s12 }
 0x17d   : > { %4862 = vrot.lane.b32.xlu0 %v4806_v52, %s5765_s14  ;;  %4852 = vrot.lane.b32.xlu1 %v4791_v44, %s5765_s14 }
 0x181   : > { %4872 = vrot.lane.b32.xlu0 %v4831_v55, %s5765_s14  ;;  %4867 = vrot.lane.b32.xlu1 %v4831_v55, %s5764_s13 }
 0x185   : > { %4877 = vrot.lane.b32.xlu0 %v4791_v44, %s5766_s15  ;;  %4882 = vrot.lane.b32.xlu1 %v4806_v52, %s5766_s15 }
 0x189   : > { %4897 = vrot.lane.b32.xlu0 %v4831_v55, %s5767_s19  ;;  %4887 = vrot.lane.b32.xlu1 %v4831_v55, %s5766_s15 }
 0x18d   : > { %4902 = vrot.lane.b32.xlu0 %v4806_v52, %s5767_s19  ;;  %4892 = vrot.lane.b32.xlu1 %v4791_v44, %s5767_s19  ;;  %v4805_v44 = vunpack.i.h.bf16 %v5968_v62  ;;  %v521_v52 = vsel %vm517_vm9, %v4799_v30, %v4800_v29 }
 0x191   : > { %651 = vperm.xlu1 %4906, %v647_v57   ;;  %656 = vperm.xlu0 %4907, %v648_v58  }
 0x1db   : > { %v4808_v0 = vpop.permute.xlu1 %4807  ;;  %v4813_v1 = vpop.permute.xlu0 %4812 }
 0x1dc   : > { %v4810_v6 = vunpack.i.h.bf16 %v4808_v0  ;;  %v4809_v9 = vunpack.i.l.bf16 %v4808_v0  ;;  %v4815_v26 = vunpack.i.h.bf16 %v4813_v1  ;;  %v4814_v27 = vunpack.i.l.bf16 %v4813_v1 }
 0x1de   : > { %v474_v19 = vsel %vm471_vm7, %v4810_v6, %v4789_v5  ;;  %v497_v43 = vsel %vm494_vm8, %v4815_v26, %v4794_v17 }
 0x1df   : > { %v4818_v2 = vpop.permute.xlu1 %4817  ;;  %v5972_v3 = vpop.permute.xlu0 %4822 }
 0x1e0   : > { %v4820_v32 = vunpack.i.h.bf16 %v4818_v2  ;;  %v4819_v33 = vunpack.i.l.bf16 %v4818_v2  ;;  %v4825_v57 = vunpack.i.h.bf16 %v5972_v3  ;;  %v4824_v58 = vunpack.i.l.bf16 %v5972_v3 }
 0x1e1   : > { %v544_v2 = vsel %vm540_vm10, %v4804_v45, %v4805_v44 }
 0x1e2   : > { %v520_v48 = vsel %vm517_vm9, %v4820_v32, %v4799_v30 }
 0x1e3   : > { %v5976_v10 = vpop.permute.xlu1 %4827  ;;  %v5978_v11 = vpop.permute.xlu0 %4832 }
 0x1e4   : > { %v4830_v12 = vunpack.i.h.bf16 %v5976_v10  ;;  %v4829_v13 = vunpack.i.l.bf16 %v5976_v10  ;;  %v4835_v14 = vunpack.i.h.bf16 %v5978_v11  ;;  %v4834_v15 = vunpack.i.l.bf16 %v5978_v11 }
 0x1e6   : > { %v472_v18 = vsel %vm471_vm7, %v4809_v9, %v4829_v13  ;;  %v473_v22 = vsel %vm471_vm7, %v4829_v13, %v4830_v12  ;;  %v496_v25 = vsel %vm494_vm8, %v4834_v15, %v4835_v14  ;;  %v495_v34 = vsel %vm494_vm8, %v4814_v27, %v4834_v15 }
 0x1e7   : > { %v5988_v20 = vpop.permute.xlu1 %4842  ;;  %v5990_v21 = vpop.permute.xlu0 %4837  ;;  %v4191_v24 = vpack.c.bf16 %v474_v19, %v472_v18  ;;  %v4189_v28 = vpack.c.bf16 %v475_v23, %v473_v22  ;;  %v4193_v37 = vpack.c.bf16 %v498_v31, %v496_v25  ;;  %v4195_v47 = vpack.c.bf16 %v497_v43, %v495_v34 }
 0x1e8   : > { %v4845_v0 = vunpack.i.h.bf16 %v5988_v20  ;;  %v4844_v1 = vunpack.i.l.bf16 %v5988_v20  ;;  %v4840_v5 = vunpack.i.h.bf16 %v5990_v21  ;;  %v4839_v6 = vunpack.i.l.bf16 %v5990_v21 }
 0x1e9   : > { %4190 = vmatprep.subr.bf16.mxu1 %v4189_v28  ;;  %v543_v22 = vsel %vm540_vm10, %v4825_v57, %v4804_v45 }
 0x1ea   : > { %4192 = vmatpush1.bf16.msra.mxu1 %v4191_v24  ;;  %v566_v27 = vsel %vm563_vm11, %v4845_v0, %v4839_v6  ;;  %v567_v32 = vsel %vm563_vm11, %v4839_v6, %v4840_v5 }
 0x1eb   : > { %v6007_v35 = vpop.permute.xlu1 %4847  ;;  %v6009_v36 = vpop.permute.xlu0 %4857  ;;  %4194 = vmatprep.subr.bf16.mxu1 %v4193_v37 }
 0x1ec   : > { %v4850_v38 = vunpack.i.h.bf16 %v6007_v35  ;;  %v4849_v39 = vunpack.i.l.bf16 %v6007_v35  ;;  %v4860_v41 = vunpack.i.h.bf16 %v6009_v36  ;;  %v4859_v42 = vunpack.i.l.bf16 %v6009_v36 }
 0x1ee   : > { %v518_v46 = vsel %vm517_vm9, %v4819_v33, %v4849_v39  ;;  %v519_v51 = vsel %vm517_vm9, %v4849_v39, %v4850_v38  ;;  %4196 = vmatpush1.bf16.msra.mxu1 %v4195_v47  ;;  %v542_v55 = vsel %vm540_vm10, %v4859_v42, %v4860_v41  ;;  %v541_v9 = vsel %vm540_vm10, %v4824_v58, %v4859_v42 }
 0x1ef   : > { %v6020_v49 = vpop.permute.xlu1 %4852  ;;  %v4863_v50 = vpop.permute.xlu0 %4862  ;;  %v4199_v53 = vpack.c.bf16 %v520_v48, %v518_v46  ;;  %v4197_v59 = vpack.c.bf16 %v521_v52, %v519_v51  ;;  %v4201_v15 = vpack.c.bf16 %v544_v2, %v542_v55  ;;  %v4203_v26 = vpack.c.bf16 %v543_v22, %v541_v9 }
 0x1f0   : > { %v4855_v23 = vunpack.i.h.bf16 %v6020_v49  ;;  %v4854_v24 = vunpack.i.l.bf16 %v6020_v49  ;;  %v4865_v33 = vunpack.i.h.bf16 %v4863_v50  ;;  %v4864_v34 = vunpack.i.l.bf16 %v4863_v50 }
 0x1f1   : > { %4198 = vmatprep.subr.bf16.mxu1 %v4197_v59 }
 0x1f2   : > { %4200 = vmatpush1.bf16.msra.mxu1 %v4199_v53  ;;  %v590_v48 = vsel %vm586_vm12, %v4854_v24, %v4855_v23  ;;  %v589_v53 = vsel %vm586_vm12, %v4865_v33, %v4854_v24 }
 0x1f3   : > { %v6041_v13 = vpop.permute.xlu1 %4867  ;;  %v6043_v3 = vpop.permute.xlu0 %4872  ;;  %4202 = vmatprep.subr.bf16.mxu1 %v4201_v15 }
 0x1f4   : > { %v4870_v17 = vunpack.i.h.bf16 %v6041_v13  ;;  %v4869_v18 = vunpack.i.l.bf16 %v6041_v13  ;;  %v4875_v19 = vunpack.i.h.bf16 %v6043_v3  ;;  %v4874_v20 = vunpack.i.l.bf16 %v6043_v3 }
 0x1f6   : > { %v564_v25 = vsel %vm563_vm11, %v4844_v1, %v4869_v18  ;;  %v565_v31 = vsel %vm563_vm11, %v4869_v18, %v4870_v17  ;;  %4204 = vmatpush1.bf16.msra.mxu1 %v4203_v26  ;;  %v588_v39 = vsel %vm586_vm12, %v4874_v20, %v4875_v19  ;;  %v587_v47 = vsel %vm586_vm12, %v4864_v34, %v4874_v20 }
 0x1f7   : > { %v4883_v28 = vpop.permute.xlu1 %4882  ;;  %v6054_v30 = vpop.permute.xlu0 %4877  ;;  %v4207_v37 = vpack.c.bf16 %v566_v27, %v564_v25  ;;  %v4205_v46 = vpack.c.bf16 %v567_v32, %v565_v31  ;;  %v4209_v52 = vpack.c.bf16 %v590_v48, %v588_v39  ;;  %v4211_v0 = vpack.c.bf16 %v589_v53, %v587_v47  ;;  %v645_v47 = vld [vmem:[%s7246_s1 + $0x10] sm:$0xff] }
 0x1f8   : > { %v4885_v42 = vunpack.i.h.bf16 %v4883_v28  ;;  %v4880_v43 = vunpack.i.h.bf16 %v6054_v30  ;;  %v4879_v45 = vunpack.i.l.bf16 %v6054_v30  ;;  %v4884_v55 = vunpack.i.l.bf16 %v4883_v28 }
 0x1f9   : > { %4206 = vmatprep.subr.bf16.mxu1 %v4205_v46  ;;  %v4222_v46 = vpack.c.bf16 %v5910_v40, %v5930_v54  ;;  %v4225_v48 = vpack.c.bf16 %v4790_v4, %v4830_v12  ;;  %v4228_v40 = vpack.c.bf16 %v4795_v16, %v4835_v14  ;;  %v4231_v54 = vpack.c.bf16 %v4800_v29, %v4850_v38  ;;  %v446_v14 = vld [vmem:[%s7249_s4] sm:$0x7] }
 0x1fa   : > { %4208 = vmatpush1.bf16.msra.mxu1 %v4207_v37  ;;  %v612_v59 = vsel %vm609_vm13, %v4885_v42, %v4879_v45  ;;  %v613_v1 = vsel %vm609_vm13, %v4879_v45, %v4880_v43  ;;  %v643_v42 = vld [vmem:[%s7246_s1] sm:$0xff]  ;;  %v646_v45 = vld [vmem:[%s7246_s1 + $0x18] sm:$0xff]  ;;  %v4237_v60 = vpack.c.bf16 %v4840_v5, %v4870_v17  ;;  %v4240_v61 = vpack.c.bf16 %v4855_v23, %v4875_v19 }
 0x1fb   : > { %v6071_v50 = vpop.permute.xlu1 %4887  ;;  %v6073_v51 = vpop.permute.xlu0 %4897  ;;  %4210 = vmatprep.subr.bf16.mxu1 %v4209_v52  ;;  %v825_v4 = vlaneseq }
 0x1fc   : > { %v4890_v57 = vunpack.i.h.bf16 %v6071_v50  ;;  %v4889_v58 = vunpack.i.l.bf16 %v6071_v50  ;;  %v4900_v6 = vunpack.i.h.bf16 %v6073_v51  ;;  %v4899_v9 = vunpack.i.l.bf16 %v6073_v51 }
 0x1fd   : > { %v826_v10 = vshrl.u32 %v825_v4, 7 }
 0x1fe   : > { %v610_v2 = vsel %vm609_vm13, %v4884_v55, %v4889_v58  ;;  %v611_v15 = vsel %vm609_vm13, %v4889_v58, %v4890_v57  ;;  %4212 = vmatpush1.bf16.msra.mxu1 %v4211_v0  ;;  %v634_v33 = vsel %vm632_vm14, %v4899_v9, %v4900_v6  ;;  %v4243_v62 = vpack.c.bf16 %v4880_v43, %v4890_v57 }
 0x1ff   : > { %v4893_v18 = vpop.permute.xlu1 %4892  ;;  %v4903_v20 = vpop.permute.xlu0 %4902  ;;  %v4213_v22 = vpack.c.bf16 %v613_v1, %v611_v15  ;;  %v4215_v24 = vpack.c.bf16 %v612_v59, %v610_v2  ;;  %v827_v11 = vsub.s32 0, %v826_v10  ;;  %v831_v36 = vsub.s32 1, %v826_v10 }
 0x200   : > { %v4895_v25 = vunpack.i.h.bf16 %v4893_v18  ;;  %v4894_v26 = vunpack.i.l.bf16 %v4893_v18  ;;  %v4905_v27 = vunpack.i.h.bf16 %v4903_v20  ;;  %v4904_v28 = vunpack.i.l.bf16 %v4903_v20 }
 0x201   : > { %4214 = vmatprep.subr.bf16.mxu1 %v4213_v22  ;;  %v6144_v29 = vrot.slane %v446_v14, %v827_v11  ;;  %v6147_v3 = vrot.slane %v446_v14, %v831_v36  ;;  %v835_v50 = vsub.s32 2, %v826_v10 }
 0x202   : > { %v635_v31 = vsel %vm632_vm14, %v4905_v27, %v4894_v26  ;;  %v633_v32 = vsel %vm632_vm14, %v4904_v28, %v4899_v9  ;;  %v636_v34 = vsel %vm632_vm14, %v4894_v26, %v4895_v25  ;;  %4216 = vmatpush1.bf16.msra.mxu1 %v4215_v24  ;;  %v4246_v63 = vpack.c.bf16 %v4895_v25, %v4900_v6 }
 0x203   : > { %v4217_v37 = vpack.c.bf16 %v636_v34, %v634_v33  ;;  %v4219_v39 = vpack.c.bf16 %v635_v31, %v633_v32  ;;  %v6154_v55 = vrot.slane %v446_v14, %v835_v50 }
 0x205   : > { %4218 = vmatprep.subr.bf16.mxu1 %v4217_v37 }
 0x206   : > { %4220 = vmatpush1.bf16.msra.mxu1 %v4219_v39 }
 0x207   : > { %4221 = vmatprep.subr.bf16.mxu1 %v5756_v7 }
 0x209   : > { %731 = vmatmul.mubr.f32.vlgmr.msra.gmra.mrb[2].mxu1 %v643_v42 }
 0x20a   : > { %4223 = vmatpush1.bf16.msra.mxu1 %v4222_v46  ;;  %4051 = vmatprep.mubr.msk.f32.mxu1 %vm659_vm6, %v646_v45 }
 0x20b   : > { %4224 = vmatprep.subr.bf16.mxu1 %v5756_v7 }
 0x20d   : > { %737 = vmatmul.mubr.f32.gmra.mrb[4].mxu1 %v645_v47 }
 0x20e   : > { %4226 = vmatpush1.bf16.msra.mxu1 %v4225_v48  ;;  %4052 = vmatprep.mubr.msk.f32.mxu1 %vm659_vm6, %v5950_v56  ;;  %v4234_v56 = vpack.c.bf16 %v4805_v44, %v4860_v41 }
 0x20f   : > { %4227 = vmatprep.subr.bf16.mxu1 %v5756_v7 }
 0x210   : > { %v652_v12 = vpop.permute.xlu1 %651  ;;  %v657_v41 = vpop.permute.xlu0 %656 }
 0x212   : > { %4229 = vmatpush1.bf16.msra.mxu1 %v4228_v40 }
 0x213   : > { %4230 = vmatprep.subr.bf16.mxu1 %v5756_v7 }
 0x216   : > { %4232 = vmatpush1.bf16.msra.mxu1 %v4231_v54 }
 0x217   : > { %4233 = vmatprep.subr.bf16.mxu1 %v5756_v7 }
 0x21a   : > { %4235 = vmatpush1.bf16.msra.mxu1 %v4234_v56  ;;  %v4055_v56 = vld [vmem:[%s7246_s1 + $0x28] sm:$0xff] }
 0x21b   : > { %4236 = vmatprep.subr.bf16.mxu1 %v5756_v7  ;;  %4060 = vmatprep.mubr.msk.f32.mxu0 %vm659_vm6, %v4055_v56 }
 0x21e   : > { %4238 = vmatpush1.bf16.msra.mxu1 %v4237_v60  ;;  %v4058_v60 = vld [vmem:[%s7247_s2 + $0x10] sm:$0xff] }
 0x21f   : > { %4239 = vmatprep.subr.bf16.mxu1 %v5756_v7 }
 0x222   : > { %4241 = vmatpush1.bf16.msra.mxu1 %v4240_v61  ;;  %v4059_v61 = vld [vmem:[%s7247_s2 + $0x18] sm:$0xff] }
 0x223   : > { %4242 = vmatprep.subr.bf16.mxu1 %v5756_v7 }
 0x226   : > { %4244 = vmatpush1.bf16.msra.mxu1 %v4243_v62 }
 0x227   : > { %4245 = vmatprep.subr.bf16.mxu1 %v5756_v7 }
 0x22a   : > { %4247 = vmatpush1.bf16.msra.mxu1 %v4246_v63 }
 0x22b   : > { %4284 = vmatprep.subr.bf16.mxu1 %v5756_v7 }
 0x22d   : > { %808 = vmatmul.mubr.f32.vlgmr.msra.gmra.mrb[6].mxu1 %v643_v42 }
 0x22e   : > { %4053 = vmatprep.mubr.msk.f32.mxu1 %vm659_vm6, %v646_v45 }
 0x231   : > { %813 = vmatmul.mubr.f32.gmra.mrb[8].mxu1 %v645_v47 }
 0x232   : > { %4062 = vmatprep.mubr.msk.f32.mxu1 %vm659_vm6, %v4055_v56 }
 0x2dc   : > { %v732_v16 = vpop.f32.mrb[2].mxu1 }
 0x2dd   : > { %v733_v21 = vadd.f32 %v732_v16, %v652_v12  ;;  %v734_v35 = vpop.f32.mrb[3].mxu1 }
 0x2de   : > { %v735_v38 = vadd.f32 %v734_v35, %v652_v12 }
 0x2df   : > { %v818_v44 = vmax.f32 %v733_v21, 0.0 }
 0x2e0   : > { %v738_v49 = vpop.f32.mrb[4].mxu1  ;;  %v819_v13 = vmax.f32 %v735_v38, 0.0 }
 0x2e1   : > { %v840_v5 = vmul.f32 %v6144_v29, %v818_v44  ;;  %v739_v17 = vadd.f32 %v738_v49, %v657_v41  ;;  %v740_v19 = vpop.f32.mrb[5].mxu1 }
 0x2e2   : > { %v841_v30 = vmul.f32 %v6147_v3, %v819_v13  ;;  %v741_v52 = vadd.f32 %v740_v19, %v657_v41 }
 0x2e3   : > { %852 = vrot.lane.b32.xlu1 %v840_v5, %s5759_s8  ;;  %v821_v23 = vmax.f32 %v739_v17, 0.0 }
 0x2e4   : > { %v822_v0 = vmax.f32 %v741_v52, 0.0 }
 0x2e5   : > { %v843_v43 = vmul.f32 %v6144_v29, %v821_v23 }
 0x2e6   : > { %v844_v15 = vmul.f32 %v6147_v3, %v822_v0 }
 0x2e7   : > { %854 = vrot.lane.b32.xlu1 %v841_v30, %s5759_s8 }
 0x2eb   : > { %858 = vrot.lane.b32.xlu1 %v843_v43, %s5759_s8 }
 0x300   : > { %v809_v51 = vpop.f32.mrb[6].mxu1 }
 0x301   : > { %v810_v53 = vadd.f32 %v809_v51, %v652_v12  ;;  %v811_v57 = vpop.f32.mrb[7].mxu1 }
 0x303   : > { %v820_v58 = vmax.f32 %v810_v53, 0.0 }
 0x304   : > { %v814_v59 = vpop.f32.mrb[8].mxu1 }
 0x305   : > { %v842_v1 = vmul.f32 %v6154_v55, %v820_v58  ;;  %v815_v2 = vadd.f32 %v814_v59, %v657_v41  ;;  %v816_v6 = vpop.f32.mrb[9].mxu1 }
 0x307   : > { %v823_v9 = vmax.f32 %v815_v2, 0.0  ;;  %856 = vrot.lane.b32.xlu0 %v842_v1, %s5759_s8 }
 0x309   : > { %v845_v18 = vmul.f32 %v6154_v55, %v823_v9 }
 0x30b   : > { %860 = vrot.lane.b32.xlu0 %v844_v15, %s5759_s8  ;;  %862 = vrot.lane.b32.xlu1 %v845_v18, %s5759_s8 }
 0x355   : > { %v853_v20 = vpop.permute.xlu1 %852 }
 0x356   : > { %874 = vst.msk [vmem:[#allocation2] sm:$0xff] %vm441_vm3, %v853_v20 }
 0x359   : > { %v855_v22 = vpop.permute.xlu1 %854 }
 0x35a   : > { %v864_v34 = vsel %vm435_vm4, %v853_v20, %v855_v22 }
 0x35d   : > { %v859_v24 = vpop.permute.xlu1 %858  ;;  %v880_v25 = vld [vmem:[#allocation2] sm:$0xff] }
 0x35e   : > { %877 = vst.msk [vmem:[#allocation2 + $0x18] sm:$0xff] %vm441_vm3, %v859_v24 }
 0x365   : > { %v883_v26 = vld [vmem:[#allocation2 + $0x18] sm:$0xff] }
 0x366   : > { %v4913_v27 = vpack.i.bf16 %v883_v26, %v880_v25  ;;  %v4250_v45 = vpack.c.bf16 %v883_v26, %v880_v25 }
 0x368   : > { %4914 = vrot.lane.b32.xlu1 %v4913_v27, %s5760_s9  ;;  %4909 = vrot.lane.b32.xlu0 %v4913_v27, %s5761_s10 }
 0x36c   : > { %4919 = vrot.lane.b32.xlu0 %v4913_v27, %s5763_s12 }
 0x379   : > { %v857_v28 = vpop.permute.xlu0 %856 }
 0x37a   : > { %v865_v31 = vsel %vm435_vm4, %v855_v22, %v857_v28 }
 0x37b   : > { %876 = vst.msk [vmem:[#allocation2 + $0x10] sm:$0xff] %vm444_vm5, %v865_v31 }
 0x37d   : > { %v861_v32 = vpop.permute.xlu0 %860  ;;  %v863_v33 = vpop.permute.xlu1 %862 }
 0x37e   : > { %v866_v37 = vsel %vm435_vm4, %v859_v24, %v861_v32  ;;  %v867_v39 = vsel %vm435_vm4, %v861_v32, %v863_v33 }
 0x37f   : > { %879 = vst.msk [vmem:[#allocation2 + $0x28] sm:$0xff] %vm444_vm5, %v867_v39  ;;  %v4248_v42 = vpack.c.bf16 %v866_v37, %v864_v34 }
 0x381   : > { %4249 = vmatprep.subr.bf16.mxu0 %v4248_v42 }
 0x382   : > { %v882_v46 = vld [vmem:[#allocation2 + $0x10] sm:$0xff]  ;;  %4251 = vmatpush1.bf16.msra.mxu0 %v4250_v45 }
 0x383   : > { %v4928_v47 = vpack.i.bf16 %v882_v46, %v864_v34 }
 0x385   : > { %4929 = vrot.lane.b32.xlu1 %v4928_v47, %s5760_s9  ;;  %4924 = vrot.lane.b32.xlu0 %v4928_v47, %s5761_s10 }
 0x386   : > { %v885_v48 = vld [vmem:[#allocation2 + $0x28] sm:$0xff] }
 0x387   : > { %v4285_v40 = vpack.c.bf16 %v885_v48, %v882_v46  ;;  %v4943_v54 = vpack.i.bf16 %v885_v48, %v866_v37 }
 0x389   : > { %4939 = vrot.lane.b32.xlu1 %v4928_v47, %s5762_s11  ;;  %4934 = vrot.lane.b32.xlu0 %v4928_v47, %s5763_s12 }
 0x38a   : > { %4286 = vmatpush1.bf16.msra.mxu1 %v4285_v40 }
 0x38b   : > { %4287 = vmatprep.subr.bf16.mxu1 %v5756_v7 }
 0x38d   : > { %4954 = vrot.lane.b32.xlu0 %v4928_v47, %s5764_s13  ;;  %4944 = vrot.lane.b32.xlu1 %v4943_v54, %s5761_s10 }
 0x391   : > { %4959 = vrot.lane.b32.xlu0 %v4943_v54, %s5760_s9  ;;  %4949 = vrot.lane.b32.xlu1 %v4913_v27, %s5762_s11 }
 0x395   : > { %4964 = vrot.lane.b32.xlu0 %v4913_v27, %s5764_s13  ;;  %4969 = vrot.lane.b32.xlu1 %v4943_v54, %s5763_s12 }
 0x399   : > { %4979 = vrot.lane.b32.xlu0 %v4943_v54, %s5762_s11  ;;  %4974 = vrot.lane.b32.xlu1 %v4928_v47, %s5765_s14 }
 0x39d   : > { %4994 = vrot.lane.b32.xlu0 %v4928_v47, %s5766_s15  ;;  %4984 = vrot.lane.b32.xlu1 %v4943_v54, %s5764_s13 }
 0x3a1   : > { %4999 = vrot.lane.b32.xlu0 %v4943_v54, %s5765_s14  ;;  %4989 = vrot.lane.b32.xlu1 %v4913_v27, %s5765_s14 }
 0x3a5   : > { %5004 = vrot.lane.b32.xlu0 %v4913_v27, %s5766_s15  ;;  %5009 = vrot.lane.b32.xlu1 %v4943_v54, %s5766_s15 }
 0x3a9   : > { %5019 = vrot.lane.b32.xlu0 %v4943_v54, %s5767_s19  ;;  %5014 = vrot.lane.b32.xlu1 %v4928_v47, %s5767_s19 }
 0x3ad   : > { %1078 = vperm.xlu0 %4907, %v4058_v60   ;;  %5024 = vrot.lane.b32.xlu1 %v4913_v27, %s5767_s19 }
 0x3b1   : > { %1083 = vperm.xlu1 %4906, %v4059_v61  }
 0x3da   : > { %v4910_v62 = vpop.permute.xlu0 %4909  ;;  %v4915_v63 = vpop.permute.xlu1 %4914 }
 0x3db   : > { %v4911_v35 = vunpack.i.l.bf16 %v4910_v62  ;;  %v4912_v41 = vunpack.i.h.bf16 %v4910_v62  ;;  %v4916_v50 = vunpack.i.l.bf16 %v4915_v63  ;;  %v4917_v58 = vunpack.i.h.bf16 %v4915_v63 }
 0x3de   : > { %v4920_v4 = vpop.permute.xlu0 %4919 }
 0x3df   : > { %v4921_v22 = vunpack.i.l.bf16 %v4920_v4  ;;  %v4922_v28 = vunpack.i.h.bf16 %v4920_v4 }
 0x3f7   : > { %v4925_v10 = vpop.permute.xlu0 %4924  ;;  %v4930_v11 = vpop.permute.xlu1 %4929 }
 0x3f8   : > { %v4926_v16 = vunpack.i.l.bf16 %v4925_v10  ;;  %v4927_v21 = vunpack.i.h.bf16 %v4925_v10  ;;  %v4932_v13 = vunpack.i.h.bf16 %v4930_v11  ;;  %v4931_v17 = vunpack.i.l.bf16 %v4930_v11 }
 0x3fa   : > { %v904_v5 = vsel %vm471_vm7, %v4911_v35, %v4926_v16  ;;  %v905_v30 = vsel %vm471_vm7, %v4926_v16, %v4927_v21  ;;  %v926_v1 = vsel %vm494_vm8, %v4916_v50, %v4931_v17  ;;  %v927_v6 = vsel %vm494_vm8, %v4931_v17, %v4932_v13 }
 0x3fb   : > { %v4935_v12 = vpop.permute.xlu0 %4934  ;;  %v6206_v14 = vpop.permute.xlu1 %4939 }
 0x3fc   : > { %v4936_v2 = vunpack.i.l.bf16 %v4935_v12  ;;  %v4937_v9 = vunpack.i.h.bf16 %v4935_v12  ;;  %v4942_v34 = vunpack.i.h.bf16 %v6206_v14  ;;  %v4941_v37 = vunpack.i.l.bf16 %v6206_v14 }
 0x3fe   : > { %v948_v33 = vsel %vm517_vm9, %v4921_v22, %v4936_v2  ;;  %v949_v46 = vsel %vm517_vm9, %v4936_v2, %v4937_v9  ;;  %v971_v11 = vsel %vm540_vm10, %v4941_v37, %v4942_v34 }
 0x3ff   : > { %v6208_v36 = vpop.permute.xlu0 %4954  ;;  %v4945_v38 = vpop.permute.xlu1 %4944 }
 0x400   : > { %v4947_v44 = vunpack.i.h.bf16 %v4945_v38  ;;  %v4946_v49 = vunpack.i.l.bf16 %v4945_v38  ;;  %v4957_v63 = vunpack.i.h.bf16 %v6208_v36  ;;  %v4956_v4 = vunpack.i.l.bf16 %v6208_v36 }
 0x402   : > { %v4288_v19 = vpack.c.bf16 %v4947_v44, %v4927_v21  ;;  %v906_v23 = vsel %vm471_vm7, %v4912_v41, %v4946_v49  ;;  %v907_v43 = vsel %vm471_vm7, %v4946_v49, %v4947_v44 }
 0x403   : > { %v4960_v51 = vpop.permute.xlu0 %4959  ;;  %v4950_v52 = vpop.permute.xlu1 %4949  ;;  %v4252_v53 = vpack.c.bf16 %v907_v43, %v905_v30  ;;  %v4254_v57 = vpack.c.bf16 %v906_v23, %v904_v5 }
 0x404   : > { %v4962_v59 = vunpack.i.h.bf16 %v4960_v51  ;;  %v4961_v0 = vunpack.i.l.bf16 %v4960_v51  ;;  %4289 = vmatpush1.bf16.msra.mxu1 %v4288_v19  ;;  %v4951_v39 = vunpack.i.l.bf16 %v4950_v52  ;;  %v4952_v60 = vunpack.i.h.bf16 %v4950_v52 }
 0x405   : > { %4253 = vmatprep.subr.bf16.mxu0 %v4252_v53  ;;  %4290 = vmatprep.subr.bf16.mxu1 %v5756_v7  ;;  %v993_v19 = vsel %vm563_vm11, %v4956_v4, %v4957_v63 }
 0x406   : > { %v928_v15 = vsel %vm494_vm8, %v4917_v58, %v4961_v0  ;;  %v4291_v18 = vpack.c.bf16 %v4962_v59, %v4932_v13  ;;  %4255 = vmatpush1.bf16.msra.mxu0 %v4254_v57  ;;  %v929_v20 = vsel %vm494_vm8, %v4961_v0, %v4962_v59  ;;  %v970_v10 = vsel %vm540_vm10, %v4951_v39, %v4941_v37 }
 0x407   : > { %v4965_v24 = vpop.permute.xlu0 %4964  ;;  %v4970_v25 = vpop.permute.xlu1 %4969  ;;  %v4256_v26 = vpack.c.bf16 %v929_v20, %v927_v6  ;;  %v4258_v27 = vpack.c.bf16 %v928_v15, %v926_v1 }
 0x408   : > { %v4972_v31 = vunpack.i.h.bf16 %v4970_v25  ;;  %v4971_v32 = vunpack.i.l.bf16 %v4970_v25  ;;  %4292 = vmatpush1.bf16.msra.mxu1 %v4291_v18  ;;  %v4966_v12 = vunpack.i.l.bf16 %v4965_v24  ;;  %v4967_v49 = vunpack.i.h.bf16 %v4965_v24 }
 0x409   : > { %4257 = vmatprep.subr.bf16.mxu0 %v4256_v26  ;;  %4293 = vmatprep.subr.bf16.mxu1 %v5756_v7 }
 0x40a   : > { %v4294_v42 = vpack.c.bf16 %v4972_v31, %v4937_v9  ;;  %v950_v45 = vsel %vm517_vm9, %v4922_v28, %v4971_v32  ;;  %4259 = vmatpush1.bf16.msra.mxu0 %v4258_v27  ;;  %v951_v47 = vsel %vm517_vm9, %v4971_v32, %v4972_v31  ;;  %v992_v23 = vsel %vm563_vm11, %v4966_v12, %v4956_v4 }
 0x40b   : > { %v4980_v48 = vpop.permute.xlu0 %4979  ;;  %v4975_v40 = vpop.permute.xlu1 %4974  ;;  %v4260_v54 = vpack.c.bf16 %v951_v47, %v949_v46  ;;  %v4262_v56 = vpack.c.bf16 %v950_v45, %v948_v33 }
 0x40c   : > { %v4982_v61 = vunpack.i.h.bf16 %v4980_v48  ;;  %v4981_v62 = vunpack.i.l.bf16 %v4980_v48  ;;  %4295 = vmatpush1.bf16.msra.mxu1 %v4294_v42  ;;  %v4977_v13 = vunpack.i.h.bf16 %v4975_v40  ;;  %v4976_v17 = vunpack.i.l.bf16 %v4975_v40 }
 0x40d   : > { %4261 = vmatprep.subr.bf16.mxu0 %v4260_v54  ;;  %4296 = vmatprep.subr.bf16.mxu1 %v5756_v7 }
 0x40e   : > { %v972_v14 = vsel %vm540_vm10, %v4952_v60, %v4981_v62  ;;  %v4297_v16 = vpack.c.bf16 %v4982_v61, %v4942_v34  ;;  %4263 = vmatpush1.bf16.msra.mxu0 %v4262_v56  ;;  %v973_v21 = vsel %vm540_vm10, %v4981_v62, %v4982_v61  ;;  %v1015_v9 = vsel %vm586_vm12, %v4976_v17, %v4977_v13 }
 0x40f   : > { %v4995_v35 = vpop.permute.xlu0 %4994  ;;  %v4985_v38 = vpop.permute.xlu1 %4984  ;;  %v4264_v41 = vpack.c.bf16 %v973_v21, %v971_v11  ;;  %v4266_v44 = vpack.c.bf16 %v972_v14, %v970_v10  ;;  %v4057_v21 = vld [vmem:[%s7246_s1 + $0x38] sm:$0xff] }
 0x410   : > { %v4987_v36 = vunpack.i.h.bf16 %v4985_v38  ;;  %v4986_v5 = vunpack.i.l.bf16 %v4985_v38  ;;  %4298 = vmatpush1.bf16.msra.mxu1 %v4297_v16  ;;  %v4997_v2 = vunpack.i.h.bf16 %v4995_v35  ;;  %v4996_v6 = vunpack.i.l.bf16 %v4995_v35  ;;  %v4054_v16 = vld [vmem:[%s7246_s1 + $0x20] sm:$0xff] }
 0x411   : > { %4265 = vmatprep.subr.bf16.mxu0 %v4264_v41  ;;  %4299 = vmatprep.subr.bf16.mxu1 %v5756_v7 }
 0x412   : > { %v4300_v30 = vpack.c.bf16 %v4987_v36, %v4957_v63  ;;  %v994_v43 = vsel %vm563_vm11, %v4967_v49, %v4986_v5  ;;  %4267 = vmatpush1.bf16.msra.mxu0 %v4266_v44  ;;  %v995_v50 = vsel %vm563_vm11, %v4986_v5, %v4987_v36  ;;  %v1037_v34 = vsel %vm609_vm13, %v4996_v6, %v4997_v2  ;;  %v4056_v44 = vld [vmem:[%s7246_s1 + $0x30] sm:$0xff] }
 0x413   : > { %v5000_v51 = vpop.permute.xlu0 %4999  ;;  %v4990_v52 = vpop.permute.xlu1 %4989  ;;  %v4268_v53 = vpack.c.bf16 %v995_v50, %v993_v19  ;;  %v4270_v57 = vpack.c.bf16 %v994_v43, %v992_v23 }
 0x414   : > { %v5002_v58 = vunpack.i.h.bf16 %v5000_v51  ;;  %v5001_v59 = vunpack.i.l.bf16 %v5000_v51  ;;  %v4992_v0 = vunpack.i.h.bf16 %v4990_v52  ;;  %v4991_v1 = vunpack.i.l.bf16 %v4990_v52  ;;  %4301 = vmatpush1.bf16.msra.mxu1 %v4300_v30 }
 0x415   : > { %4269 = vmatprep.subr.bf16.mxu0 %v4268_v53  ;;  %4302 = vmatprep.subr.bf16.mxu1 %v5756_v7 }
 0x416   : > { %v4303_v15 = vpack.c.bf16 %v5002_v58, %v4977_v13  ;;  %v1016_v18 = vsel %vm586_vm12, %v4992_v0, %v5001_v59  ;;  %v1014_v20 = vsel %vm586_vm12, %v4991_v1, %v4976_v17  ;;  %4271 = vmatpush1.bf16.msra.mxu0 %v4270_v57  ;;  %v1017_v22 = vsel %vm586_vm12, %v5001_v59, %v5002_v58 }
 0x417   : > { %v5005_v24 = vpop.permute.xlu0 %5004  ;;  %v5010_v25 = vpop.permute.xlu1 %5009  ;;  %v4272_v26 = vpack.c.bf16 %v1017_v22, %v1015_v9  ;;  %v4274_v27 = vpack.c.bf16 %v1016_v18, %v1014_v20 }
 0x418   : > { %v5007_v28 = vunpack.i.h.bf16 %v5005_v24  ;;  %v5006_v31 = vunpack.i.l.bf16 %v5005_v24  ;;  %v5012_v32 = vunpack.i.h.bf16 %v5010_v25  ;;  %v5011_v33 = vunpack.i.l.bf16 %v5010_v25  ;;  %4304 = vmatpush1.bf16.msra.mxu1 %v4303_v15 }
 0x419   : > { %4273 = vmatprep.subr.bf16.mxu0 %v4272_v26  ;;  %4305 = vmatprep.subr.bf16.mxu1 %v5756_v7 }
 0x41a   : > { %v1036_v37 = vsel %vm609_vm13, %v5006_v31, %v4996_v6  ;;  %v4306_v39 = vpack.c.bf16 %v5012_v32, %v4997_v2  ;;  %v1038_v42 = vsel %vm609_vm13, %v5007_v28, %v5011_v33  ;;  %4275 = vmatpush1.bf16.msra.mxu0 %v4274_v27  ;;  %v1039_v45 = vsel %vm609_vm13, %v5011_v33, %v5012_v32 }
 0x41b   : > { %v5020_v46 = vpop.permute.xlu0 %5019  ;;  %v5015_v47 = vpop.permute.xlu1 %5014  ;;  %v4276_v48 = vpack.c.bf16 %v1039_v45, %v1037_v34  ;;  %v4278_v40 = vpack.c.bf16 %v1038_v42, %v1036_v37 }
 0x41c   : > { %v5022_v54 = vunpack.i.h.bf16 %v5020_v46  ;;  %v5021_v56 = vunpack.i.l.bf16 %v5020_v46  ;;  %v5017_v60 = vunpack.i.h.bf16 %v5015_v47  ;;  %v5016_v61 = vunpack.i.l.bf16 %v5015_v47  ;;  %4307 = vmatpush1.bf16.msra.mxu1 %v4306_v39 }
 0x41d   : > { %4277 = vmatprep.subr.bf16.mxu0 %v4276_v48  ;;  %4308 = vmatprep.subr.bf16.mxu1 %v5756_v7 }
 0x41e   : > { %v4309_v62 = vpack.c.bf16 %v5022_v54, %v5017_v60  ;;  %4279 = vmatpush1.bf16.msra.mxu0 %v4278_v40  ;;  %v1059_v63 = vsel %vm632_vm14, %v5016_v61, %v5017_v60  ;;  %v1061_v4 = vsel %vm632_vm14, %v5021_v56, %v5022_v54 }
 0x41f   : > { %v5025_v10 = vpop.permute.xlu1 %5024  ;;  %v4280_v11 = vpack.c.bf16 %v1061_v4, %v1059_v63  ;;  %v4065_v4 = vld [vmem:[%s7246_s1 + $0x48] sm:$0xff] }
 0x420   : > { %v5027_v12 = vunpack.i.h.bf16 %v5025_v10  ;;  %v5026_v14 = vunpack.i.l.bf16 %v5025_v10  ;;  %4310 = vmatpush1.bf16.msra.mxu1 %v4309_v62  ;;  %v4068_v10 = vld [vmem:[%s7247_s2 + $0x20] sm:$0xff] }
 0x421   : > { %4281 = vmatprep.subr.bf16.mxu0 %v4280_v11  ;;  %4347 = vmatprep.subr.bf16.mxu1 %v5756_v7  ;;  %v4069_v11 = vld [vmem:[%s7247_s2 + $0x28] sm:$0xff] }
 0x422   : > { %v1060_v35 = vsel %vm632_vm14, %v5027_v12, %v5021_v56  ;;  %v1058_v38 = vsel %vm632_vm14, %v5026_v14, %v5016_v61 }
 0x423   : > { %1234 = vmatmul.mubr.f32.vlgmr.msra.gmra.mrb[10].mxu1 %v4054_v16  ;;  %v4282_v41 = vpack.c.bf16 %v1060_v35, %v1058_v38 }
 0x424   : > { %4063 = vmatprep.mubr.msk.f32.mxu1 %vm659_vm6, %v4057_v21 }
 0x425   : > { %4283 = vmatpush1.bf16.msra.mxu0 %v4282_v41 }
 0x427   : > { %1239 = vmatmul.mubr.f32.gmra.mrb[12].mxu1 %v4056_v44 }
 0x428   : > { %1157 = vmatmul.mubr.f32.vlgmr.msra.gmra.mrb[2].mxu0 %v4054_v16  ;;  %4072 = vmatprep.mubr.msk.f32.mxu1 %vm659_vm6, %v4065_v4 }
 0x429   : > { %4061 = vmatprep.mubr.msk.f32.mxu0 %vm659_vm6, %v4057_v21 }
 0x42c   : > { %1163 = vmatmul.mubr.f32.gmra.mrb[4].mxu0 %v4056_v44  ;;  %v1079_v49 = vpop.permute.xlu0 %1078 }
 0x42d   : > { %4070 = vmatprep.mubr.msk.f32.mxu0 %vm659_vm6, %v4065_v4 }
 0x430   : > { %v1084_v57 = vpop.permute.xlu1 %1083 }
 0x4f6   : > { %v1235_v36 = vpop.f32.mrb[10].mxu1 }
 0x4f7   : > { %v1236_v5 = vadd.f32 %v1235_v36, %v1079_v49  ;;  %v1237_v13 = vpop.f32.mrb[11].mxu1 }
 0x4f9   : > { %v1246_v17 = vmax.f32 %v1236_v5, 0.0 }
 0x4fa   : > { %v1240_v19 = vpop.f32.mrb[12].mxu1 }
 0x4fb   : > { %v1252_v23 = vmul.f32 %v1246_v17, %v6154_v55  ;;  %v1158_v30 = vpop.f32.mrb[2].mxu0  ;;  %v1242_v43 = vpop.f32.mrb[13].mxu1  ;;  %v1241_v6 = vadd.f32 %v1240_v19, %v1084_v57 }
 0x4fc   : > { %v1159_v50 = vadd.f32 %v1158_v30, %v1079_v49  ;;  %v1160_v51 = vpop.f32.mrb[3].mxu0 }
 0x4fd   : > { %v1161_v52 = vadd.f32 %v1160_v51, %v1079_v49  ;;  %1266 = vrot.lane.b32.xlu0 %v1252_v23, %s5759_s8  ;;  %v1249_v24 = vmax.f32 %v1241_v6, 0.0 }
 0x4fe   : > { %v1244_v53 = vmax.f32 %v1159_v50, 0.0 }
 0x4ff   : > { %v1245_v58 = vmax.f32 %v1161_v52, 0.0  ;;  %v1164_v59 = vpop.f32.mrb[4].mxu0  ;;  %v1255_v26 = vmul.f32 %v1249_v24, %v6154_v55 }
 0x500   : > { %v1250_v0 = vmul.f32 %v1244_v53, %v6144_v29  ;;  %v1165_v1 = vadd.f32 %v1164_v59, %v1084_v57  ;;  %v1166_v2 = vpop.f32.mrb[5].mxu0 }
 0x501   : > { %v1251_v9 = vmul.f32 %v1245_v58, %v6147_v3  ;;  %v1167_v15 = vadd.f32 %v1166_v2, %v1084_v57 }
 0x502   : > { %v1247_v18 = vmax.f32 %v1165_v1, 0.0  ;;  %1262 = vrot.lane.b32.xlu0 %v1250_v0, %s5759_s8 }
 0x503   : > { %v1248_v20 = vmax.f32 %v1167_v15, 0.0  ;;  %1264 = vrot.lane.b32.xlu1 %v1251_v9, %s5759_s8 }
 0x504   : > { %v1253_v22 = vmul.f32 %v1247_v18, %v6144_v29 }
 0x505   : > { %v1254_v25 = vmul.f32 %v1248_v20, %v6147_v3 }
 0x507   : > { %1268 = vrot.lane.b32.xlu1 %v1253_v22, %s5759_s8  ;;  %1270 = vrot.lane.b32.xlu0 %v1254_v25, %s5759_s8 }
 0x50b   : > { %1272 = vrot.lane.b32.xlu1 %v1255_v26, %s5759_s8 }
 0x56f   : > { %v1267_v27 = vpop.permute.xlu0 %1266 }
 0x574   : > { %v1263_v28 = vpop.permute.xlu0 %1262 }
 0x575   : > { %1284 = vst.msk [vmem:[#allocation2] sm:$0xff] %vm441_vm3, %v1263_v28  ;;  %v1265_v31 = vpop.permute.xlu1 %1264 }
 0x576   : > { %v1275_v32 = vsel %vm435_vm4, %v1265_v31, %v1267_v27  ;;  %v1274_v37 = vsel %vm435_vm4, %v1263_v28, %v1265_v31 }
 0x577   : > { %1286 = vst.msk [vmem:[#allocation2 + $0x10] sm:$0xff] %vm444_vm5, %v1275_v32 }
 0x579   : > { %v1269_v33 = vpop.permute.xlu1 %1268  ;;  %v1271_v34 = vpop.permute.xlu0 %1270 }
 0x57a   : > { %1287 = vst.msk [vmem:[#allocation2 + $0x18] sm:$0xff] %vm441_vm3, %v1269_v33  ;;  %v1276_v39 = vsel %vm435_vm4, %v1269_v33, %v1271_v34 }
 0x57b   : > { %v4311_v42 = vpack.c.bf16 %v1276_v39, %v1274_v37 }
 0x57c   : > { %v1290_v40 = vld [vmem:[#allocation2] sm:$0xff] }
 0x57d   : > { %v1273_v45 = vpop.permute.xlu1 %1272  ;;  %4312 = vmatprep.subr.bf16.mxu0 %v4311_v42 }
 0x57e   : > { %v1277_v46 = vsel %vm435_vm4, %v1271_v34, %v1273_v45  ;;  %v1292_v47 = vld [vmem:[#allocation2 + $0x10] sm:$0xff] }
 0x57f   : > { %1289 = vst.msk [vmem:[#allocation2 + $0x28] sm:$0xff] %vm444_vm5, %v1277_v46  ;;  %v5033_v48 = vpack.i.bf16 %v1292_v47, %v1274_v37 }
 0x581   : > { %5034 = vrot.lane.b32.xlu1 %v5033_v48, %s5760_s9  ;;  %5029 = vrot.lane.b32.xlu0 %v5033_v48, %s5761_s10  ;;  %v1293_v54 = vld [vmem:[#allocation2 + $0x18] sm:$0xff] }
 0x582   : > { %v4313_v56 = vpack.c.bf16 %v1293_v54, %v1290_v40  ;;  %v5053_v61 = vpack.i.bf16 %v1293_v54, %v1290_v40 }
 0x584   : > { %4314 = vmatpush1.bf16.msra.mxu0 %v4313_v56 }
 0x585   : > { %5044 = vrot.lane.b32.xlu1 %v5033_v48, %s5762_s11  ;;  %5039 = vrot.lane.b32.xlu0 %v5033_v48, %s5763_s12 }
 0x586   : > { %v1295_v60 = vld [vmem:[#allocation2 + $0x28] sm:$0xff] }
 0x587   : > { %v4348_v62 = vpack.c.bf16 %v1295_v60, %v1292_v47  ;;  %v5063_v63 = vpack.i.bf16 %v1295_v60, %v1276_v39 }
 0x589   : > { %5054 = vrot.lane.b32.xlu1 %v5053_v61, %s5760_s9  ;;  %5049 = vrot.lane.b32.xlu0 %v5053_v61, %s5761_s10 }
 0x58a   : > { %4349 = vmatpush1.bf16.msra.mxu1 %v4348_v62 }
 0x58b   : > { %4350 = vmatprep.subr.bf16.mxu1 %v5756_v7 }
 0x58d   : > { %5059 = vrot.lane.b32.xlu0 %v5053_v61, %s5763_s12  ;;  %5064 = vrot.lane.b32.xlu1 %v5063_v63, %s5761_s10 }
 0x591   : > { %5074 = vrot.lane.b32.xlu0 %v5033_v48, %s5764_s13  ;;  %5069 = vrot.lane.b32.xlu1 %v5053_v61, %s5762_s11 }
 0x595   : > { %5079 = vrot.lane.b32.xlu0 %v5063_v63, %s5760_s9  ;;  %5089 = vrot.lane.b32.xlu1 %v5063_v63, %s5763_s12 }
 0x599   : > { %5084 = vrot.lane.b32.xlu0 %v5053_v61, %s5764_s13  ;;  %5094 = vrot.lane.b32.xlu1 %v5033_v48, %s5765_s14 }
 0x59d   : > { %5099 = vrot.lane.b32.xlu0 %v5063_v63, %s5762_s11  ;;  %5104 = vrot.lane.b32.xlu1 %v5063_v63, %s5764_s13 }
 0x5a1   : > { %5114 = vrot.lane.b32.xlu0 %v5033_v48, %s5766_s15  ;;  %5109 = vrot.lane.b32.xlu1 %v5053_v61, %s5765_s14 }
 0x5a5   : > { %5119 = vrot.lane.b32.xlu0 %v5063_v63, %s5765_s14  ;;  %5129 = vrot.lane.b32.xlu1 %v5063_v63, %s5766_s15 }
 0x5a9   : > { %5124 = vrot.lane.b32.xlu0 %v5053_v61, %s5766_s15  ;;  %5134 = vrot.lane.b32.xlu1 %v5033_v48, %s5767_s19 }
 0x5ad   : > { %5139 = vrot.lane.b32.xlu0 %v5063_v63, %s5767_s19  ;;  %5144 = vrot.lane.b32.xlu1 %v5053_v61, %s5767_s19 }
 0x5b1   : > { %1488 = vperm.xlu0 %4907, %v4068_v10   ;;  %1493 = vperm.xlu1 %4906, %v4069_v11  }
 0x5f3   : > { %v5035_v12 = vpop.permute.xlu1 %5034  ;;  %v5030_v14 = vpop.permute.xlu0 %5029 }
 0x5f4   : > { %v5032_v41 = vunpack.i.h.bf16 %v5030_v14  ;;  %v5031_v44 = vunpack.i.l.bf16 %v5030_v14  ;;  %v5037_v59 = vunpack.i.h.bf16 %v5035_v12  ;;  %v5036_v0 = vunpack.i.l.bf16 %v5035_v12 }
 0x5f6   : > { %v1315_v23 = vsel %vm471_vm7, %v5031_v44, %v5032_v41  ;;  %v1337_v34 = vsel %vm494_vm8, %v5036_v0, %v5037_v59 }
 0x5f7   : > { %v6321_v16 = vpop.permute.xlu1 %5044  ;;  %v6323_v21 = vpop.permute.xlu0 %5039 }
 0x5f8   : > { %v5042_v24 = vunpack.i.h.bf16 %v6323_v21  ;;  %v5041_v25 = vunpack.i.l.bf16 %v6323_v21  ;;  %v5047_v47 = vunpack.i.h.bf16 %v6321_v16  ;;  %v5046_v48 = vunpack.i.l.bf16 %v6321_v16 }
 0x5fa   : > { %v1359_v54 = vsel %vm517_vm9, %v5041_v25, %v5042_v24 }
 0x5fb   : > { %v5055_v35 = vpop.permute.xlu1 %5054  ;;  %v5050_v38 = vpop.permute.xlu0 %5049 }
 0x5fc   : > { %v5051_v49 = vunpack.i.l.bf16 %v5050_v38  ;;  %v5052_v13 = vunpack.i.h.bf16 %v5050_v38  ;;  %v5057_v1 = vunpack.i.h.bf16 %v5055_v35  ;;  %v5056_v2 = vunpack.i.l.bf16 %v5055_v35 }
 0x5fe   : > { %v1314_v30 = vsel %vm471_vm7, %v5051_v49, %v5031_v44  ;;  %v1336_v28 = vsel %vm494_vm8, %v5056_v2, %v5036_v0 }
 0x5ff   : > { %v5065_v36 = vpop.permute.xlu1 %5064  ;;  %v5060_v5 = vpop.permute.xlu0 %5059 }
 0x600   : > { %v5067_v17 = vunpack.i.h.bf16 %v5065_v36  ;;  %v5066_v19 = vunpack.i.l.bf16 %v5065_v36  ;;  %v5062_v42 = vunpack.i.h.bf16 %v5060_v5  ;;  %v5061_v45 = vunpack.i.l.bf16 %v5060_v5 }
 0x602   : > { %v1316_v43 = vsel %vm471_vm7, %v5052_v13, %v5066_v19  ;;  %v4351_v50 = vpack.c.bf16 %v5067_v17, %v5032_v41  ;;  %v1317_v51 = vsel %vm471_vm7, %v5066_v19, %v5067_v17  ;;  %v1358_v21 = vsel %vm517_vm9, %v5061_v45, %v5041_v25 }
 0x603   : > { %v5070_v52 = vpop.permute.xlu1 %5069  ;;  %v6329_v53 = vpop.permute.xlu0 %5074  ;;  %v4315_v57 = vpack.c.bf16 %v1317_v51, %v1315_v23  ;;  %v4317_v58 = vpack.c.bf16 %v1316_v43, %v1314_v30  ;;  %v1381_v23 = vsel %vm540_vm10, %v5046_v48, %v5047_v47 }
 0x604   : > { %4352 = vmatpush1.bf16.msra.mxu1 %v4351_v50  ;;  %v5072_v56 = vunpack.i.h.bf16 %v5070_v52  ;;  %v5071_v60 = vunpack.i.l.bf16 %v5070_v52  ;;  %v5077_v16 = vunpack.i.h.bf16 %v6329_v53  ;;  %v5076_v35 = vunpack.i.l.bf16 %v6329_v53 }
 0x605   : > { %4316 = vmatprep.subr.bf16.mxu0 %v4315_v57  ;;  %4353 = vmatprep.subr.bf16.mxu1 %v5756_v7 }
 0x606   : > { %4318 = vmatpush1.bf16.msra.mxu0 %v4317_v58  ;;  %v1380_v49 = vsel %vm540_vm10, %v5071_v60, %v5046_v48  ;;  %v1403_v58 = vsel %vm563_vm11, %v5076_v35, %v5077_v16 }
 0x607   : > { %v5090_v6 = vpop.permute.xlu1 %5089  ;;  %v5080_v9 = vpop.permute.xlu0 %5079 }
 0x608   : > { %v5092_v15 = vunpack.i.h.bf16 %v5090_v6  ;;  %v5091_v18 = vunpack.i.l.bf16 %v5090_v6  ;;  %v5082_v20 = vunpack.i.h.bf16 %v5080_v9  ;;  %v5081_v22 = vunpack.i.l.bf16 %v5080_v9 }
 0x60a   : > { %v4354_v26 = vpack.c.bf16 %v5082_v20, %v5037_v59  ;;  %v1338_v27 = vsel %vm494_vm8, %v5057_v1, %v5081_v22  ;;  %v1339_v33 = vsel %vm494_vm8, %v5081_v22, %v5082_v20  ;;  %v1361_v39 = vsel %vm517_vm9, %v5091_v18, %v5092_v15 }
 0x60b   : > { %v6336_v31 = vpop.permute.xlu1 %5094  ;;  %v5085_v32 = vpop.permute.xlu0 %5084  ;;  %v4321_v37 = vpack.c.bf16 %v1338_v27, %v1336_v28  ;;  %v4319_v46 = vpack.c.bf16 %v1339_v33, %v1337_v34  ;;  %v4357_v40 = vpack.c.bf16 %v5092_v15, %v5042_v24  ;;  %v1360_v61 = vsel %vm517_vm9, %v5062_v42, %v5091_v18 }
 0x60c   : > { %4355 = vmatpush1.bf16.msra.mxu1 %v4354_v26  ;;  %v4323_v4 = vpack.c.bf16 %v1361_v39, %v1359_v54  ;;  %v4325_v44 = vpack.c.bf16 %v1360_v61, %v1358_v21  ;;  %v5086_v36 = vunpack.i.l.bf16 %v5085_v32  ;;  %v5087_v19 = vunpack.i.h.bf16 %v5085_v32 }
 0x60d   : > { %4356 = vmatprep.subr.bf16.mxu1 %v5756_v7  ;;  %4320 = vmatprep.subr.bf16.mxu0 %v4319_v46  ;;  %v5097_v50 = vunpack.i.h.bf16 %v6336_v31  ;;  %v5096_v51 = vunpack.i.l.bf16 %v6336_v31 }
 0x60e   : > { %4322 = vmatpush1.bf16.msra.mxu0 %v4321_v37  ;;  %v1402_v59 = vsel %vm563_vm11, %v5086_v36, %v5076_v35 }
 0x60f   : > { %v5105_v62 = vpop.permute.xlu1 %5104  ;;  %v5100_v63 = vpop.permute.xlu0 %5099  ;;  %4324 = vmatprep.subr.bf16.mxu0 %v4323_v4  ;;  %v1425_v26 = vsel %vm586_vm12, %v5096_v51, %v5097_v50 }
 0x610   : > { %v5107_v10 = vunpack.i.h.bf16 %v5105_v62  ;;  %v5106_v11 = vunpack.i.l.bf16 %v5105_v62  ;;  %v5102_v12 = vunpack.i.h.bf16 %v5100_v63  ;;  %v5101_v14 = vunpack.i.l.bf16 %v5100_v63  ;;  %4358 = vmatpush1.bf16.msra.mxu1 %v4357_v40 }
 0x611   : > { %4359 = vmatprep.subr.bf16.mxu1 %v5756_v7 }
 0x612   : > { %v4360_v38 = vpack.c.bf16 %v5102_v12, %v5047_v47  ;;  %v1382_v41 = vsel %vm540_vm10, %v5072_v56, %v5101_v14  ;;  %v1383_v17 = vsel %vm540_vm10, %v5101_v14, %v5102_v12  ;;  %4326 = vmatpush1.bf16.msra.mxu0 %v4325_v44  ;;  %v1405_v43 = vsel %vm563_vm11, %v5106_v11, %v5107_v10 }
 0x613   : > { %v5110_v5 = vpop.permute.xlu1 %5109  ;;  %v5115_v13 = vpop.permute.xlu0 %5114  ;;  %v4329_v30 = vpack.c.bf16 %v1382_v41, %v1380_v49  ;;  %v4327_v52 = vpack.c.bf16 %v1383_v17, %v1381_v23  ;;  %v1404_v53 = vsel %vm563_vm11, %v5087_v19, %v5106_v11  ;;  %v4363_v57 = vpack.c.bf16 %v5107_v10, %v5077_v16  ;;  %v4066_v17 = vld [vmem:[%s7246_s1 + $0x50] sm:$0xff] }
 0x614   : > { %4361 = vmatpush1.bf16.msra.mxu1 %v4360_v38  ;;  %v5112_v0 = vunpack.i.h.bf16 %v5110_v5  ;;  %v5111_v1 = vunpack.i.l.bf16 %v5110_v5  ;;  %v4331_v9 = vpack.c.bf16 %v1405_v43, %v1403_v58  ;;  %v5117_v24 = vunpack.i.h.bf16 %v5115_v13  ;;  %v4064_v5 = vld [vmem:[%s7246_s1 + $0x40] sm:$0xff] }
 0x615   : > { %4362 = vmatprep.subr.bf16.mxu1 %v5756_v7  ;;  %4328 = vmatprep.subr.bf16.mxu0 %v4327_v52  ;;  %v4333_v25 = vpack.c.bf16 %v1404_v53, %v1402_v59  ;;  %v5116_v27 = vunpack.i.l.bf16 %v5115_v13  ;;  %v4067_v13 = vld [vmem:[%s7246_s1 + $0x58] sm:$0xff] }
 0x616   : > { %4330 = vmatpush1.bf16.msra.mxu0 %v4329_v30  ;;  %v1424_v33 = vsel %vm586_vm12, %v5111_v1, %v5096_v51 }
 0x617   : > { %v5130_v2 = vpop.permute.xlu1 %5129  ;;  %v5120_v6 = vpop.permute.xlu0 %5119  ;;  %4332 = vmatprep.subr.bf16.mxu0 %v4331_v9  ;;  %v1447_v61 = vsel %vm609_vm13, %v5116_v27, %v5117_v24 }
 0x618   : > { %v5132_v15 = vunpack.i.h.bf16 %v5130_v2  ;;  %v5131_v18 = vunpack.i.l.bf16 %v5130_v2  ;;  %v5122_v20 = vunpack.i.h.bf16 %v5120_v6  ;;  %v5121_v22 = vunpack.i.l.bf16 %v5120_v6  ;;  %4364 = vmatpush1.bf16.msra.mxu1 %v4363_v57 }
 0x619   : > { %4365 = vmatprep.subr.bf16.mxu1 %v5756_v7 }
 0x61a   : > { %v4366_v28 = vpack.c.bf16 %v5122_v20, %v5097_v50  ;;  %v1426_v31 = vsel %vm586_vm12, %v5112_v0, %v5121_v22  ;;  %v1427_v32 = vsel %vm586_vm12, %v5121_v22, %v5122_v20  ;;  %4334 = vmatpush1.bf16.msra.mxu0 %v4333_v25  ;;  %v1449_v47 = vsel %vm609_vm13, %v5131_v18, %v5132_v15 }
 0x61b   : > { %v5135_v34 = vpop.permute.xlu1 %5134  ;;  %v5125_v37 = vpop.permute.xlu0 %5124  ;;  %v4335_v39 = vpack.c.bf16 %v1427_v32, %v1425_v26  ;;  %v4337_v46 = vpack.c.bf16 %v1426_v31, %v1424_v33  ;;  %v4369_v54 = vpack.c.bf16 %v5132_v15, %v5117_v24  ;;  %v4339_v4 = vpack.c.bf16 %v1449_v47, %v1447_v61 }
 0x61c   : > { %v5127_v42 = vunpack.i.h.bf16 %v5125_v37  ;;  %v5126_v45 = vunpack.i.l.bf16 %v5125_v37  ;;  %4367 = vmatpush1.bf16.msra.mxu1 %v4366_v28  ;;  %v5137_v48 = vunpack.i.h.bf16 %v5135_v34  ;;  %v5136_v40 = vunpack.i.l.bf16 %v5135_v34 }
 0x61d   : > { %4336 = vmatprep.subr.bf16.mxu0 %v4335_v39  ;;  %4368 = vmatprep.subr.bf16.mxu1 %v5756_v7 }
 0x61e   : > { %v1448_v56 = vsel %vm609_vm13, %v5127_v42, %v5131_v18  ;;  %v1446_v60 = vsel %vm609_vm13, %v5126_v45, %v5116_v27  ;;  %4338 = vmatpush1.bf16.msra.mxu0 %v4337_v46  ;;  %v1469_v16 = vsel %vm632_vm14, %v5136_v40, %v5137_v48 }
 0x61f   : > { %v5145_v62 = vpop.permute.xlu1 %5144  ;;  %v5140_v63 = vpop.permute.xlu0 %5139  ;;  %v4341_v10 = vpack.c.bf16 %v1448_v56, %v1446_v60  ;;  %4340 = vmatprep.subr.bf16.mxu0 %v4339_v4 }
 0x620   : > { %v5147_v11 = vunpack.i.h.bf16 %v5145_v62  ;;  %v5146_v12 = vunpack.i.l.bf16 %v5145_v62  ;;  %v5142_v14 = vunpack.i.h.bf16 %v5140_v63  ;;  %v5141_v21 = vunpack.i.l.bf16 %v5140_v63  ;;  %4370 = vmatpush1.bf16.msra.mxu1 %v4369_v54 }
 0x621   : > { %4371 = vmatprep.subr.bf16.mxu1 %v5756_v7 }
 0x622   : > { %v1468_v35 = vsel %vm632_vm14, %v5146_v12, %v5136_v40  ;;  %v4372_v38 = vpack.c.bf16 %v5142_v14, %v5137_v48  ;;  %v1470_v41 = vsel %vm632_vm14, %v5147_v11, %v5141_v21  ;;  %v1471_v44 = vsel %vm632_vm14, %v5141_v21, %v5142_v14  ;;  %4342 = vmatpush1.bf16.msra.mxu0 %v4341_v10  ;;  %v4075_v21 = vld [vmem:[%s7246_s1 + $0x68] sm:$0xff] }
 0x623   : > { %v4343_v49 = vpack.c.bf16 %v1471_v44, %v1469_v16  ;;  %v4345_v36 = vpack.c.bf16 %v1470_v41, %v1468_v35  ;;  %v4079_v16 = vld [vmem:[%s7247_s2 + $0x38] sm:$0xff]  ;;  %v4078_v35 = vld [vmem:[%s7247_s2 + $0x30] sm:$0xff] }
 0x624   : > { %4373 = vmatpush1.bf16.msra.mxu1 %v4372_v38 }
 0x625   : > { %4344 = vmatprep.subr.bf16.mxu0 %v4343_v49  ;;  %4410 = vmatprep.subr.bf16.mxu1 %v5756_v7 }
 0x626   : > { %4346 = vmatpush1.bf16.msra.mxu0 %v4345_v36 }
 0x627   : > { %1644 = vmatmul.mubr.f32.vlgmr.msra.gmra.mrb[14].mxu1 %v4064_v5 }
 0x628   : > { %4073 = vmatprep.mubr.msk.f32.mxu1 %vm659_vm6, %v4067_v13 }
 0x629   : > { %1567 = vmatmul.mubr.f32.vlgmr.msra.gmra.mrb[6].mxu0 %v4064_v5 }
 0x62a   : > { %4071 = vmatprep.mubr.msk.f32.mxu0 %vm659_vm6, %v4067_v13 }
 0x62b   : > { %1649 = vmatmul.mubr.f32.gmra.mrb[16].mxu1 %v4066_v17 }
 0x62c   : > { %4082 = vmatprep.mubr.msk.f32.mxu1 %vm659_vm6, %v4075_v21 }
 0x62d   : > { %1573 = vmatmul.mubr.f32.gmra.mrb[8].mxu0 %v4066_v17 }
 0x62e   : > { %4080 = vmatprep.mubr.msk.f32.mxu0 %vm659_vm6, %v4075_v21 }
 0x630   : > { %v1489_v19 = vpop.permute.xlu0 %1488  ;;  %v1494_v2 = vpop.permute.xlu1 %1493 }
 0x6fa   : > { %v1645_v23 = vpop.f32.mrb[14].mxu1 }
 0x6fb   : > { %v1646_v30 = vadd.f32 %v1645_v23, %v1489_v19  ;;  %v1647_v43 = vpop.f32.mrb[15].mxu1 }
 0x6fc   : > { %v1568_v51 = vpop.f32.mrb[6].mxu0 }
 0x6fd   : > { %v1656_v50 = vmax.f32 %v1646_v30, 0.0  ;;  %v1569_v57 = vadd.f32 %v1568_v51, %v1489_v19  ;;  %v1570_v58 = vpop.f32.mrb[7].mxu0 }
 0x6fe   : > { %v1650_v52 = vpop.f32.mrb[16].mxu1  ;;  %v1571_v0 = vadd.f32 %v1570_v58, %v1489_v19 }
 0x6ff   : > { %v1662_v53 = vmul.f32 %v1656_v50, %v6154_v55  ;;  %v1652_v59 = vpop.f32.mrb[17].mxu1  ;;  %v1654_v1 = vmax.f32 %v1569_v57, 0.0  ;;  %v1651_v24 = vadd.f32 %v1650_v52, %v1494_v2 }
 0x700   : > { %v1655_v6 = vmax.f32 %v1571_v0, 0.0  ;;  %v1574_v9 = vpop.f32.mrb[8].mxu0 }
 0x701   : > { %1676 = vrot.lane.b32.xlu0 %v1662_v53, %s5759_s8  ;;  %v1660_v15 = vmul.f32 %v1654_v1, %v6144_v29  ;;  %v1575_v18 = vadd.f32 %v1574_v9, %v1494_v2  ;;  %v1576_v20 = vpop.f32.mrb[9].mxu0  ;;  %v1659_v31 = vmax.f32 %v1651_v24, 0.0 }
 0x702   : > { %v1661_v22 = vmul.f32 %v1655_v6, %v6147_v3  ;;  %v1577_v25 = vadd.f32 %v1576_v20, %v1494_v2 }
 0x703   : > { %v1657_v26 = vmax.f32 %v1575_v18, 0.0  ;;  %v1665_v33 = vmul.f32 %v1659_v31, %v6154_v55 }
 0x704   : > { %v1658_v27 = vmax.f32 %v1577_v25, 0.0  ;;  %1674 = vrot.lane.b32.xlu1 %v1661_v22, %s5759_s8 }
 0x705   : > { %1672 = vrot.lane.b32.xlu0 %v1660_v15, %s5759_s8  ;;  %v1663_v28 = vmul.f32 %v1657_v26, %v6144_v29 }
 0x706   : > { %v1664_v32 = vmul.f32 %v1658_v27, %v6147_v3 }
 0x708   : > { %1678 = vrot.lane.b32.xlu1 %v1663_v28, %s5759_s8 }
 0x709   : > { %1680 = vrot.lane.b32.xlu0 %v1664_v32, %s5759_s8 }
 0x70c   : > { %1682 = vrot.lane.b32.xlu1 %v1665_v33, %s5759_s8 }
 0x773   : > { %v1677_v34 = vpop.permute.xlu0 %1676 }
 0x776   : > { %v1675_v39 = vpop.permute.xlu1 %1674 }
 0x777   : > { %v1673_v37 = vpop.permute.xlu0 %1672  ;;  %v1685_v42 = vsel %vm435_vm4, %v1675_v39, %v1677_v34 }
 0x778   : > { %1694 = vst.msk [vmem:[#allocation2] sm:$0xff] %vm441_vm3, %v1673_v37  ;;  %v1684_v47 = vsel %vm435_vm4, %v1673_v37, %v1675_v39 }
 0x779   : > { %1696 = vst.msk [vmem:[#allocation2 + $0x10] sm:$0xff] %vm444_vm5, %v1685_v42 }
 0x77a   : > { %v1679_v45 = vpop.permute.xlu1 %1678 }
 0x77b   : > { %v1681_v46 = vpop.permute.xlu0 %1680  ;;  %1697 = vst.msk [vmem:[#allocation2 + $0x18] sm:$0xff] %vm441_vm3, %v1679_v45 }
 0x77c   : > { %v1686_v48 = vsel %vm435_vm4, %v1679_v45, %v1681_v46 }
 0x77d   : > { %v4374_v40 = vpack.c.bf16 %v1686_v48, %v1684_v47 }
 0x77e   : > { %v1683_v54 = vpop.permute.xlu1 %1682 }
 0x77f   : > { %4375 = vmatprep.subr.bf16.mxu0 %v4374_v40  ;;  %v1687_v56 = vsel %vm435_vm4, %v1681_v46, %v1683_v54  ;;  %v1700_v62 = vld [vmem:[#allocation2] sm:$0xff] }
 0x780   : > { %v1702_v60 = vld [vmem:[#allocation2 + $0x10] sm:$0xff]  ;;  %1699 = vst.msk [vmem:[#allocation2 + $0x28] sm:$0xff] %vm444_vm5, %v1687_v56 }
 0x781   : > { %v5153_v61 = vpack.i.bf16 %v1702_v60, %v1684_v47 }
 0x782   : > { %v1703_v63 = vld [vmem:[#allocation2 + $0x18] sm:$0xff] }
 0x783   : > { %5154 = vrot.lane.b32.xlu1 %v5153_v61, %s5760_s9  ;;  %5149 = vrot.lane.b32.xlu0 %v5153_v61, %s5761_s10  ;;  %v4376_v4 = vpack.c.bf16 %v1703_v63, %v1700_v62  ;;  %v5173_v12 = vpack.i.bf16 %v1703_v63, %v1700_v62 }
 0x785   : > { %4377 = vmatpush1.bf16.msra.mxu0 %v4376_v4 }
 0x787   : > { %5164 = vrot.lane.b32.xlu1 %v5153_v61, %s5762_s11  ;;  %5159 = vrot.lane.b32.xlu0 %v5153_v61, %s5763_s12  ;;  %v1705_v10 = vld [vmem:[#allocation2 + $0x28] sm:$0xff] }
 0x788   : > { %v4411_v11 = vpack.c.bf16 %v1705_v10, %v1702_v60  ;;  %v5183_v14 = vpack.i.bf16 %v1705_v10, %v1686_v48 }
 0x78a   : > { %4412 = vmatpush1.bf16.msra.mxu1 %v4411_v11 }
 0x78b   : > { %5174 = vrot.lane.b32.xlu1 %v5173_v12, %s5760_s9  ;;  %5169 = vrot.lane.b32.xlu0 %v5173_v12, %s5761_s10 }
 0x78c   : > { %4413 = vmatprep.subr.bf16.mxu1 %v5756_v7 }
 0x78f   : > { %5184 = vrot.lane.b32.xlu1 %v5183_v14, %s5761_s10  ;;  %5179 = vrot.lane.b32.xlu0 %v5173_v12, %s5763_s12 }
 0x793   : > { %5189 = vrot.lane.b32.xlu1 %v5173_v12, %s5762_s11  ;;  %5194 = vrot.lane.b32.xlu0 %v5153_v61, %s5764_s13 }
 0x797   : > { %5209 = vrot.lane.b32.xlu1 %v5183_v14, %s5763_s12  ;;  %5199 = vrot.lane.b32.xlu0 %v5183_v14, %s5760_s9 }
 0x79b   : > { %5214 = vrot.lane.b32.xlu1 %v5153_v61, %s5765_s14  ;;  %5204 = vrot.lane.b32.xlu0 %v5173_v12, %s5764_s13 }
 0x79f   : > { %5224 = vrot.lane.b32.xlu1 %v5183_v14, %s5764_s13  ;;  %5219 = vrot.lane.b32.xlu0 %v5183_v14, %s5762_s11 }
 0x7a3   : > { %5229 = vrot.lane.b32.xlu1 %v5173_v12, %s5765_s14  ;;  %5234 = vrot.lane.b32.xlu0 %v5153_v61, %s5766_s15 }
 0x7a7   : > { %5249 = vrot.lane.b32.xlu1 %v5183_v14, %s5766_s15  ;;  %5239 = vrot.lane.b32.xlu0 %v5183_v14, %s5765_s14 }
 0x7ab   : > { %5254 = vrot.lane.b32.xlu1 %v5153_v61, %s5767_s19  ;;  %5244 = vrot.lane.b32.xlu0 %v5173_v12, %s5766_s15 }
 0x7af   : > { %5264 = vrot.lane.b32.xlu1 %v5173_v12, %s5767_s19  ;;  %5259 = vrot.lane.b32.xlu0 %v5183_v14, %s5767_s19 }
 0x7b3   : > { %1903 = vperm.xlu1 %4906, %v4079_v16   ;;  %1898 = vperm.xlu0 %4907, %v4078_v35  }
 0x7f5   : > { %v5155_v38 = vpop.permute.xlu1 %5154  ;;  %v5150_v41 = vpop.permute.xlu0 %5149 }
 0x7f6   : > { %v5152_v13 = vunpack.i.h.bf16 %v5150_v41  ;;  %v5151_v17 = vunpack.i.l.bf16 %v5150_v41  ;;  %v5157_v9 = vunpack.i.h.bf16 %v5155_v38  ;;  %v5156_v15 = vunpack.i.l.bf16 %v5155_v38 }
 0x7f8   : > { %v1725_v52 = vsel %vm471_vm7, %v5151_v17, %v5152_v13  ;;  %v1747_v37 = vsel %vm494_vm8, %v5156_v15, %v5157_v9 }
 0x7f9   : > { %v6444_v44 = vpop.permute.xlu1 %5164  ;;  %v5160_v49 = vpop.permute.xlu0 %5159 }
 0x7fa   : > { %v5162_v22 = vunpack.i.h.bf16 %v5160_v49  ;;  %v5161_v27 = vunpack.i.l.bf16 %v5160_v49  ;;  %v5167_v60 = vunpack.i.h.bf16 %v6444_v44  ;;  %v5166_v62 = vunpack.i.l.bf16 %v6444_v44 }
 0x7fc   : > { %v1769_v61 = vsel %vm517_vm9, %v5161_v27, %v5162_v22 }
 0x7fd   : > { %v5175_v36 = vpop.permute.xlu1 %5174  ;;  %v5170_v5 = vpop.permute.xlu0 %5169 }
 0x7fe   : > { %v5171_v19 = vunpack.i.l.bf16 %v5170_v5  ;;  %v5172_v30 = vunpack.i.h.bf16 %v5170_v5  ;;  %v5176_v18 = vunpack.i.l.bf16 %v5175_v36  ;;  %v5177_v28 = vunpack.i.h.bf16 %v5175_v36 }
 0x800   : > { %v1724_v53 = vsel %vm471_vm7, %v5171_v19, %v5151_v17  ;;  %v1746_v33 = vsel %vm494_vm8, %v5176_v18, %v5156_v15  ;;  %v1791_v19 = vsel %vm540_vm10, %v5166_v62, %v5167_v60 }
 0x801   : > { %v5185_v23 = vpop.permute.xlu1 %5184  ;;  %v5180_v51 = vpop.permute.xlu0 %5179 }
 0x802   : > { %v5187_v43 = vunpack.i.h.bf16 %v5185_v23  ;;  %v5186_v50 = vunpack.i.l.bf16 %v5185_v23  ;;  %v5181_v34 = vunpack.i.l.bf16 %v5180_v51  ;;  %v5182_v48 = vunpack.i.h.bf16 %v5180_v51 }
 0x804   : > { %v1726_v57 = vsel %vm471_vm7, %v5172_v30, %v5186_v50  ;;  %v4414_v58 = vpack.c.bf16 %v5187_v43, %v5152_v13  ;;  %v1727_v59 = vsel %vm471_vm7, %v5186_v50, %v5187_v43  ;;  %v1768_v11 = vsel %vm517_vm9, %v5181_v34, %v5161_v27 }
 0x805   : > { %v6450_v0 = vpop.permute.xlu1 %5189  ;;  %v4378_v1 = vpack.c.bf16 %v1727_v59, %v1725_v52  ;;  %v4380_v2 = vpack.c.bf16 %v1726_v57, %v1724_v53  ;;  %v6452_v6 = vpop.permute.xlu0 %5194 }
 0x806   : > { %4415 = vmatpush1.bf16.msra.mxu1 %v4414_v58  ;;  %v5191_v63 = vunpack.i.l.bf16 %v6450_v0  ;;  %v5192_v21 = vunpack.i.h.bf16 %v6450_v0  ;;  %v5197_v16 = vunpack.i.h.bf16 %v6452_v6  ;;  %v5196_v44 = vunpack.i.l.bf16 %v6452_v6 }
 0x807   : > { %4379 = vmatprep.subr.bf16.mxu0 %v4378_v1  ;;  %4416 = vmatprep.subr.bf16.mxu1 %v5756_v7 }
 0x808   : > { %4381 = vmatpush1.bf16.msra.mxu0 %v4380_v2  ;;  %v1790_v13 = vsel %vm540_vm10, %v5191_v63, %v5166_v62  ;;  %v1813_v0 = vsel %vm563_vm11, %v5196_v44, %v5197_v16 }
 0x809   : > { %v5210_v20 = vpop.permute.xlu1 %5209  ;;  %v5200_v26 = vpop.permute.xlu0 %5199 }
 0x80a   : > { %v5212_v24 = vunpack.i.h.bf16 %v5210_v20  ;;  %v5211_v25 = vunpack.i.l.bf16 %v5210_v20  ;;  %v5202_v31 = vunpack.i.h.bf16 %v5200_v26  ;;  %v5201_v32 = vunpack.i.l.bf16 %v5200_v26 }
 0x80c   : > { %v4417_v39 = vpack.c.bf16 %v5202_v31, %v5157_v9  ;;  %v1748_v42 = vsel %vm494_vm8, %v5177_v28, %v5201_v32  ;;  %v1749_v46 = vsel %vm494_vm8, %v5201_v32, %v5202_v31  ;;  %v1771_v47 = vsel %vm517_vm9, %v5211_v25, %v5212_v24 }
 0x80d   : > { %v6458_v45 = vpop.permute.xlu1 %5214  ;;  %v5205_v40 = vpop.permute.xlu0 %5204  ;;  %v4382_v54 = vpack.c.bf16 %v1749_v46, %v1747_v37  ;;  %v4384_v56 = vpack.c.bf16 %v1748_v42, %v1746_v33  ;;  %v1770_v4 = vsel %vm517_vm9, %v5182_v48, %v5211_v25  ;;  %v4386_v10 = vpack.c.bf16 %v1771_v47, %v1769_v61 }
 0x80e   : > { %4418 = vmatpush1.bf16.msra.mxu1 %v4417_v39  ;;  %v4420_v12 = vpack.c.bf16 %v5212_v24, %v5162_v22  ;;  %v4388_v5 = vpack.c.bf16 %v1770_v4, %v1768_v11  ;;  %v5206_v17 = vunpack.i.l.bf16 %v5205_v40  ;;  %v5207_v52 = vunpack.i.h.bf16 %v5205_v40 }
 0x80f   : > { %4383 = vmatprep.subr.bf16.mxu0 %v4382_v54  ;;  %4419 = vmatprep.subr.bf16.mxu1 %v5756_v7  ;;  %v5217_v59 = vunpack.i.h.bf16 %v6458_v45  ;;  %v5216_v1 = vunpack.i.l.bf16 %v6458_v45 }
 0x810   : > { %4385 = vmatpush1.bf16.msra.mxu0 %v4384_v56  ;;  %v1812_v15 = vsel %vm563_vm11, %v5206_v17, %v5196_v44 }
 0x811   : > { %v5225_v14 = vpop.permute.xlu1 %5224  ;;  %v5220_v41 = vpop.permute.xlu0 %5219  ;;  %4387 = vmatprep.subr.bf16.mxu0 %v4386_v10  ;;  %v1835_v37 = vsel %vm586_vm12, %v5216_v1, %v5217_v59 }
 0x812   : > { %v5227_v35 = vunpack.i.h.bf16 %v5225_v14  ;;  %v5226_v38 = vunpack.i.l.bf16 %v5225_v14  ;;  %v5222_v49 = vunpack.i.h.bf16 %v5220_v41  ;;  %v5221_v36 = vunpack.i.l.bf16 %v5220_v41  ;;  %4421 = vmatpush1.bf16.msra.mxu1 %v4420_v12 }
 0x813   : > { %4422 = vmatprep.subr.bf16.mxu1 %v5756_v7 }
 0x814   : > { %v4423_v23 = vpack.c.bf16 %v5222_v49, %v5167_v60  ;;  %v1792_v30 = vsel %vm540_vm10, %v5192_v21, %v5221_v36  ;;  %4389 = vmatpush1.bf16.msra.mxu0 %v4388_v5  ;;  %v1793_v50 = vsel %vm540_vm10, %v5221_v36, %v5222_v49  ;;  %v1815_v51 = vsel %vm563_vm11, %v5226_v38, %v5227_v35 }
 0x815   : > { %v5230_v43 = vpop.permute.xlu1 %5229  ;;  %v5235_v53 = vpop.permute.xlu0 %5234  ;;  %v4390_v57 = vpack.c.bf16 %v1793_v50, %v1791_v19  ;;  %v4392_v58 = vpack.c.bf16 %v1792_v30, %v1790_v13  ;;  %v1814_v2 = vsel %vm563_vm11, %v5207_v52, %v5226_v38  ;;  %v4394_v9 = vpack.c.bf16 %v1815_v51, %v1813_v0  ;;  %v4074_v30 = vld [vmem:[%s7246_s1 + $0x60] sm:$0xff]  ;;  %v4076_v50 = vld [vmem:[%s7246_s1 + $0x70] sm:$0xff] }
 0x816   : > { %4424 = vmatpush1.bf16.msra.mxu1 %v4423_v23  ;;  %v5231_v6 = vunpack.i.l.bf16 %v5230_v43  ;;  %v4426_v18 = vpack.c.bf16 %v5227_v35, %v5197_v16  ;;  %v5232_v22 = vunpack.i.h.bf16 %v5230_v43  ;;  %v5237_v24 = vunpack.i.h.bf16 %v5235_v53  ;;  %v4077_v43 = vld [vmem:[%s7246_s1 + $0x78] sm:$0xff] }
 0x817   : > { %4391 = vmatprep.subr.bf16.mxu0 %v4390_v57  ;;  %4425 = vmatprep.subr.bf16.mxu1 %v5756_v7  ;;  %v5236_v28 = vunpack.i.l.bf16 %v5235_v53  ;;  %v4396_v33 = vpack.c.bf16 %v1814_v2, %v1812_v15 }
 0x818   : > { %4393 = vmatpush1.bf16.msra.mxu0 %v4392_v58  ;;  %v1834_v34 = vsel %vm586_vm12, %v5231_v6, %v5216_v1 }
 0x819   : > { %v5250_v20 = vpop.permute.xlu1 %5249  ;;  %v5240_v27 = vpop.permute.xlu0 %5239  ;;  %4395 = vmatprep.subr.bf16.mxu0 %v4394_v9  ;;  %v1857_v61 = vsel %vm609_vm13, %v5236_v28, %v5237_v24 }
 0x81a   : > { %v5252_v25 = vunpack.i.h.bf16 %v5250_v20  ;;  %v5251_v26 = vunpack.i.l.bf16 %v5250_v20  ;;  %v5242_v31 = vunpack.i.h.bf16 %v5240_v27  ;;  %v5241_v32 = vunpack.i.l.bf16 %v5240_v27  ;;  %4427 = vmatpush1.bf16.msra.mxu1 %v4426_v18 }
 0x81b   : > { %4428 = vmatprep.subr.bf16.mxu1 %v5756_v7 }
 0x81c   : > { %v4429_v39 = vpack.c.bf16 %v5242_v31, %v5217_v59  ;;  %v1836_v42 = vsel %vm586_vm12, %v5232_v22, %v5241_v32  ;;  %4397 = vmatpush1.bf16.msra.mxu0 %v4396_v33  ;;  %v1837_v46 = vsel %vm586_vm12, %v5241_v32, %v5242_v31  ;;  %v1859_v47 = vsel %vm609_vm13, %v5251_v26, %v5252_v25 }
 0x81d   : > { %v5255_v45 = vpop.permute.xlu1 %5254  ;;  %v5245_v48 = vpop.permute.xlu0 %5244  ;;  %v4398_v40 = vpack.c.bf16 %v1837_v46, %v1835_v37  ;;  %v4400_v54 = vpack.c.bf16 %v1836_v42, %v1834_v34  ;;  %v4432_v62 = vpack.c.bf16 %v5252_v25, %v5237_v24  ;;  %v4402_v63 = vpack.c.bf16 %v1859_v47, %v1857_v61 }
 0x81e   : > { %v5247_v56 = vunpack.i.h.bf16 %v5245_v48  ;;  %v5246_v60 = vunpack.i.l.bf16 %v5245_v48  ;;  %4430 = vmatpush1.bf16.msra.mxu1 %v4429_v39  ;;  %v5257_v4 = vunpack.i.h.bf16 %v5255_v45  ;;  %v5256_v10 = vunpack.i.l.bf16 %v5255_v45 }
 0x81f   : > { %4399 = vmatprep.subr.bf16.mxu0 %v4398_v40  ;;  %4431 = vmatprep.subr.bf16.mxu1 %v5756_v7 }
 0x820   : > { %v1858_v11 = vsel %vm609_vm13, %v5247_v56, %v5251_v26  ;;  %v1856_v12 = vsel %vm609_vm13, %v5246_v60, %v5236_v28  ;;  %4401 = vmatpush1.bf16.msra.mxu0 %v4400_v54  ;;  %v1879_v13 = vsel %vm632_vm14, %v5256_v10, %v5257_v4 }
 0x821   : > { %v5265_v14 = vpop.permute.xlu1 %5264  ;;  %v5260_v35 = vpop.permute.xlu0 %5259  ;;  %4403 = vmatprep.subr.bf16.mxu0 %v4402_v63  ;;  %v4404_v38 = vpack.c.bf16 %v1858_v11, %v1856_v12 }
 0x822   : > { %v5267_v21 = vunpack.i.h.bf16 %v5265_v14  ;;  %v5266_v16 = vunpack.i.l.bf16 %v5265_v14  ;;  %v5262_v41 = vunpack.i.h.bf16 %v5260_v35  ;;  %v5261_v44 = vunpack.i.l.bf16 %v5260_v35  ;;  %4433 = vmatpush1.bf16.msra.mxu1 %v4432_v62 }
 0x823   : > { %4434 = vmatprep.subr.bf16.mxu1 %v5756_v7 }
 0x824   : > { %v1878_v49 = vsel %vm632_vm14, %v5266_v16, %v5256_v10  ;;  %v4435_v36 = vpack.c.bf16 %v5262_v41, %v5257_v4  ;;  %v1880_v5 = vsel %vm632_vm14, %v5267_v21, %v5261_v44  ;;  %4405 = vmatpush1.bf16.msra.mxu0 %v4404_v38  ;;  %v1881_v17 = vsel %vm632_vm14, %v5261_v44, %v5262_v41  ;;  %v4085_v44 = vld [vmem:[%s7246_s1 + $0x88] sm:$0xff] }
 0x825   : > { %v4406_v19 = vpack.c.bf16 %v1881_v17, %v1879_v13  ;;  %v4408_v23 = vpack.c.bf16 %v1880_v5, %v1878_v49  ;;  %v4089_v49 = vld [vmem:[%s7247_s2 + $0x48] sm:$0xff] }
 0x826   : > { %4436 = vmatpush1.bf16.msra.mxu1 %v4435_v36  ;;  %v4088_v36 = vld [vmem:[%s7247_s2 + $0x40] sm:$0xff] }
 0x827   : > { %4407 = vmatprep.subr.bf16.mxu0 %v4406_v19  ;;  %4473 = vmatprep.subr.bf16.mxu1 %v5756_v7 }
 0x828   : > { %4409 = vmatpush1.bf16.msra.mxu0 %v4408_v23 }
 0x829   : > { %2054 = vmatmul.mubr.f32.vlgmr.msra.gmra.mrb[18].mxu1 %v4074_v30 }
 0x82a   : > { %4083 = vmatprep.mubr.msk.f32.mxu1 %vm659_vm6, %v4077_v43 }
 0x82b   : > { %1977 = vmatmul.mubr.f32.vlgmr.msra.gmra.mrb[10].mxu0 %v4074_v30 }
 0x82c   : > { %4081 = vmatprep.mubr.msk.f32.mxu0 %vm659_vm6, %v4077_v43 }
 0x82d   : > { %2059 = vmatmul.mubr.f32.gmra.mrb[20].mxu1 %v4076_v50 }
 0x82e   : > { %4092 = vmatprep.mubr.msk.f32.mxu1 %vm659_vm6, %v4085_v44 }
 0x82f   : > { %1983 = vmatmul.mubr.f32.gmra.mrb[12].mxu0 %v4076_v50 }
 0x830   : > { %4090 = vmatprep.mubr.msk.f32.mxu0 %vm659_vm6, %v4085_v44 }
 0x832   : > { %v1899_v51 = vpop.permute.xlu0 %1898  ;;  %v1904_v20 = vpop.permute.xlu1 %1903 }
 0x8fc   : > { %v2055_v52 = vpop.f32.mrb[18].mxu1 }
 0x8fd   : > { %v2056_v53 = vadd.f32 %v2055_v52, %v1899_v51  ;;  %v2057_v57 = vpop.f32.mrb[19].mxu1 }
 0x8fe   : > { %v1978_v58 = vpop.f32.mrb[10].mxu0 }
 0x8ff   : > { %v2066_v59 = vmax.f32 %v2056_v53, 0.0  ;;  %v1979_v0 = vadd.f32 %v1978_v58, %v1899_v51  ;;  %v1980_v1 = vpop.f32.mrb[11].mxu0 }
 0x900   : > { %v1981_v2 = vadd.f32 %v1980_v1, %v1899_v51  ;;  %v2060_v6 = vpop.f32.mrb[20].mxu1 }
 0x901   : > { %v2072_v9 = vmul.f32 %v2066_v59, %v6154_v55  ;;  %v2064_v15 = vmax.f32 %v1979_v0, 0.0  ;;  %v2062_v18 = vpop.f32.mrb[21].mxu1  ;;  %v2061_v28 = vadd.f32 %v2060_v6, %v1904_v20 }
 0x902   : > { %v2065_v22 = vmax.f32 %v1981_v2, 0.0  ;;  %v1984_v24 = vpop.f32.mrb[12].mxu0 }
 0x903   : > { %v1985_v25 = vadd.f32 %v1984_v24, %v1904_v20  ;;  %2086 = vrot.lane.b32.xlu0 %v2072_v9, %s5759_s8  ;;  %v1986_v26 = vpop.f32.mrb[13].mxu0  ;;  %v2070_v32 = vmul.f32 %v2064_v15, %v6144_v29  ;;  %v2069_v39 = vmax.f32 %v2061_v28, 0.0 }
 0x904   : > { %v2071_v27 = vmul.f32 %v2065_v22, %v6147_v3  ;;  %v1987_v31 = vadd.f32 %v1986_v26, %v1904_v20 }
 0x905   : > { %v2067_v33 = vmax.f32 %v1985_v25, 0.0  ;;  %v2075_v45 = vmul.f32 %v2069_v39, %v6154_v55 }
 0x906   : > { %v2068_v34 = vmax.f32 %v1987_v31, 0.0  ;;  %2084 = vrot.lane.b32.xlu1 %v2071_v27, %s5759_s8 }
 0x907   : > { %v2073_v37 = vmul.f32 %v2067_v33, %v6144_v29  ;;  %2082 = vrot.lane.b32.xlu0 %v2070_v32, %s5759_s8 }
 0x908   : > { %v2074_v42 = vmul.f32 %v2068_v34, %v6147_v3 }
 0x90a   : > { %2088 = vrot.lane.b32.xlu1 %v2073_v37, %s5759_s8 }
 0x90b   : > { %2090 = vrot.lane.b32.xlu0 %v2074_v42, %s5759_s8 }
 0x90e   : > { %2092 = vrot.lane.b32.xlu1 %v2075_v45, %s5759_s8 }
 0x975   : > { %v2087_v46 = vpop.permute.xlu0 %2086 }
 0x978   : > { %v2085_v47 = vpop.permute.xlu1 %2084 }
 0x979   : > { %v2095_v48 = vsel %vm435_vm4, %v2085_v47, %v2087_v46  ;;  %v2083_v40 = vpop.permute.xlu0 %2082 }
 0x97a   : > { %2106 = vst.msk [vmem:[#allocation2 + $0x10] sm:$0xff] %vm444_vm5, %v2095_v48  ;;  %v2094_v60 = vsel %vm435_vm4, %v2083_v40, %v2085_v47 }
 0x97b   : > { %2104 = vst.msk [vmem:[#allocation2] sm:$0xff] %vm441_vm3, %v2083_v40 }
 0x97c   : > { %v2089_v54 = vpop.permute.xlu1 %2088 }
 0x97d   : > { %2107 = vst.msk [vmem:[#allocation2 + $0x18] sm:$0xff] %vm441_vm3, %v2089_v54  ;;  %v2091_v56 = vpop.permute.xlu0 %2090 }
 0x97e   : > { %v2096_v61 = vsel %vm435_vm4, %v2089_v54, %v2091_v56 }
 0x97f   : > { %v4437_v62 = vpack.c.bf16 %v2096_v61, %v2094_v60 }
 0x980   : > { %v2093_v63 = vpop.permute.xlu1 %2092 }
 0x981   : > { %v2097_v4 = vsel %vm435_vm4, %v2091_v56, %v2093_v63  ;;  %v2112_v10 = vld [vmem:[#allocation2 + $0x10] sm:$0xff]  ;;  %4438 = vmatprep.subr.bf16.mxu0 %v4437_v62 }
 0x982   : > { %2109 = vst.msk [vmem:[#allocation2 + $0x28] sm:$0xff] %vm444_vm5, %v2097_v4  ;;  %v5273_v11 = vpack.i.bf16 %v2112_v10, %v2094_v60  ;;  %v2110_v12 = vld [vmem:[#allocation2] sm:$0xff] }
 0x984   : > { %5274 = vrot.lane.b32.xlu1 %v5273_v11, %s5760_s9  ;;  %5269 = vrot.lane.b32.xlu0 %v5273_v11, %s5761_s10  ;;  %v2113_v14 = vld [vmem:[#allocation2 + $0x18] sm:$0xff] }
 0x985   : > { %v4439_v21 = vpack.c.bf16 %v2113_v14, %v2110_v12  ;;  %v5293_v38 = vpack.i.bf16 %v2113_v14, %v2110_v12 }
 0x987   : > { %4440 = vmatpush1.bf16.msra.mxu0 %v4439_v21 }
 0x988   : > { %5284 = vrot.lane.b32.xlu1 %v5273_v11, %s5762_s11  ;;  %5279 = vrot.lane.b32.xlu0 %v5273_v11, %s5763_s12 }
 0x989   : > { %v2115_v16 = vld [vmem:[#allocation2 + $0x28] sm:$0xff] }
 0x98a   : > { %v4474_v35 = vpack.c.bf16 %v2115_v16, %v2112_v10  ;;  %v5303_v41 = vpack.i.bf16 %v2115_v16, %v2096_v61 }
 0x98c   : > { %4475 = vmatpush1.bf16.msra.mxu1 %v4474_v35  ;;  %5294 = vrot.lane.b32.xlu1 %v5293_v38, %s5760_s9 }
 0x98d   : > { %5289 = vrot.lane.b32.xlu0 %v5293_v38, %s5761_s10  ;;  %4476 = vmatprep.subr.bf16.mxu1 %v5756_v7 }
 0x990   : > { %5304 = vrot.lane.b32.xlu1 %v5303_v41, %s5761_s10 }
 0x991   : > { %5299 = vrot.lane.b32.xlu0 %v5293_v38, %s5763_s12 }
 0x994   : > { %5309 = vrot.lane.b32.xlu1 %v5293_v38, %s5762_s11 }
 0x995   : > { %5314 = vrot.lane.b32.xlu0 %v5273_v11, %s5764_s13 }
 0x998   : > { %5329 = vrot.lane.b32.xlu1 %v5303_v41, %s5763_s12 }
 0x999   : > { %5319 = vrot.lane.b32.xlu0 %v5303_v41, %s5760_s9 }
 0x99c   : > { %5334 = vrot.lane.b32.xlu1 %v5273_v11, %s5765_s14 }
 0x99d   : > { %5324 = vrot.lane.b32.xlu0 %v5293_v38, %s5764_s13 }
 0x9a0   : > { %5344 = vrot.lane.b32.xlu1 %v5303_v41, %s5764_s13 }
 0x9a1   : > { %5339 = vrot.lane.b32.xlu0 %v5303_v41, %s5762_s11 }
 0x9a4   : > { %5349 = vrot.lane.b32.xlu1 %v5293_v38, %s5765_s14 }
 0x9a5   : > { %5354 = vrot.lane.b32.xlu0 %v5273_v11, %s5766_s15 }
 0x9a8   : > { %5369 = vrot.lane.b32.xlu1 %v5303_v41, %s5766_s15 }
 0x9a9   : > { %5359 = vrot.lane.b32.xlu0 %v5303_v41, %s5765_s14 }
 0x9ac   : > { %5374 = vrot.lane.b32.xlu1 %v5273_v11, %s5767_s19 }
 0x9ad   : > { %5364 = vrot.lane.b32.xlu0 %v5293_v38, %s5766_s15 }
 0x9b0   : > { %5384 = vrot.lane.b32.xlu1 %v5293_v38, %s5767_s19 }
 0x9b1   : > { %5379 = vrot.lane.b32.xlu0 %v5303_v41, %s5767_s19 }
 0x9b4   : > { %2313 = vperm.xlu1 %4906, %v4089_v49  }
 0x9b5   : > { %2308 = vperm.xlu0 %4907, %v4088_v36  }
 0x9f6   : > { %v5275_v5 = vpop.permute.xlu1 %5274  ;;  %v5270_v13 = vpop.permute.xlu0 %5269 }
 0x9f7   : > { %v5272_v43 = vunpack.i.h.bf16 %v5270_v13  ;;  %v5271_v50 = vunpack.i.l.bf16 %v5270_v13  ;;  %v5277_v24 = vunpack.i.h.bf16 %v5275_v5  ;;  %v5276_v25 = vunpack.i.l.bf16 %v5275_v5 }
 0x9f9   : > { %v2135_v0 = vsel %vm471_vm7, %v5271_v50, %v5272_v43  ;;  %v2157_v47 = vsel %vm494_vm8, %v5276_v25, %v5277_v24 }
 0x9fa   : > { %v6567_v17 = vpop.permute.xlu1 %5284  ;;  %v5280_v19 = vpop.permute.xlu0 %5279 }
 0x9fb   : > { %v5282_v28 = vunpack.i.h.bf16 %v5280_v19  ;;  %v5281_v34 = vunpack.i.l.bf16 %v5280_v19  ;;  %v5287_v10 = vunpack.i.h.bf16 %v6567_v17  ;;  %v5286_v12 = vunpack.i.l.bf16 %v6567_v17 }
 0x9fd   : > { %v2179_v11 = vsel %vm517_vm9, %v5281_v34, %v5282_v28 }
 0x9fe   : > { %v5295_v23 = vpop.permute.xlu1 %5294 }
 0x9ff   : > { %v5290_v30 = vpop.permute.xlu0 %5289  ;;  %v5296_v26 = vunpack.i.l.bf16 %v5295_v23  ;;  %v5297_v37 = vunpack.i.h.bf16 %v5295_v23 }
 0xa00   : > { %v5291_v51 = vunpack.i.l.bf16 %v5290_v30  ;;  %v5292_v53 = vunpack.i.h.bf16 %v5290_v30 }
 0xa01   : > { %v2156_v45 = vsel %vm494_vm8, %v5296_v26, %v5276_v25 }
 0xa02   : > { %v5305_v52 = vpop.permute.xlu1 %5304  ;;  %v2134_v1 = vsel %vm471_vm7, %v5291_v51, %v5271_v50  ;;  %v2201_v51 = vsel %vm540_vm10, %v5286_v12, %v5287_v10 }
 0xa03   : > { %v5307_v57 = vunpack.i.h.bf16 %v5305_v52  ;;  %v5306_v58 = vunpack.i.l.bf16 %v5305_v52  ;;  %v5300_v59 = vpop.permute.xlu0 %5299 }
 0xa04   : > { %v5301_v46 = vunpack.i.l.bf16 %v5300_v59  ;;  %v5302_v61 = vunpack.i.h.bf16 %v5300_v59 }
 0xa05   : > { %v2136_v2 = vsel %vm471_vm7, %v5292_v53, %v5306_v58  ;;  %v4477_v6 = vpack.c.bf16 %v5307_v57, %v5272_v43  ;;  %v2137_v9 = vsel %vm471_vm7, %v5306_v58, %v5307_v57 }
 0xa06   : > { %v6573_v15 = vpop.permute.xlu1 %5309  ;;  %v4441_v18 = vpack.c.bf16 %v2137_v9, %v2135_v0  ;;  %v4443_v20 = vpack.c.bf16 %v2136_v2, %v2134_v1  ;;  %v2178_v35 = vsel %vm517_vm9, %v5301_v46, %v5281_v34 }
 0xa07   : > { %v6575_v22 = vpop.permute.xlu0 %5314  ;;  %4478 = vmatpush1.bf16.msra.mxu1 %v4477_v6  ;;  %v5311_v14 = vunpack.i.l.bf16 %v6573_v15  ;;  %v5312_v44 = vunpack.i.h.bf16 %v6573_v15 }
 0xa08   : > { %4442 = vmatprep.subr.bf16.mxu0 %v4441_v18  ;;  %4479 = vmatprep.subr.bf16.mxu1 %v5756_v7  ;;  %v5317_v49 = vunpack.i.h.bf16 %v6575_v22  ;;  %v5316_v17 = vunpack.i.l.bf16 %v6575_v22 }
 0xa09   : > { %4444 = vmatpush1.bf16.msra.mxu0 %v4443_v20  ;;  %v2200_v43 = vsel %vm540_vm10, %v5311_v14, %v5286_v12 }
 0xa0a   : > { %v5330_v27 = vpop.permute.xlu1 %5329  ;;  %v2223_v15 = vsel %vm563_vm11, %v5316_v17, %v5317_v49 }
 0xa0b   : > { %v5332_v31 = vunpack.i.h.bf16 %v5330_v27  ;;  %v5331_v32 = vunpack.i.l.bf16 %v5330_v27  ;;  %v5320_v33 = vpop.permute.xlu0 %5319 }
 0xa0c   : > { %v5322_v39 = vunpack.i.h.bf16 %v5320_v33  ;;  %v5321_v42 = vunpack.i.l.bf16 %v5320_v33 }
 0xa0d   : > { %v2181_v60 = vsel %vm517_vm9, %v5331_v32, %v5332_v31  ;;  %v2180_v21 = vsel %vm517_vm9, %v5302_v61, %v5331_v32  ;;  %v4483_v38 = vpack.c.bf16 %v5332_v31, %v5282_v28 }
 0xa0e   : > { %v4480_v48 = vpack.c.bf16 %v5322_v39, %v5277_v24  ;;  %v2158_v40 = vsel %vm494_vm8, %v5297_v37, %v5321_v42  ;;  %v6581_v54 = vpop.permute.xlu1 %5334  ;;  %v2159_v56 = vsel %vm494_vm8, %v5321_v42, %v5322_v39  ;;  %v4449_v16 = vpack.c.bf16 %v2181_v60, %v2179_v11 }
 0xa0f   : > { %v5325_v62 = vpop.permute.xlu0 %5324  ;;  %v4445_v63 = vpack.c.bf16 %v2159_v56, %v2157_v47  ;;  %v4447_v4 = vpack.c.bf16 %v2158_v40, %v2156_v45  ;;  %v4451_v30 = vpack.c.bf16 %v2180_v21, %v2178_v35  ;;  %v5337_v9 = vunpack.i.h.bf16 %v6581_v54 }
 0xa10   : > { %4481 = vmatpush1.bf16.msra.mxu1 %v4480_v48  ;;  %v5326_v50 = vunpack.i.l.bf16 %v5325_v62  ;;  %v5327_v0 = vunpack.i.h.bf16 %v5325_v62  ;;  %v5336_v18 = vunpack.i.l.bf16 %v6581_v54 }
 0xa11   : > { %4446 = vmatprep.subr.bf16.mxu0 %v4445_v63  ;;  %4482 = vmatprep.subr.bf16.mxu1 %v5756_v7 }
 0xa12   : > { %4448 = vmatpush1.bf16.msra.mxu0 %v4447_v4  ;;  %v5345_v41 = vpop.permute.xlu1 %5344  ;;  %v2222_v25 = vsel %vm563_vm11, %v5326_v50, %v5316_v17  ;;  %v2245_v47 = vsel %vm586_vm12, %v5336_v18, %v5337_v9 }
 0xa13   : > { %v5347_v36 = vunpack.i.h.bf16 %v5345_v41  ;;  %v5346_v5 = vunpack.i.l.bf16 %v5345_v41  ;;  %v5340_v13 = vpop.permute.xlu0 %5339  ;;  %4450 = vmatprep.subr.bf16.mxu0 %v4449_v16 }
 0xa14   : > { %v5342_v19 = vunpack.i.h.bf16 %v5340_v13  ;;  %v5341_v23 = vunpack.i.l.bf16 %v5340_v13  ;;  %4484 = vmatpush1.bf16.msra.mxu1 %v4483_v38 }
 0xa15   : > { %4485 = vmatprep.subr.bf16.mxu1 %v5756_v7  ;;  %v2225_v59 = vsel %vm563_vm11, %v5346_v5, %v5347_v36  ;;  %v2224_v20 = vsel %vm563_vm11, %v5327_v0, %v5346_v5  ;;  %v4489_v26 = vpack.c.bf16 %v5347_v36, %v5317_v49 }
 0xa16   : > { %v4486_v52 = vpack.c.bf16 %v5342_v19, %v5287_v10  ;;  %v2202_v53 = vsel %vm540_vm10, %v5312_v44, %v5341_v23  ;;  %4452 = vmatpush1.bf16.msra.mxu0 %v4451_v30  ;;  %v5350_v57 = vpop.permute.xlu1 %5349  ;;  %v2203_v58 = vsel %vm540_vm10, %v5341_v23, %v5342_v19  ;;  %v4457_v24 = vpack.c.bf16 %v2225_v59, %v2223_v15 }
 0xa17   : > { %v5355_v1 = vpop.permute.xlu0 %5354  ;;  %v4453_v2 = vpack.c.bf16 %v2203_v58, %v2201_v51  ;;  %v4455_v6 = vpack.c.bf16 %v2202_v53, %v2200_v43  ;;  %v5351_v22 = vunpack.i.l.bf16 %v5350_v57  ;;  %v5352_v28 = vunpack.i.h.bf16 %v5350_v57  ;;  %v4084_v53 = vld [vmem:[%s7246_s1 + $0x80] sm:$0xff]  ;;  %v4087_v57 = vld [vmem:[%s7246_s1 + $0x98] sm:$0xff]  ;;  %v4086_v58 = vld [vmem:[%s7246_s1 + $0x90] sm:$0xff] }
 0xa18   : > { %4487 = vmatpush1.bf16.msra.mxu1 %v4486_v52  ;;  %v5357_v31 = vunpack.i.h.bf16 %v5355_v1  ;;  %v5356_v37 = vunpack.i.l.bf16 %v5355_v1  ;;  %v4459_v45 = vpack.c.bf16 %v2224_v20, %v2222_v25 }
 0xa19   : > { %4454 = vmatprep.subr.bf16.mxu0 %v4453_v2  ;;  %4488 = vmatprep.subr.bf16.mxu1 %v5756_v7  ;;  %v2244_v46 = vsel %vm586_vm12, %v5351_v22, %v5336_v18 }
 0xa1a   : > { %4456 = vmatpush1.bf16.msra.mxu0 %v4455_v6  ;;  %v5370_v27 = vpop.permute.xlu1 %5369  ;;  %v2267_v11 = vsel %vm609_vm13, %v5356_v37, %v5357_v31 }
 0xa1b   : > { %v5372_v32 = vunpack.i.h.bf16 %v5370_v27  ;;  %v5371_v33 = vunpack.i.l.bf16 %v5370_v27  ;;  %v5360_v34 = vpop.permute.xlu0 %5359  ;;  %4458 = vmatprep.subr.bf16.mxu0 %v4457_v24 }
 0xa1c   : > { %v5362_v39 = vunpack.i.h.bf16 %v5360_v34  ;;  %v5361_v42 = vunpack.i.l.bf16 %v5360_v34  ;;  %4490 = vmatpush1.bf16.msra.mxu1 %v4489_v26 }
 0xa1d   : > { %4491 = vmatprep.subr.bf16.mxu1 %v5756_v7  ;;  %v2269_v60 = vsel %vm609_vm13, %v5371_v33, %v5372_v32  ;;  %v4495_v12 = vpack.c.bf16 %v5372_v32, %v5357_v31 }
 0xa1e   : > { %v4492_v48 = vpack.c.bf16 %v5362_v39, %v5337_v9  ;;  %v2246_v40 = vsel %vm586_vm12, %v5352_v28, %v5361_v42  ;;  %4460 = vmatpush1.bf16.msra.mxu0 %v4459_v45  ;;  %v5375_v54 = vpop.permute.xlu1 %5374  ;;  %v2247_v56 = vsel %vm586_vm12, %v5361_v42, %v5362_v39  ;;  %v4465_v14 = vpack.c.bf16 %v2269_v60, %v2267_v11 }
 0xa1f   : > { %v5365_v61 = vpop.permute.xlu0 %5364  ;;  %v4461_v62 = vpack.c.bf16 %v2247_v56, %v2245_v47  ;;  %v4463_v63 = vpack.c.bf16 %v2246_v40, %v2244_v46  ;;  %v5377_v21 = vunpack.i.h.bf16 %v5375_v54  ;;  %v5376_v16 = vunpack.i.l.bf16 %v5375_v54 }
 0xa20   : > { %v5367_v4 = vunpack.i.h.bf16 %v5365_v61  ;;  %v5366_v10 = vunpack.i.l.bf16 %v5365_v61  ;;  %4493 = vmatpush1.bf16.msra.mxu1 %v4492_v48 }
 0xa21   : > { %4462 = vmatprep.subr.bf16.mxu0 %v4461_v62  ;;  %4494 = vmatprep.subr.bf16.mxu1 %v5756_v7  ;;  %v2289_v43 = vsel %vm632_vm14, %v5376_v16, %v5377_v21 }
 0xa22   : > { %v2268_v35 = vsel %vm609_vm13, %v5367_v4, %v5371_v33  ;;  %v2266_v38 = vsel %vm609_vm13, %v5366_v10, %v5356_v37  ;;  %4464 = vmatpush1.bf16.msra.mxu0 %v4463_v63  ;;  %v5385_v41 = vpop.permute.xlu1 %5384 }
 0xa23   : > { %v5387_v44 = vunpack.i.h.bf16 %v5385_v41  ;;  %v5386_v49 = vunpack.i.l.bf16 %v5385_v41  ;;  %v5380_v36 = vpop.permute.xlu0 %5379  ;;  %4466 = vmatprep.subr.bf16.mxu0 %v4465_v14  ;;  %v4467_v5 = vpack.c.bf16 %v2268_v35, %v2266_v38 }
 0xa24   : > { %v5382_v13 = vunpack.i.h.bf16 %v5380_v36  ;;  %v5381_v17 = vunpack.i.l.bf16 %v5380_v36  ;;  %4496 = vmatpush1.bf16.msra.mxu1 %v4495_v12 }
 0xa25   : > { %v2288_v19 = vsel %vm632_vm14, %v5386_v49, %v5376_v16  ;;  %4497 = vmatprep.subr.bf16.mxu1 %v5756_v7 }
 0xa26   : > { %v4498_v23 = vpack.c.bf16 %v5382_v13, %v5377_v21  ;;  %v2290_v30 = vsel %vm632_vm14, %v5387_v44, %v5381_v17  ;;  %4468 = vmatpush1.bf16.msra.mxu0 %v4467_v5  ;;  %v2291_v50 = vsel %vm632_vm14, %v5381_v17, %v5382_v13  ;;  %v4095_v17 = vld [vmem:[%s7246_s1 + $0xa8] sm:$0xff] }
 0xa27   : > { %v4469_v51 = vpack.c.bf16 %v2291_v50, %v2289_v43  ;;  %v4471_v52 = vpack.c.bf16 %v2290_v30, %v2288_v19  ;;  %v4099_v19 = vld [vmem:[%s7247_s2 + $0x58] sm:$0xff] }
 0xa28   : > { %4499 = vmatpush1.bf16.msra.mxu1 %v4498_v23  ;;  %v4098_v23 = vld [vmem:[%s7247_s2 + $0x50] sm:$0xff] }
 0xa29   : > { %4470 = vmatprep.subr.bf16.mxu0 %v4469_v51  ;;  %4536 = vmatprep.subr.bf16.mxu1 %v5756_v7 }
 0xa2a   : > { %4472 = vmatpush1.bf16.msra.mxu0 %v4471_v52 }
 0xa2b   : > { %2464 = vmatmul.mubr.f32.vlgmr.msra.gmra.mrb[22].mxu1 %v4084_v53 }
 0xa2c   : > { %4093 = vmatprep.mubr.msk.f32.mxu1 %vm659_vm6, %v4087_v57 }
 0xa2d   : > { %2387 = vmatmul.mubr.f32.vlgmr.msra.gmra.mrb[14].mxu0 %v4084_v53 }
 0xa2e   : > { %4091 = vmatprep.mubr.msk.f32.mxu0 %vm659_vm6, %v4087_v57 }
 0xa2f   : > { %2469 = vmatmul.mubr.f32.gmra.mrb[24].mxu1 %v4086_v58 }
 0xa30   : > { %4102 = vmatprep.mubr.msk.f32.mxu1 %vm659_vm6, %v4095_v17 }
 0xa31   : > { %2393 = vmatmul.mubr.f32.gmra.mrb[16].mxu0 %v4086_v58 }
 0xa32   : > { %4100 = vmatprep.mubr.msk.f32.mxu0 %vm659_vm6, %v4095_v17 }
 0xa33   : > { %v2314_v27 = vpop.permute.xlu1 %2313 }
 0xa34   : > { %v2309_v59 = vpop.permute.xlu0 %2308 }
 0xafe   : > { %v2465_v0 = vpop.f32.mrb[22].mxu1 }
 0xaff   : > { %v2466_v1 = vadd.f32 %v2465_v0, %v2309_v59  ;;  %v2467_v2 = vpop.f32.mrb[23].mxu1 }
 0xb00   : > { %v2388_v6 = vpop.f32.mrb[14].mxu0 }
 0xb01   : > { %v2476_v9 = vmax.f32 %v2466_v1, 0.0  ;;  %v2389_v15 = vadd.f32 %v2388_v6, %v2309_v59  ;;  %v2390_v18 = vpop.f32.mrb[15].mxu0 }
 0xb02   : > { %v2391_v20 = vadd.f32 %v2390_v18, %v2309_v59  ;;  %v2470_v22 = vpop.f32.mrb[24].mxu1 }
 0xb03   : > { %v2482_v24 = vmul.f32 %v2476_v9, %v6154_v55  ;;  %v2474_v25 = vmax.f32 %v2389_v15, 0.0  ;;  %v2472_v26 = vpop.f32.mrb[25].mxu1  ;;  %v2471_v37 = vadd.f32 %v2470_v22, %v2314_v27 }
 0xb04   : > { %v2475_v28 = vmax.f32 %v2391_v20, 0.0  ;;  %v2394_v31 = vpop.f32.mrb[16].mxu0 }
 0xb05   : > { %v2395_v32 = vadd.f32 %v2394_v31, %v2314_v27  ;;  %2496 = vrot.lane.b32.xlu0 %v2482_v24, %s5759_s8  ;;  %v2396_v33 = vpop.f32.mrb[17].mxu0  ;;  %v2480_v42 = vmul.f32 %v2474_v25, %v6144_v29  ;;  %v2479_v48 = vmax.f32 %v2471_v37, 0.0 }
 0xb06   : > { %v2481_v34 = vmul.f32 %v2475_v28, %v6147_v3  ;;  %v2397_v39 = vadd.f32 %v2396_v33, %v2314_v27 }
 0xb07   : > { %v2477_v45 = vmax.f32 %v2395_v32, 0.0  ;;  %v2485_v54 = vmul.f32 %v2479_v48, %v6154_v55 }
 0xb08   : > { %v2478_v46 = vmax.f32 %v2397_v39, 0.0  ;;  %2494 = vrot.lane.b32.xlu1 %v2481_v34, %s5759_s8 }
 0xb09   : > { %v2483_v47 = vmul.f32 %v2477_v45, %v6144_v29  ;;  %2492 = vrot.lane.b32.xlu0 %v2480_v42, %s5759_s8 }
 0xb0a   : > { %v2484_v40 = vmul.f32 %v2478_v46, %v6147_v3 }
 0xb0c   : > { %2498 = vrot.lane.b32.xlu1 %v2483_v47, %s5759_s8 }
 0xb0d   : > { %2500 = vrot.lane.b32.xlu0 %v2484_v40, %s5759_s8 }
 0xb10   : > { %2502 = vrot.lane.b32.xlu1 %v2485_v54, %s5759_s8 }
 0xb77   : > { %v2497_v56 = vpop.permute.xlu0 %2496 }
 0xb7a   : > { %v2495_v60 = vpop.permute.xlu1 %2494 }
 0xb7b   : > { %v2505_v61 = vsel %vm435_vm4, %v2495_v60, %v2497_v56  ;;  %v2493_v62 = vpop.permute.xlu0 %2492 }
 0xb7c   : > { %2516 = vst.msk [vmem:[#allocation2 + $0x10] sm:$0xff] %vm444_vm5, %v2505_v61  ;;  %v2504_v10 = vsel %vm435_vm4, %v2493_v62, %v2495_v60 }
 0xb7d   : > { %2514 = vst.msk [vmem:[#allocation2] sm:$0xff] %vm441_vm3, %v2493_v62 }
 0xb7e   : > { %v2499_v63 = vpop.permute.xlu1 %2498 }
 0xb7f   : > { %2517 = vst.msk [vmem:[#allocation2 + $0x18] sm:$0xff] %vm441_vm3, %v2499_v63  ;;  %v2501_v4 = vpop.permute.xlu0 %2500 }
 0xb80   : > { %v2506_v11 = vsel %vm435_vm4, %v2499_v63, %v2501_v4 }
 0xb81   : > { %v4500_v12 = vpack.c.bf16 %v2506_v11, %v2504_v10 }
 0xb82   : > { %v2503_v14 = vpop.permute.xlu1 %2502 }
 0xb83   : > { %v2507_v21 = vsel %vm435_vm4, %v2501_v4, %v2503_v14  ;;  %v2522_v16 = vld [vmem:[#allocation2 + $0x10] sm:$0xff]  ;;  %4501 = vmatprep.subr.bf16.mxu0 %v4500_v12 }
 0xb84   : > { %2519 = vst.msk [vmem:[#allocation2 + $0x28] sm:$0xff] %vm444_vm5, %v2507_v21  ;;  %v5393_v35 = vpack.i.bf16 %v2522_v16, %v2504_v10  ;;  %v2520_v38 = vld [vmem:[#allocation2] sm:$0xff] }
 0xb86   : > { %5394 = vrot.lane.b32.xlu1 %v5393_v35, %s5760_s9  ;;  %5389 = vrot.lane.b32.xlu0 %v5393_v35, %s5761_s10  ;;  %v2523_v41 = vld [vmem:[#allocation2 + $0x18] sm:$0xff] }
 0xb87   : > { %v4502_v44 = vpack.c.bf16 %v2523_v41, %v2520_v38  ;;  %v5413_v5 = vpack.i.bf16 %v2523_v41, %v2520_v38 }
 0xb89   : > { %4503 = vmatpush1.bf16.msra.mxu0 %v4502_v44 }
 0xb8a   : > { %5404 = vrot.lane.b32.xlu1 %v5393_v35, %s5762_s11  ;;  %5399 = vrot.lane.b32.xlu0 %v5393_v35, %s5763_s12 }
 0xb8b   : > { %v2525_v49 = vld [vmem:[#allocation2 + $0x28] sm:$0xff] }
 0xb8c   : > { %v4537_v36 = vpack.c.bf16 %v2525_v49, %v2522_v16  ;;  %v5423_v13 = vpack.i.bf16 %v2525_v49, %v2506_v11 }
 0xb8e   : > { %4538 = vmatpush1.bf16.msra.mxu1 %v4537_v36  ;;  %5414 = vrot.lane.b32.xlu1 %v5413_v5, %s5760_s9 }
 0xb8f   : > { %5409 = vrot.lane.b32.xlu0 %v5413_v5, %s5761_s10  ;;  %4539 = vmatprep.subr.bf16.mxu1 %v5756_v7 }
 0xb92   : > { %5424 = vrot.lane.b32.xlu1 %v5423_v13, %s5761_s10 }
 0xb93   : > { %5419 = vrot.lane.b32.xlu0 %v5413_v5, %s5763_s12 }
 0xb96   : > { %5429 = vrot.lane.b32.xlu1 %v5413_v5, %s5762_s11 }
 0xb97   : > { %5434 = vrot.lane.b32.xlu0 %v5393_v35, %s5764_s13 }
 0xb9a   : > { %5449 = vrot.lane.b32.xlu1 %v5423_v13, %s5763_s12 }
 0xb9b   : > { %5439 = vrot.lane.b32.xlu0 %v5423_v13, %s5760_s9 }
 0xb9e   : > { %5454 = vrot.lane.b32.xlu1 %v5393_v35, %s5765_s14 }
 0xb9f   : > { %5444 = vrot.lane.b32.xlu0 %v5413_v5, %s5764_s13 }
 0xba2   : > { %5464 = vrot.lane.b32.xlu1 %v5423_v13, %s5764_s13 }
 0xba3   : > { %5459 = vrot.lane.b32.xlu0 %v5423_v13, %s5762_s11 }
 0xba6   : > { %5469 = vrot.lane.b32.xlu1 %v5413_v5, %s5765_s14 }
 0xba7   : > { %5474 = vrot.lane.b32.xlu0 %v5393_v35, %s5766_s15 }
 0xbaa   : > { %5489 = vrot.lane.b32.xlu1 %v5423_v13, %s5766_s15 }
 0xbab   : > { %5479 = vrot.lane.b32.xlu0 %v5423_v13, %s5765_s14 }
 0xbae   : > { %5494 = vrot.lane.b32.xlu1 %v5393_v35, %s5767_s19 }
 0xbaf   : > { %5484 = vrot.lane.b32.xlu0 %v5413_v5, %s5766_s15 }
 0xbb2   : > { %5504 = vrot.lane.b32.xlu1 %v5413_v5, %s5767_s19 }
 0xbb3   : > { %5499 = vrot.lane.b32.xlu0 %v5423_v13, %s5767_s19 }
 0xbb6   : > { %2723 = vperm.xlu1 %4906, %v4099_v19  }
 0xbb7   : > { %2718 = vperm.xlu0 %4907, %v4098_v23  }
 0xbf8   : > { %v5395_v30 = vpop.permute.xlu1 %5394  ;;  %v5390_v43 = vpop.permute.xlu0 %5389 }
 0xbf9   : > { %v5392_v57 = vunpack.i.h.bf16 %v5390_v43  ;;  %v5391_v58 = vunpack.i.l.bf16 %v5390_v43  ;;  %v5397_v31 = vunpack.i.h.bf16 %v5395_v30  ;;  %v5396_v32 = vunpack.i.l.bf16 %v5395_v30 }
 0xbfb   : > { %v2545_v15 = vsel %vm471_vm7, %v5391_v58, %v5392_v57  ;;  %v2567_v60 = vsel %vm494_vm8, %v5396_v32, %v5397_v31 }
 0xbfc   : > { %v6690_v50 = vpop.permute.xlu1 %5404  ;;  %v5400_v51 = vpop.permute.xlu0 %5399 }
 0xbfd   : > { %v5402_v37 = vunpack.i.h.bf16 %v5400_v51  ;;  %v5401_v46 = vunpack.i.l.bf16 %v5400_v51  ;;  %v5407_v16 = vunpack.i.h.bf16 %v6690_v50  ;;  %v5406_v38 = vunpack.i.l.bf16 %v6690_v50 }
 0xbff   : > { %v2589_v35 = vsel %vm517_vm9, %v5401_v46, %v5402_v37 }
 0xc00   : > { %v5415_v52 = vpop.permute.xlu1 %5414 }
 0xc01   : > { %v5410_v53 = vpop.permute.xlu0 %5409  ;;  %v5416_v33 = vunpack.i.l.bf16 %v5415_v52  ;;  %v5417_v47 = vunpack.i.h.bf16 %v5415_v52 }
 0xc02   : > { %v5411_v59 = vunpack.i.l.bf16 %v5410_v53  ;;  %v5412_v1 = vunpack.i.h.bf16 %v5410_v53 }
 0xc03   : > { %v2566_v54 = vsel %vm494_vm8, %v5416_v33, %v5396_v32 }
 0xc04   : > { %v5425_v0 = vpop.permute.xlu1 %5424  ;;  %v2544_v18 = vsel %vm471_vm7, %v5411_v59, %v5391_v58 }
 0xc05   : > { %v5427_v2 = vunpack.i.h.bf16 %v5425_v0  ;;  %v5426_v6 = vunpack.i.l.bf16 %v5425_v0  ;;  %v5420_v9 = vpop.permute.xlu0 %5419  ;;  %v2611_v0 = vsel %vm540_vm10, %v5406_v38, %v5407_v16 }
 0xc06   : > { %v5421_v56 = vunpack.i.l.bf16 %v5420_v9  ;;  %v5422_v11 = vunpack.i.h.bf16 %v5420_v9 }
 0xc07   : > { %v2546_v20 = vsel %vm471_vm7, %v5412_v1, %v5426_v6  ;;  %v4540_v22 = vpack.c.bf16 %v5427_v2, %v5392_v57  ;;  %v2547_v24 = vsel %vm471_vm7, %v5426_v6, %v5427_v2 }
 0xc08   : > { %v4506_v25 = vpack.c.bf16 %v2546_v20, %v2544_v18  ;;  %v6696_v26 = vpop.permute.xlu1 %5429  ;;  %v4504_v27 = vpack.c.bf16 %v2547_v24, %v2545_v15  ;;  %v2588_v36 = vsel %vm517_vm9, %v5421_v56, %v5401_v46 }
 0xc09   : > { %v6698_v28 = vpop.permute.xlu0 %5434  ;;  %4541 = vmatpush1.bf16.msra.mxu1 %v4540_v22  ;;  %v5431_v41 = vunpack.i.l.bf16 %v6696_v26  ;;  %v5432_v17 = vunpack.i.h.bf16 %v6696_v26 }
 0xc0a   : > { %4505 = vmatprep.subr.bf16.mxu0 %v4504_v27  ;;  %4542 = vmatprep.subr.bf16.mxu1 %v5756_v7  ;;  %v5437_v19 = vunpack.i.h.bf16 %v6698_v28  ;;  %v5436_v50 = vunpack.i.l.bf16 %v6698_v28 }
 0xc0b   : > { %4507 = vmatpush1.bf16.msra.mxu0 %v4506_v25  ;;  %v2610_v57 = vsel %vm540_vm10, %v5431_v41, %v5406_v38 }
 0xc0c   : > { %v5450_v34 = vpop.permute.xlu1 %5449  ;;  %v2633_v25 = vsel %vm563_vm11, %v5436_v50, %v5437_v19 }
 0xc0d   : > { %v5452_v39 = vunpack.i.h.bf16 %v5450_v34  ;;  %v5451_v42 = vunpack.i.l.bf16 %v5450_v34  ;;  %v5440_v45 = vpop.permute.xlu0 %5439 }
 0xc0e   : > { %v5442_v48 = vunpack.i.h.bf16 %v5440_v45  ;;  %v5441_v40 = vunpack.i.l.bf16 %v5440_v45 }
 0xc0f   : > { %v2591_v10 = vsel %vm517_vm9, %v5451_v42, %v5452_v39  ;;  %v2590_v44 = vsel %vm517_vm9, %v5422_v11, %v5451_v42  ;;  %v4546_v5 = vpack.c.bf16 %v5452_v39, %v5402_v37 }
 0xc10   : > { %v4543_v61 = vpack.c.bf16 %v5442_v48, %v5397_v31  ;;  %v2568_v62 = vsel %vm494_vm8, %v5417_v47, %v5441_v40  ;;  %v6704_v63 = vpop.permute.xlu1 %5454  ;;  %v2569_v4 = vsel %vm494_vm8, %v5441_v40, %v5442_v48  ;;  %v4512_v49 = vpack.c.bf16 %v2591_v10, %v2589_v35 }
 0xc11   : > { %v4510_v12 = vpack.c.bf16 %v2568_v62, %v2566_v54  ;;  %v5445_v14 = vpop.permute.xlu0 %5444  ;;  %v4508_v21 = vpack.c.bf16 %v2569_v4, %v2567_v60  ;;  %v4514_v51 = vpack.c.bf16 %v2590_v44, %v2588_v36  ;;  %v5457_v26 = vunpack.i.h.bf16 %v6704_v63 }
 0xc12   : > { %4544 = vmatpush1.bf16.msra.mxu1 %v4543_v61  ;;  %v5447_v58 = vunpack.i.h.bf16 %v5445_v14  ;;  %v5446_v59 = vunpack.i.l.bf16 %v5445_v14  ;;  %v5456_v27 = vunpack.i.l.bf16 %v6704_v63 }
 0xc13   : > { %4509 = vmatprep.subr.bf16.mxu0 %v4508_v21  ;;  %4545 = vmatprep.subr.bf16.mxu1 %v5756_v7 }
 0xc14   : > { %4511 = vmatpush1.bf16.msra.mxu0 %v4510_v12  ;;  %v5465_v13 = vpop.permute.xlu1 %5464  ;;  %v2632_v32 = vsel %vm563_vm11, %v5446_v59, %v5436_v50  ;;  %v2655_v60 = vsel %vm586_vm12, %v5456_v27, %v5457_v26 }
 0xc15   : > { %v5467_v23 = vunpack.i.h.bf16 %v5465_v13  ;;  %v5466_v30 = vunpack.i.l.bf16 %v5465_v13  ;;  %v5460_v43 = vpop.permute.xlu0 %5459  ;;  %4513 = vmatprep.subr.bf16.mxu0 %v4512_v49 }
 0xc16   : > { %v5462_v52 = vunpack.i.h.bf16 %v5460_v43  ;;  %v5461_v53 = vunpack.i.l.bf16 %v5460_v43  ;;  %4547 = vmatpush1.bf16.msra.mxu1 %v4546_v5 }
 0xc17   : > { %4548 = vmatprep.subr.bf16.mxu1 %v5756_v7  ;;  %v2635_v15 = vsel %vm563_vm11, %v5466_v30, %v5467_v23  ;;  %v2634_v24 = vsel %vm563_vm11, %v5447_v58, %v5466_v30  ;;  %v4552_v33 = vpack.c.bf16 %v5467_v23, %v5437_v19 }
 0xc18   : > { %v4549_v1 = vpack.c.bf16 %v5462_v52, %v5407_v16  ;;  %v2612_v2 = vsel %vm540_vm10, %v5432_v17, %v5461_v53  ;;  %4515 = vmatpush1.bf16.msra.mxu0 %v4514_v51  ;;  %v5470_v6 = vpop.permute.xlu1 %5469  ;;  %v2613_v9 = vsel %vm540_vm10, %v5461_v53, %v5462_v52  ;;  %v4520_v31 = vpack.c.bf16 %v2635_v15, %v2633_v25 }
 0xc19   : > { %v4518_v18 = vpack.c.bf16 %v2612_v2, %v2610_v57  ;;  %v5475_v20 = vpop.permute.xlu0 %5474  ;;  %v4516_v22 = vpack.c.bf16 %v2613_v9, %v2611_v0  ;;  %v5471_v28 = vunpack.i.l.bf16 %v5470_v6  ;;  %v4522_v37 = vpack.c.bf16 %v2634_v24, %v2632_v32  ;;  %v4097_v2 = vld [vmem:[%s7246_s1 + $0xb8] sm:$0xff] }
 0xc1a   : > { %4550 = vmatpush1.bf16.msra.mxu1 %v4549_v1  ;;  %v5472_v39 = vunpack.i.h.bf16 %v5470_v6  ;;  %v5477_v47 = vunpack.i.h.bf16 %v5475_v20  ;;  %v5476_v48 = vunpack.i.l.bf16 %v5475_v20  ;;  %v4094_v1 = vld [vmem:[%s7246_s1 + $0xa0] sm:$0xff]  ;;  %v4096_v6 = vld [vmem:[%s7246_s1 + $0xb0] sm:$0xff] }
 0xc1b   : > { %4517 = vmatprep.subr.bf16.mxu0 %v4516_v22  ;;  %4551 = vmatprep.subr.bf16.mxu1 %v5756_v7  ;;  %v2654_v56 = vsel %vm586_vm12, %v5471_v28, %v5456_v27 }
 0xc1c   : > { %4519 = vmatpush1.bf16.msra.mxu0 %v4518_v18  ;;  %v5490_v34 = vpop.permute.xlu1 %5489  ;;  %v2677_v35 = vsel %vm609_vm13, %v5476_v48, %v5477_v47 }
 0xc1d   : > { %v5492_v42 = vunpack.i.h.bf16 %v5490_v34  ;;  %v5491_v45 = vunpack.i.l.bf16 %v5490_v34  ;;  %v5480_v46 = vpop.permute.xlu0 %5479  ;;  %4521 = vmatprep.subr.bf16.mxu0 %v4520_v31 }
 0xc1e   : > { %v5482_v40 = vunpack.i.h.bf16 %v5480_v46  ;;  %v5481_v54 = vunpack.i.l.bf16 %v5480_v46  ;;  %4553 = vmatpush1.bf16.msra.mxu1 %v4552_v33 }
 0xc1f   : > { %4554 = vmatprep.subr.bf16.mxu1 %v5756_v7  ;;  %v2679_v10 = vsel %vm609_vm13, %v5491_v45, %v5492_v42  ;;  %v4558_v38 = vpack.c.bf16 %v5492_v42, %v5477_v47 }
 0xc20   : > { %v4555_v61 = vpack.c.bf16 %v5482_v40, %v5457_v26  ;;  %v2656_v62 = vsel %vm586_vm12, %v5472_v39, %v5481_v54  ;;  %4523 = vmatpush1.bf16.msra.mxu0 %v4522_v37  ;;  %v5495_v63 = vpop.permute.xlu1 %5494  ;;  %v2657_v4 = vsel %vm586_vm12, %v5481_v54, %v5482_v40  ;;  %v4528_v41 = vpack.c.bf16 %v2679_v10, %v2677_v35 }
 0xc21   : > { %v4526_v11 = vpack.c.bf16 %v2656_v62, %v2654_v56  ;;  %v5485_v12 = vpop.permute.xlu0 %5484  ;;  %v4524_v14 = vpack.c.bf16 %v2657_v4, %v2655_v60  ;;  %v5497_v44 = vunpack.i.h.bf16 %v5495_v63  ;;  %v5496_v49 = vunpack.i.l.bf16 %v5495_v63 }
 0xc22   : > { %v5487_v21 = vunpack.i.h.bf16 %v5485_v12  ;;  %v5486_v16 = vunpack.i.l.bf16 %v5485_v12  ;;  %4556 = vmatpush1.bf16.msra.mxu1 %v4555_v61 }
 0xc23   : > { %4525 = vmatprep.subr.bf16.mxu0 %v4524_v14  ;;  %4557 = vmatprep.subr.bf16.mxu1 %v5756_v7  ;;  %v2699_v57 = vsel %vm632_vm14, %v5496_v49, %v5497_v44 }
 0xc24   : > { %v2678_v36 = vsel %vm609_vm13, %v5487_v21, %v5491_v45  ;;  %v2676_v5 = vsel %vm609_vm13, %v5486_v16, %v5476_v48  ;;  %4527 = vmatpush1.bf16.msra.mxu0 %v4526_v11  ;;  %v5505_v13 = vpop.permute.xlu1 %5504 }
 0xc25   : > { %v4530_v17 = vpack.c.bf16 %v2678_v36, %v2676_v5  ;;  %v5507_v19 = vunpack.i.h.bf16 %v5505_v13  ;;  %v5506_v23 = vunpack.i.l.bf16 %v5505_v13  ;;  %v5500_v30 = vpop.permute.xlu0 %5499  ;;  %4529 = vmatprep.subr.bf16.mxu0 %v4528_v41 }
 0xc26   : > { %v5502_v43 = vunpack.i.h.bf16 %v5500_v30  ;;  %v5501_v50 = vunpack.i.l.bf16 %v5500_v30  ;;  %4559 = vmatpush1.bf16.msra.mxu1 %v4558_v38 }
 0xc27   : > { %v2698_v51 = vsel %vm632_vm14, %v5506_v23, %v5496_v49  ;;  %4560 = vmatprep.subr.bf16.mxu1 %v5756_v7 }
 0xc28   : > { %v4561_v52 = vpack.c.bf16 %v5502_v43, %v5497_v44  ;;  %v2700_v53 = vsel %vm632_vm14, %v5507_v19, %v5501_v50  ;;  %4531 = vmatpush1.bf16.msra.mxu0 %v4530_v17  ;;  %v2701_v58 = vsel %vm632_vm14, %v5501_v50, %v5502_v43  ;;  %v4105_v50 = vld [vmem:[%s7246_s1 + $0xc8] sm:$0xff] }
 0xc29   : > { %v4534_v59 = vpack.c.bf16 %v2700_v53, %v2698_v51  ;;  %v4532_v0 = vpack.c.bf16 %v2701_v58, %v2699_v57  ;;  %v4109_v51 = vld [vmem:[%s7247_s2 + $0x68] sm:$0xff] }
 0xc2a   : > { %4562 = vmatpush1.bf16.msra.mxu1 %v4561_v52  ;;  %v4108_v52 = vld [vmem:[%s7247_s2 + $0x60] sm:$0xff] }
 0xc2b   : > { %4533 = vmatprep.subr.bf16.mxu0 %v4532_v0  ;;  %4599 = vmatprep.subr.bf16.mxu1 %v5756_v7 }
 0xc2c   : > { %4535 = vmatpush1.bf16.msra.mxu0 %v4534_v59 }
 0xc2d   : > { %2874 = vmatmul.mubr.f32.vlgmr.msra.gmra.mrb[26].mxu1 %v4094_v1 }
 0xc2e   : > { %4103 = vmatprep.mubr.msk.f32.mxu1 %vm659_vm6, %v4097_v2 }
 0xc2f   : > { %2797 = vmatmul.mubr.f32.vlgmr.msra.gmra.mrb[18].mxu0 %v4094_v1 }
 0xc30   : > { %4101 = vmatprep.mubr.msk.f32.mxu0 %vm659_vm6, %v4097_v2 }
 0xc31   : > { %2879 = vmatmul.mubr.f32.gmra.mrb[28].mxu1 %v4096_v6 }
 0xc32   : > { %4112 = vmatprep.mubr.msk.f32.mxu1 %vm659_vm6, %v4105_v50 }
 0xc33   : > { %2803 = vmatmul.mubr.f32.gmra.mrb[20].mxu0 %v4096_v6 }
 0xc34   : > { %4110 = vmatprep.mubr.msk.f32.mxu0 %vm659_vm6, %v4105_v50 }
 0xc35   : > { %v2724_v34 = vpop.permute.xlu1 %2723 }
 0xc36   : > { %v2719_v9 = vpop.permute.xlu0 %2718 }
 0xd00   : > { %v2875_v15 = vpop.f32.mrb[26].mxu1 }
 0xd01   : > { %v2876_v18 = vadd.f32 %v2875_v15, %v2719_v9  ;;  %v2877_v20 = vpop.f32.mrb[27].mxu1 }
 0xd02   : > { %v2798_v22 = vpop.f32.mrb[18].mxu0 }
 0xd03   : > { %v2886_v24 = vmax.f32 %v2876_v18, 0.0  ;;  %v2799_v25 = vadd.f32 %v2798_v22, %v2719_v9  ;;  %v2800_v26 = vpop.f32.mrb[19].mxu0 }
 0xd04   : > { %v2801_v27 = vadd.f32 %v2800_v26, %v2719_v9  ;;  %v2880_v28 = vpop.f32.mrb[28].mxu1 }
 0xd05   : > { %v2892_v31 = vmul.f32 %v2886_v24, %v6154_v55  ;;  %v2884_v32 = vmax.f32 %v2799_v25, 0.0  ;;  %v2882_v33 = vpop.f32.mrb[29].mxu1  ;;  %v2881_v47 = vadd.f32 %v2880_v28, %v2724_v34 }
 0xd06   : > { %v2885_v37 = vmax.f32 %v2801_v27, 0.0  ;;  %v2804_v39 = vpop.f32.mrb[20].mxu0 }
 0xd07   : > { %v2805_v42 = vadd.f32 %v2804_v39, %v2724_v34  ;;  %2906 = vrot.lane.b32.xlu0 %v2892_v31, %s5759_s8  ;;  %v2806_v45 = vpop.f32.mrb[21].mxu0  ;;  %v2890_v40 = vmul.f32 %v2884_v32, %v6144_v29  ;;  %v2889_v61 = vmax.f32 %v2881_v47, 0.0 }
 0xd08   : > { %v2891_v46 = vmul.f32 %v2885_v37, %v6147_v3  ;;  %v2807_v48 = vadd.f32 %v2806_v45, %v2724_v34 }
 0xd09   : > { %v2887_v54 = vmax.f32 %v2805_v42, 0.0  ;;  %v2895_v63 = vmul.f32 %v2889_v61, %v6154_v55 }
 0xd0a   : > { %v2888_v56 = vmax.f32 %v2807_v48, 0.0  ;;  %2904 = vrot.lane.b32.xlu1 %v2891_v46, %s5759_s8 }
 0xd0b   : > { %v2893_v60 = vmul.f32 %v2887_v54, %v6144_v29  ;;  %2902 = vrot.lane.b32.xlu0 %v2890_v40, %s5759_s8 }
 0xd0c   : > { %v2894_v62 = vmul.f32 %v2888_v56, %v6147_v3 }
 0xd0e   : > { %2908 = vrot.lane.b32.xlu1 %v2893_v60, %s5759_s8 }
 0xd0f   : > { %2910 = vrot.lane.b32.xlu0 %v2894_v62, %s5759_s8 }
 0xd12   : > { %2912 = vrot.lane.b32.xlu1 %v2895_v63, %s5759_s8 }
 0xd79   : > { %v2907_v4 = vpop.permute.xlu0 %2906 }
 0xd7c   : > { %v2905_v10 = vpop.permute.xlu1 %2904 }
 0xd7d   : > { %v2915_v11 = vsel %vm435_vm4, %v2905_v10, %v2907_v4  ;;  %v2903_v12 = vpop.permute.xlu0 %2902 }
 0xd7e   : > { %2926 = vst.msk [vmem:[#allocation2 + $0x10] sm:$0xff] %vm444_vm5, %v2915_v11  ;;  %v2914_v16 = vsel %vm435_vm4, %v2903_v12, %v2905_v10 }
 0xd7f   : > { %2924 = vst.msk [vmem:[#allocation2] sm:$0xff] %vm441_vm3, %v2903_v12 }
 0xd80   : > { %v2909_v14 = vpop.permute.xlu1 %2908 }
 0xd81   : > { %2927 = vst.msk [vmem:[#allocation2 + $0x18] sm:$0xff] %vm441_vm3, %v2909_v14  ;;  %v2911_v21 = vpop.permute.xlu0 %2910 }
 0xd82   : > { %v2916_v35 = vsel %vm435_vm4, %v2909_v14, %v2911_v21 }
 0xd83   : > { %v4563_v38 = vpack.c.bf16 %v2916_v35, %v2914_v16 }
 0xd84   : > { %v2913_v41 = vpop.permute.xlu1 %2912 }
 0xd85   : > { %v2917_v44 = vsel %vm435_vm4, %v2911_v21, %v2913_v41  ;;  %v2932_v49 = vld [vmem:[#allocation2 + $0x10] sm:$0xff]  ;;  %4564 = vmatprep.subr.bf16.mxu0 %v4563_v38 }
 0xd86   : > { %2929 = vst.msk [vmem:[#allocation2 + $0x28] sm:$0xff] %vm444_vm5, %v2917_v44  ;;  %v5513_v36 = vpack.i.bf16 %v2932_v49, %v2914_v16  ;;  %v2930_v5 = vld [vmem:[#allocation2] sm:$0xff] }
 0xd88   : > { %5514 = vrot.lane.b32.xlu1 %v5513_v36, %s5760_s9  ;;  %5509 = vrot.lane.b32.xlu0 %v5513_v36, %s5761_s10  ;;  %v2933_v13 = vld [vmem:[#allocation2 + $0x18] sm:$0xff] }
 0xd89   : > { %v4565_v17 = vpack.c.bf16 %v2933_v13, %v2930_v5  ;;  %v5533_v30 = vpack.i.bf16 %v2933_v13, %v2930_v5 }
 0xd8b   : > { %4566 = vmatpush1.bf16.msra.mxu0 %v4565_v17 }
 0xd8c   : > { %5524 = vrot.lane.b32.xlu1 %v5513_v36, %s5762_s11  ;;  %5519 = vrot.lane.b32.xlu0 %v5513_v36, %s5763_s12 }
 0xd8d   : > { %v2935_v19 = vld [vmem:[#allocation2 + $0x28] sm:$0xff] }
 0xd8e   : > { %v4600_v23 = vpack.c.bf16 %v2935_v19, %v2932_v49  ;;  %v5543_v43 = vpack.i.bf16 %v2935_v19, %v2916_v35 }
 0xd90   : > { %4601 = vmatpush1.bf16.msra.mxu1 %v4600_v23  ;;  %5534 = vrot.lane.b32.xlu1 %v5533_v30, %s5760_s9 }
 0xd91   : > { %5529 = vrot.lane.b32.xlu0 %v5533_v30, %s5761_s10  ;;  %4602 = vmatprep.subr.bf16.mxu1 %v5756_v7 }
 0xd94   : > { %5544 = vrot.lane.b32.xlu1 %v5543_v43, %s5761_s10 }
 0xd95   : > { %5539 = vrot.lane.b32.xlu0 %v5533_v30, %s5763_s12 }
 0xd98   : > { %5549 = vrot.lane.b32.xlu1 %v5533_v30, %s5762_s11 }
 0xd99   : > { %5554 = vrot.lane.b32.xlu0 %v5513_v36, %s5764_s13 }
 0xd9c   : > { %5569 = vrot.lane.b32.xlu1 %v5543_v43, %s5763_s12 }
 0xd9d   : > { %5559 = vrot.lane.b32.xlu0 %v5543_v43, %s5760_s9 }
 0xda0   : > { %5574 = vrot.lane.b32.xlu1 %v5513_v36, %s5765_s14 }
 0xda1   : > { %5564 = vrot.lane.b32.xlu0 %v5533_v30, %s5764_s13 }
 0xda4   : > { %5584 = vrot.lane.b32.xlu1 %v5543_v43, %s5764_s13 }
 0xda5   : > { %5579 = vrot.lane.b32.xlu0 %v5543_v43, %s5762_s11 }
 0xda8   : > { %5589 = vrot.lane.b32.xlu1 %v5533_v30, %s5765_s14 }
 0xda9   : > { %5594 = vrot.lane.b32.xlu0 %v5513_v36, %s5766_s15 }
 0xdac   : > { %5609 = vrot.lane.b32.xlu1 %v5543_v43, %s5766_s15 }
 0xdad   : > { %5599 = vrot.lane.b32.xlu0 %v5543_v43, %s5765_s14 }
 0xdb0   : > { %5614 = vrot.lane.b32.xlu1 %v5513_v36, %s5767_s19 }
 0xdb1   : > { %5604 = vrot.lane.b32.xlu0 %v5533_v30, %s5766_s15 }
 0xdb4   : > { %5624 = vrot.lane.b32.xlu1 %v5533_v30, %s5767_s19 }
 0xdb5   : > { %5619 = vrot.lane.b32.xlu0 %v5543_v43, %s5767_s19 }
 0xdb8   : > { %3133 = vperm.xlu1 %4906, %v4109_v51  }
 0xdb9   : > { %3128 = vperm.xlu0 %4907, %v4108_v52  }
 0xdfa   : > { %v5515_v53 = vpop.permute.xlu1 %5514  ;;  %v5510_v57 = vpop.permute.xlu0 %5509 }
 0xdfb   : > { %v5512_v2 = vunpack.i.h.bf16 %v5510_v57  ;;  %v5511_v6 = vunpack.i.l.bf16 %v5510_v57  ;;  %v5517_v39 = vunpack.i.h.bf16 %v5515_v53  ;;  %v5516_v42 = vunpack.i.l.bf16 %v5515_v53 }
 0xdfd   : > { %v2955_v25 = vsel %vm471_vm7, %v5511_v6, %v5512_v2  ;;  %v2977_v10 = vsel %vm494_vm8, %v5516_v42, %v5517_v39 }
 0xdfe   : > { %v6813_v58 = vpop.permute.xlu1 %5524  ;;  %v5520_v59 = vpop.permute.xlu0 %5519 }
 0xdff   : > { %v5522_v47 = vunpack.i.h.bf16 %v5520_v59  ;;  %v5521_v56 = vunpack.i.l.bf16 %v5520_v59  ;;  %v5527_v49 = vunpack.i.h.bf16 %v6813_v58  ;;  %v5526_v5 = vunpack.i.l.bf16 %v6813_v58 }
 0xe01   : > { %v2999_v36 = vsel %vm517_vm9, %v5521_v56, %v5522_v47 }
 0xe02   : > { %v5535_v0 = vpop.permute.xlu1 %5534 }
 0xe03   : > { %v5530_v1 = vpop.permute.xlu0 %5529  ;;  %v5536_v45 = vunpack.i.l.bf16 %v5535_v0  ;;  %v5537_v60 = vunpack.i.h.bf16 %v5535_v0 }
 0xe04   : > { %v5531_v9 = vunpack.i.l.bf16 %v5530_v1  ;;  %v5532_v18 = vunpack.i.h.bf16 %v5530_v1 }
 0xe05   : > { %v2976_v63 = vsel %vm494_vm8, %v5536_v45, %v5516_v42 }
 0xe06   : > { %v5545_v15 = vpop.permute.xlu1 %5544  ;;  %v2954_v26 = vsel %vm471_vm7, %v5531_v9, %v5511_v6 }
 0xe07   : > { %v5547_v20 = vunpack.i.h.bf16 %v5545_v15  ;;  %v5546_v22 = vunpack.i.l.bf16 %v5545_v15  ;;  %v5540_v24 = vpop.permute.xlu0 %5539  ;;  %v3021_v15 = vsel %vm540_vm10, %v5526_v5, %v5527_v49 }
 0xe08   : > { %v5541_v4 = vunpack.i.l.bf16 %v5540_v24  ;;  %v5542_v35 = vunpack.i.h.bf16 %v5540_v24 }
 0xe09   : > { %v2956_v27 = vsel %vm471_vm7, %v5532_v18, %v5546_v22  ;;  %v4603_v28 = vpack.c.bf16 %v5547_v20, %v5512_v2  ;;  %v2957_v31 = vsel %vm471_vm7, %v5546_v22, %v5547_v20 }
 0xe0a   : > { %v4569_v32 = vpack.c.bf16 %v2956_v27, %v2954_v26  ;;  %v6819_v33 = vpop.permute.xlu1 %5549  ;;  %v4567_v34 = vpack.c.bf16 %v2957_v31, %v2955_v25  ;;  %v2998_v23 = vsel %vm517_vm9, %v5541_v4, %v5521_v56 }
 0xe0b   : > { %v6821_v37 = vpop.permute.xlu0 %5554  ;;  %4604 = vmatpush1.bf16.msra.mxu1 %v4603_v28  ;;  %v5551_v13 = vunpack.i.l.bf16 %v6819_v33  ;;  %v5552_v50 = vunpack.i.h.bf16 %v6819_v33 }
 0xe0c   : > { %4568 = vmatprep.subr.bf16.mxu0 %v4567_v34  ;;  %4605 = vmatprep.subr.bf16.mxu1 %v5756_v7  ;;  %v5557_v51 = vunpack.i.h.bf16 %v6821_v37  ;;  %v5556_v58 = vunpack.i.l.bf16 %v6821_v37 }
 0xe0d   : > { %4570 = vmatpush1.bf16.msra.mxu0 %v4569_v32  ;;  %v3020_v2 = vsel %vm540_vm10, %v5551_v13, %v5526_v5 }
 0xe0e   : > { %v5570_v46 = vpop.permute.xlu1 %5569  ;;  %v3043_v32 = vsel %vm563_vm11, %v5556_v58, %v5557_v51 }
 0xe0f   : > { %v5572_v48 = vunpack.i.h.bf16 %v5570_v46  ;;  %v5571_v40 = vunpack.i.l.bf16 %v5570_v46  ;;  %v5560_v54 = vpop.permute.xlu0 %5559 }
 0xe10   : > { %v5562_v61 = vunpack.i.h.bf16 %v5560_v54  ;;  %v5561_v62 = vunpack.i.l.bf16 %v5560_v54 }
 0xe11   : > { %v3001_v16 = vsel %vm517_vm9, %v5571_v40, %v5572_v48  ;;  %v3000_v17 = vsel %vm517_vm9, %v5542_v35, %v5571_v40  ;;  %v4609_v30 = vpack.c.bf16 %v5572_v48, %v5522_v47 }
 0xe12   : > { %v4606_v11 = vpack.c.bf16 %v5562_v61, %v5517_v39  ;;  %v2978_v12 = vsel %vm494_vm8, %v5537_v60, %v5561_v62  ;;  %v6827_v14 = vpop.permute.xlu1 %5574  ;;  %v2979_v21 = vsel %vm494_vm8, %v5561_v62, %v5562_v61  ;;  %v4575_v19 = vpack.c.bf16 %v3001_v16, %v2999_v36 }
 0xe13   : > { %v4573_v38 = vpack.c.bf16 %v2978_v12, %v2976_v63  ;;  %v5565_v41 = vpop.permute.xlu0 %5564  ;;  %v4571_v44 = vpack.c.bf16 %v2979_v21, %v2977_v10  ;;  %v4577_v59 = vpack.c.bf16 %v3000_v17, %v2998_v23  ;;  %v5577_v33 = vunpack.i.h.bf16 %v6827_v14 }
 0xe14   : > { %4607 = vmatpush1.bf16.msra.mxu1 %v4606_v11  ;;  %v5567_v6 = vunpack.i.h.bf16 %v5565_v41  ;;  %v5566_v9 = vunpack.i.l.bf16 %v5565_v41  ;;  %v5576_v34 = vunpack.i.l.bf16 %v6827_v14 }
 0xe15   : > { %4572 = vmatprep.subr.bf16.mxu0 %v4571_v44  ;;  %4608 = vmatprep.subr.bf16.mxu1 %v5756_v7 }
 0xe16   : > { %4574 = vmatpush1.bf16.msra.mxu0 %v4573_v38  ;;  %v5585_v43 = vpop.permute.xlu1 %5584  ;;  %v3042_v42 = vsel %vm563_vm11, %v5566_v9, %v5556_v58  ;;  %v3065_v10 = vsel %vm586_vm12, %v5576_v34, %v5577_v33 }
 0xe17   : > { %v5587_v52 = vunpack.i.h.bf16 %v5585_v43  ;;  %v5586_v53 = vunpack.i.l.bf16 %v5585_v43  ;;  %v5580_v57 = vpop.permute.xlu0 %5579  ;;  %4576 = vmatprep.subr.bf16.mxu0 %v4575_v19 }
 0xe18   : > { %v5582_v0 = vunpack.i.h.bf16 %v5580_v57  ;;  %v5581_v1 = vunpack.i.l.bf16 %v5580_v57  ;;  %4610 = vmatpush1.bf16.msra.mxu1 %v4609_v30 }
 0xe19   : > { %4611 = vmatprep.subr.bf16.mxu1 %v5756_v7  ;;  %v3045_v25 = vsel %vm563_vm11, %v5586_v53, %v5587_v52  ;;  %v3044_v31 = vsel %vm563_vm11, %v5567_v6, %v5586_v53  ;;  %v4615_v45 = vpack.c.bf16 %v5587_v52, %v5557_v51 }
 0xe1a   : > { %v4612_v18 = vpack.c.bf16 %v5582_v0, %v5527_v49  ;;  %v3022_v20 = vsel %vm540_vm10, %v5552_v50, %v5581_v1  ;;  %4578 = vmatpush1.bf16.msra.mxu0 %v4577_v59  ;;  %v5590_v22 = vpop.permute.xlu1 %5589  ;;  %v3023_v24 = vsel %vm540_vm10, %v5581_v1, %v5582_v0  ;;  %v4583_v39 = vpack.c.bf16 %v3045_v25, %v3043_v32 }
 0xe1b   : > { %v4581_v26 = vpack.c.bf16 %v3022_v20, %v3020_v2  ;;  %v5595_v27 = vpop.permute.xlu0 %5594  ;;  %v4579_v28 = vpack.c.bf16 %v3023_v24, %v3021_v15  ;;  %v5591_v37 = vunpack.i.l.bf16 %v5590_v22  ;;  %v4585_v47 = vpack.c.bf16 %v3044_v31, %v3042_v42  ;;  %v4107_v20 = vld [vmem:[%s7246_s1 + $0xd8] sm:$0xff] }
 0xe1c   : > { %4613 = vmatpush1.bf16.msra.mxu1 %v4612_v18  ;;  %v5592_v48 = vunpack.i.h.bf16 %v5590_v22  ;;  %v5597_v60 = vunpack.i.h.bf16 %v5595_v27  ;;  %v5596_v61 = vunpack.i.l.bf16 %v5595_v27  ;;  %v4104_v18 = vld [vmem:[%s7246_s1 + $0xc0] sm:$0xff]  ;;  %v4106_v22 = vld [vmem:[%s7246_s1 + $0xd0] sm:$0xff] }
 0xe1d   : > { %4580 = vmatprep.subr.bf16.mxu0 %v4579_v28  ;;  %4614 = vmatprep.subr.bf16.mxu1 %v5756_v7  ;;  %v3064_v4 = vsel %vm586_vm12, %v5591_v37, %v5576_v34 }
 0xe1e   : > { %4582 = vmatpush1.bf16.msra.mxu0 %v4581_v26  ;;  %v5610_v46 = vpop.permute.xlu1 %5609  ;;  %v3087_v36 = vsel %vm609_vm13, %v5596_v61, %v5597_v60 }
 0xe1f   : > { %v5612_v40 = vunpack.i.h.bf16 %v5610_v46  ;;  %v5611_v54 = vunpack.i.l.bf16 %v5610_v46  ;;  %v5600_v56 = vpop.permute.xlu0 %5599  ;;  %4584 = vmatprep.subr.bf16.mxu0 %v4583_v39 }
 0xe20   : > { %v5602_v62 = vunpack.i.h.bf16 %v5600_v56  ;;  %v5601_v63 = vunpack.i.l.bf16 %v5600_v56  ;;  %4616 = vmatpush1.bf16.msra.mxu1 %v4615_v45 }
 0xe21   : > { %4617 = vmatprep.subr.bf16.mxu1 %v5756_v7  ;;  %v3089_v16 = vsel %vm609_vm13, %v5611_v54, %v5612_v40  ;;  %v4621_v5 = vpack.c.bf16 %v5612_v40, %v5597_v60 }
 0xe22   : > { %v4618_v11 = vpack.c.bf16 %v5602_v62, %v5577_v33  ;;  %v3066_v12 = vsel %vm586_vm12, %v5592_v48, %v5601_v63  ;;  %4586 = vmatpush1.bf16.msra.mxu0 %v4585_v47  ;;  %v5615_v14 = vpop.permute.xlu1 %5614  ;;  %v3067_v21 = vsel %vm586_vm12, %v5601_v63, %v5602_v62  ;;  %v4591_v13 = vpack.c.bf16 %v3089_v16, %v3087_v36 }
 0xe23   : > { %v4589_v35 = vpack.c.bf16 %v3066_v12, %v3064_v4  ;;  %v5605_v38 = vpop.permute.xlu0 %5604  ;;  %v4587_v41 = vpack.c.bf16 %v3067_v21, %v3065_v10  ;;  %v5617_v17 = vunpack.i.h.bf16 %v5615_v14  ;;  %v5616_v19 = vunpack.i.l.bf16 %v5615_v14 }
 0xe24   : > { %v5607_v44 = vunpack.i.h.bf16 %v5605_v38  ;;  %v5606_v49 = vunpack.i.l.bf16 %v5605_v38  ;;  %4619 = vmatpush1.bf16.msra.mxu1 %v4618_v11 }
 0xe25   : > { %4588 = vmatprep.subr.bf16.mxu0 %v4587_v41  ;;  %4620 = vmatprep.subr.bf16.mxu1 %v5756_v7  ;;  %v3109_v2 = vsel %vm632_vm14, %v5616_v19, %v5617_v17 }
 0xe26   : > { %v3088_v23 = vsel %vm609_vm13, %v5607_v44, %v5611_v54  ;;  %v3086_v30 = vsel %vm609_vm13, %v5606_v49, %v5596_v61  ;;  %4590 = vmatpush1.bf16.msra.mxu0 %v4589_v35  ;;  %v5625_v43 = vpop.permute.xlu1 %5624 }
 0xe27   : > { %v4593_v50 = vpack.c.bf16 %v3088_v23, %v3086_v30  ;;  %v5627_v51 = vunpack.i.h.bf16 %v5625_v43  ;;  %v5626_v52 = vunpack.i.l.bf16 %v5625_v43  ;;  %v5620_v53 = vpop.permute.xlu0 %5619  ;;  %4592 = vmatprep.subr.bf16.mxu0 %v4591_v13 }
 0xe28   : > { %v5622_v57 = vunpack.i.h.bf16 %v5620_v53  ;;  %v5621_v58 = vunpack.i.l.bf16 %v5620_v53  ;;  %4622 = vmatpush1.bf16.msra.mxu1 %v4621_v5 }
 0xe29   : > { %v3108_v59 = vsel %vm632_vm14, %v5626_v52, %v5616_v19  ;;  %4623 = vmatprep.subr.bf16.mxu1 %v5756_v7 }
 0xe2a   : > { %v4624_v0 = vpack.c.bf16 %v5622_v57, %v5617_v17  ;;  %v3110_v1 = vsel %vm632_vm14, %v5627_v51, %v5621_v58  ;;  %4594 = vmatpush1.bf16.msra.mxu0 %v4593_v50  ;;  %v3111_v6 = vsel %vm632_vm14, %v5621_v58, %v5622_v57  ;;  %v4115_v58 = vld [vmem:[%s7246_s1 + $0xe8] sm:$0xff] }
 0xe2b   : > { %v4597_v9 = vpack.c.bf16 %v3110_v1, %v3108_v59  ;;  %v4595_v15 = vpack.c.bf16 %v3111_v6, %v3109_v2  ;;  %v4119_v59 = vld [vmem:[%s7247_s2 + $0x78] sm:$0xff] }
 0xe2c   : > { %4625 = vmatpush1.bf16.msra.mxu1 %v4624_v0  ;;  %v4118_v0 = vld [vmem:[%s7247_s2 + $0x70] sm:$0xff] }
 0xe2d   : > { %4596 = vmatprep.subr.bf16.mxu0 %v4595_v15  ;;  %4662 = vmatprep.subr.bf16.mxu1 %v5756_v7 }
 0xe2e   : > { %4598 = vmatpush1.bf16.msra.mxu0 %v4597_v9 }
 0xe2f   : > { %3284 = vmatmul.mubr.f32.vlgmr.msra.gmra.mrb[30].mxu1 %v4104_v18 }
 0xe30   : > { %4113 = vmatprep.mubr.msk.f32.mxu1 %vm659_vm6, %v4107_v20 }
 0xe31   : > { %3207 = vmatmul.mubr.f32.vlgmr.msra.gmra.mrb[22].mxu0 %v4104_v18 }
 0xe32   : > { %4111 = vmatprep.mubr.msk.f32.mxu0 %vm659_vm6, %v4107_v20 }
 0xe33   : > { %3289 = vmatmul.mubr.f32.gmra.mrb[32].mxu1 %v4106_v22 }
 0xe34   : > { %4122 = vmatprep.mubr.msk.f32.mxu1 %vm659_vm6, %v4115_v58 }
 0xe35   : > { %3213 = vmatmul.mubr.f32.gmra.mrb[24].mxu0 %v4106_v22 }
 0xe36   : > { %4120 = vmatprep.mubr.msk.f32.mxu0 %vm659_vm6, %v4115_v58 }
 0xe37   : > { %v3134_v46 = vpop.permute.xlu1 %3133 }
 0xe38   : > { %v3129_v24 = vpop.permute.xlu0 %3128 }
 0xf02   : > { %v3285_v25 = vpop.f32.mrb[30].mxu1 }
 0xf03   : > { %v3286_v26 = vadd.f32 %v3285_v25, %v3129_v24  ;;  %v3287_v27 = vpop.f32.mrb[31].mxu1 }
 0xf04   : > { %v3208_v28 = vpop.f32.mrb[22].mxu0 }
 0xf05   : > { %v3296_v31 = vmax.f32 %v3286_v26, 0.0  ;;  %v3209_v32 = vadd.f32 %v3208_v28, %v3129_v24  ;;  %v3210_v33 = vpop.f32.mrb[23].mxu0 }
 0xf06   : > { %v3211_v34 = vadd.f32 %v3210_v33, %v3129_v24  ;;  %v3290_v37 = vpop.f32.mrb[32].mxu1 }
 0xf07   : > { %v3302_v39 = vmul.f32 %v3296_v31, %v6154_v55  ;;  %v3294_v42 = vmax.f32 %v3209_v32, 0.0  ;;  %v3292_v45 = vpop.f32.mrb[33].mxu1  ;;  %v3291_v60 = vadd.f32 %v3290_v37, %v3134_v46 }
 0xf08   : > { %v3295_v47 = vmax.f32 %v3211_v34, 0.0  ;;  %v3214_v48 = vpop.f32.mrb[24].mxu0 }
 0xf09   : > { %v3215_v40 = vadd.f32 %v3214_v48, %v3134_v46  ;;  %3316 = vrot.lane.b32.xlu0 %v3302_v39, %s5759_s8  ;;  %v3216_v54 = vpop.f32.mrb[25].mxu0  ;;  %v3300_v62 = vmul.f32 %v3294_v42, %v6144_v29  ;;  %v3299_v11 = vmax.f32 %v3291_v60, 0.0 }
 0xf0a   : > { %v3301_v56 = vmul.f32 %v3295_v47, %v6147_v3  ;;  %v3217_v61 = vadd.f32 %v3216_v54, %v3134_v46 }
 0xf0b   : > { %v3297_v63 = vmax.f32 %v3215_v40, 0.0  ;;  %v3305_v14 = vmul.f32 %v3299_v11, %v6154_v55 }
 0xf0c   : > { %v3298_v4 = vmax.f32 %v3217_v61, 0.0  ;;  %3314 = vrot.lane.b32.xlu1 %v3301_v56, %s5759_s8 }
 0xf0d   : > { %v3303_v10 = vmul.f32 %v3297_v63, %v6144_v29  ;;  %3312 = vrot.lane.b32.xlu0 %v3300_v62, %s5759_s8 }
 0xf0e   : > { %v3304_v12 = vmul.f32 %v3298_v4, %v6147_v3 }
 0xf10   : > { %3318 = vrot.lane.b32.xlu1 %v3303_v10, %s5759_s8 }
 0xf11   : > { %3320 = vrot.lane.b32.xlu0 %v3304_v12, %s5759_s8 }
 0xf14   : > { %3322 = vrot.lane.b32.xlu1 %v3305_v14, %s5759_s8 }
 0xf7b   : > { %v3317_v21 = vpop.permute.xlu0 %3316 }
 0xf7e   : > { %v3315_v16 = vpop.permute.xlu1 %3314 }
 0xf7f   : > { %v3325_v35 = vsel %vm435_vm4, %v3315_v16, %v3317_v21  ;;  %v3313_v38 = vpop.permute.xlu0 %3312 }
 0xf80   : > { %3336 = vst.msk [vmem:[#allocation2 + $0x10] sm:$0xff] %vm444_vm5, %v3325_v35  ;;  %v3324_v49 = vsel %vm435_vm4, %v3313_v38, %v3315_v16 }
 0xf81   : > { %3334 = vst.msk [vmem:[#allocation2] sm:$0xff] %vm441_vm3, %v3313_v38 }
 0xf82   : > { %v3319_v41 = vpop.permute.xlu1 %3318 }
 0xf83   : > { %3337 = vst.msk [vmem:[#allocation2 + $0x18] sm:$0xff] %vm441_vm3, %v3319_v41  ;;  %v3321_v44 = vpop.permute.xlu0 %3320 }
 0xf84   : > { %v3326_v36 = vsel %vm435_vm4, %v3319_v41, %v3321_v44 }
 0xf85   : > { %v4626_v5 = vpack.c.bf16 %v3326_v36, %v3324_v49 }
 0xf86   : > { %v3323_v13 = vpop.permute.xlu1 %3322 }
 0xf87   : > { %v3327_v17 = vsel %vm435_vm4, %v3321_v44, %v3323_v13  ;;  %v3342_v19 = vld [vmem:[#allocation2 + $0x10] sm:$0xff]  ;;  %4627 = vmatprep.subr.bf16.mxu0 %v4626_v5 }
 0xf88   : > { %3339 = vst.msk [vmem:[#allocation2 + $0x28] sm:$0xff] %vm444_vm5, %v3327_v17  ;;  %v5633_v23 = vpack.i.bf16 %v3342_v19, %v3324_v49  ;;  %v3340_v30 = vld [vmem:[#allocation2] sm:$0xff] }
 0xf8a   : > { %5634 = vrot.lane.b32.xlu1 %v5633_v23, %s5760_s9  ;;  %5629 = vrot.lane.b32.xlu0 %v5633_v23, %s5761_s10  ;;  %v3343_v43 = vld [vmem:[#allocation2 + $0x18] sm:$0xff] }
 0xf8b   : > { %v4628_v50 = vpack.c.bf16 %v3343_v43, %v3340_v30  ;;  %v5653_v53 = vpack.i.bf16 %v3343_v43, %v3340_v30 }
 0xf8d   : > { %4629 = vmatpush1.bf16.msra.mxu0 %v4628_v50 }
 0xf8e   : > { %5644 = vrot.lane.b32.xlu1 %v5633_v23, %s5762_s11  ;;  %5639 = vrot.lane.b32.xlu0 %v5633_v23, %s5763_s12 }
 0xf8f   : > { %v3345_v51 = vld [vmem:[#allocation2 + $0x28] sm:$0xff] }
 0xf90   : > { %v4663_v52 = vpack.c.bf16 %v3345_v51, %v3342_v19  ;;  %v5663_v57 = vpack.i.bf16 %v3345_v51, %v3326_v36 }
 0xf92   : > { %4664 = vmatpush1.bf16.msra.mxu1 %v4663_v52  ;;  %5654 = vrot.lane.b32.xlu1 %v5653_v53, %s5760_s9 }
 0xf93   : > { %5649 = vrot.lane.b32.xlu0 %v5653_v53, %s5761_s10  ;;  %4665 = vmatprep.subr.bf16.mxu1 %v5756_v7 }
 0xf96   : > { %5664 = vrot.lane.b32.xlu1 %v5663_v57, %s5761_s10 }
 0xf97   : > { %5659 = vrot.lane.b32.xlu0 %v5653_v53, %s5763_s12 }
 0xf9a   : > { %5669 = vrot.lane.b32.xlu1 %v5653_v53, %s5762_s11 }
 0xf9b   : > { %5674 = vrot.lane.b32.xlu0 %v5633_v23, %s5764_s13 }
 0xf9e   : > { %5689 = vrot.lane.b32.xlu1 %v5663_v57, %s5763_s12 }
 0xf9f   : > { %5679 = vrot.lane.b32.xlu0 %v5663_v57, %s5760_s9 }
 0xfa2   : > { %5694 = vrot.lane.b32.xlu1 %v5633_v23, %s5765_s14 }
 0xfa3   : > { %5684 = vrot.lane.b32.xlu0 %v5653_v53, %s5764_s13 }
 0xfa6   : > { %5704 = vrot.lane.b32.xlu1 %v5663_v57, %s5764_s13 }
 0xfa7   : > { %5699 = vrot.lane.b32.xlu0 %v5663_v57, %s5762_s11 }
 0xfaa   : > { %5709 = vrot.lane.b32.xlu1 %v5653_v53, %s5765_s14 }
 0xfab   : > { %5714 = vrot.lane.b32.xlu0 %v5633_v23, %s5766_s15 }
 0xfae   : > { %5729 = vrot.lane.b32.xlu1 %v5663_v57, %s5766_s15 }
 0xfaf   : > { %5719 = vrot.lane.b32.xlu0 %v5663_v57, %s5765_s14 }
 0xfb2   : > { %5734 = vrot.lane.b32.xlu1 %v5633_v23, %s5767_s19 }
 0xfb3   : > { %5724 = vrot.lane.b32.xlu0 %v5653_v53, %s5766_s15 }
 0xfb6   : > { %5744 = vrot.lane.b32.xlu1 %v5653_v53, %s5767_s19 }
 0xfb7   : > { %5739 = vrot.lane.b32.xlu0 %v5663_v57, %s5767_s19 }
 0xfba   : > { %3543 = vperm.xlu1 %4906, %v4119_v59  }
 0xfbb   : > { %3538 = vperm.xlu0 %4907, %v4118_v0  }
 0xffc   : > { %v5635_v1 = vpop.permute.xlu1 %5634  ;;  %v5630_v2 = vpop.permute.xlu0 %5629 }
 0xffd   : > { %v5632_v20 = vunpack.i.h.bf16 %v5630_v2  ;;  %v5631_v22 = vunpack.i.l.bf16 %v5630_v2  ;;  %v5637_v48 = vunpack.i.h.bf16 %v5635_v1  ;;  %v5636_v40 = vunpack.i.l.bf16 %v5635_v1 }
 0xfff   : > { %v3365_v32 = vsel %vm471_vm7, %v5631_v22, %v5632_v20  ;;  %v3387_v16 = vsel %vm494_vm8, %v5636_v40, %v5637_v48 }
0x1000   : > { %v6936_v6 = vpop.permute.xlu1 %5644  ;;  %v5640_v9 = vpop.permute.xlu0 %5639 }
0x1001   : > { %v5642_v60 = vunpack.i.h.bf16 %v5640_v9  ;;  %v5641_v4 = vunpack.i.l.bf16 %v5640_v9  ;;  %v5647_v19 = vunpack.i.h.bf16 %v6936_v6  ;;  %v5646_v30 = vunpack.i.l.bf16 %v6936_v6 }
0x1003   : > { %v3409_v23 = vsel %vm517_vm9, %v5641_v4, %v5642_v60 }
0x1004   : > { %v5655_v15 = vpop.permute.xlu1 %5654 }
0x1005   : > { %v5650_v18 = vpop.permute.xlu0 %5649  ;;  %v5656_v54 = vunpack.i.l.bf16 %v5655_v15  ;;  %v5657_v10 = vunpack.i.h.bf16 %v5655_v15 }
0x1006   : > { %v5651_v24 = vunpack.i.l.bf16 %v5650_v18  ;;  %v5652_v26 = vunpack.i.h.bf16 %v5650_v18 }
0x1007   : > { %v3386_v14 = vsel %vm494_vm8, %v5656_v54, %v5636_v40 }
0x1008   : > { %v5665_v25 = vpop.permute.xlu1 %5664  ;;  %v3364_v33 = vsel %vm471_vm7, %v5651_v24, %v5631_v22 }
0x1009   : > { %v5667_v27 = vunpack.i.h.bf16 %v5665_v25  ;;  %v5666_v28 = vunpack.i.l.bf16 %v5665_v25  ;;  %v5660_v31 = vpop.permute.xlu0 %5659  ;;  %v3431_v25 = vsel %vm540_vm10, %v5646_v30, %v5647_v19 }
0x100a   : > { %v5661_v21 = vunpack.i.l.bf16 %v5660_v31  ;;  %v5662_v36 = vunpack.i.h.bf16 %v5660_v31 }
0x100b   : > { %v3366_v34 = vsel %vm471_vm7, %v5652_v26, %v5666_v28  ;;  %v4666_v37 = vpack.c.bf16 %v5667_v27, %v5632_v20  ;;  %v3367_v39 = vsel %vm471_vm7, %v5666_v28, %v5667_v27 }
0x100c   : > { %v4632_v42 = vpack.c.bf16 %v3366_v34, %v3364_v33  ;;  %v6942_v45 = vpop.permute.xlu1 %5669  ;;  %v4630_v46 = vpack.c.bf16 %v3367_v39, %v3365_v32  ;;  %v3408_v52 = vsel %vm517_vm9, %v5661_v21, %v5641_v4 }
0x100d   : > { %v6944_v47 = vpop.permute.xlu0 %5674  ;;  %4667 = vmatpush1.bf16.msra.mxu1 %v4666_v37  ;;  %v5671_v43 = vunpack.i.l.bf16 %v6942_v45  ;;  %v5672_v58 = vunpack.i.h.bf16 %v6942_v45 }
0x100e   : > { %4631 = vmatprep.subr.bf16.mxu0 %v4630_v46  ;;  %4668 = vmatprep.subr.bf16.mxu1 %v5756_v7  ;;  %v5677_v59 = vunpack.i.h.bf16 %v6944_v47  ;;  %v5676_v6 = vunpack.i.l.bf16 %v6944_v47 }
0x100f   : > { %4633 = vmatpush1.bf16.msra.mxu0 %v4632_v42  ;;  %v3430_v20 = vsel %vm540_vm10, %v5671_v43, %v5646_v30 }
0x1010   : > { %v5690_v56 = vpop.permute.xlu1 %5689  ;;  %v3453_v42 = vsel %vm563_vm11, %v5676_v6, %v5677_v59 }
0x1011   : > { %v5692_v61 = vunpack.i.h.bf16 %v5690_v56  ;;  %v5691_v62 = vunpack.i.l.bf16 %v5690_v56  ;;  %v5680_v63 = vpop.permute.xlu0 %5679 }
0x1012   : > { %v5682_v11 = vunpack.i.h.bf16 %v5680_v63  ;;  %v5681_v12 = vunpack.i.l.bf16 %v5680_v63 }
0x1013   : > { %v3411_v49 = vsel %vm517_vm9, %v5691_v62, %v5692_v61  ;;  %v3410_v50 = vsel %vm517_vm9, %v5662_v36, %v5691_v62  ;;  %v4672_v53 = vpack.c.bf16 %v5692_v61, %v5642_v60 }
0x1014   : > { %v4669_v35 = vpack.c.bf16 %v5682_v11, %v5637_v48  ;;  %v3388_v38 = vsel %vm494_vm8, %v5657_v10, %v5681_v12  ;;  %v6950_v41 = vpop.permute.xlu1 %5694  ;;  %v3389_v44 = vsel %vm494_vm8, %v5681_v12, %v5682_v11  ;;  %v4638_v51 = vpack.c.bf16 %v3411_v49, %v3409_v23 }
0x1015   : > { %v4636_v5 = vpack.c.bf16 %v3388_v38, %v3386_v14  ;;  %v5685_v13 = vpop.permute.xlu0 %5684  ;;  %v4634_v17 = vpack.c.bf16 %v3389_v44, %v3387_v16  ;;  %v4640_v9 = vpack.c.bf16 %v3410_v50, %v3408_v52  ;;  %v5697_v45 = vunpack.i.h.bf16 %v6950_v41 }
0x1016   : > { %4670 = vmatpush1.bf16.msra.mxu1 %v4669_v35  ;;  %v5687_v22 = vunpack.i.h.bf16 %v5685_v13  ;;  %v5686_v24 = vunpack.i.l.bf16 %v5685_v13  ;;  %v5696_v46 = vunpack.i.l.bf16 %v6950_v41 }
0x1017   : > { %4635 = vmatprep.subr.bf16.mxu0 %v4634_v17  ;;  %4671 = vmatprep.subr.bf16.mxu1 %v5756_v7 }
0x1018   : > { %4637 = vmatpush1.bf16.msra.mxu0 %v4636_v5  ;;  %v5705_v57 = vpop.permute.xlu1 %5704  ;;  %v3452_v40 = vsel %vm563_vm11, %v5686_v24, %v5676_v6  ;;  %v3475_v16 = vsel %vm586_vm12, %v5696_v46, %v5697_v45 }
0x1019   : > { %v5707_v0 = vunpack.i.h.bf16 %v5705_v57  ;;  %v5706_v1 = vunpack.i.l.bf16 %v5705_v57  ;;  %v5700_v2 = vpop.permute.xlu0 %5699  ;;  %4639 = vmatprep.subr.bf16.mxu0 %v4638_v51 }
0x101a   : > { %v5702_v15 = vunpack.i.h.bf16 %v5700_v2  ;;  %v5701_v18 = vunpack.i.l.bf16 %v5700_v2  ;;  %4673 = vmatpush1.bf16.msra.mxu1 %v4672_v53 }
0x101b   : > { %4674 = vmatprep.subr.bf16.mxu1 %v5756_v7  ;;  %v3455_v32 = vsel %vm563_vm11, %v5706_v1, %v5707_v0  ;;  %v3454_v39 = vsel %vm563_vm11, %v5687_v22, %v5706_v1  ;;  %v4678_v54 = vpack.c.bf16 %v5707_v0, %v5677_v59 }
0x101c   : > { %v4675_v26 = vpack.c.bf16 %v5702_v15, %v5647_v19  ;;  %v3432_v27 = vsel %vm540_vm10, %v5672_v58, %v5701_v18  ;;  %4641 = vmatpush1.bf16.msra.mxu0 %v4640_v9  ;;  %v5710_v28 = vpop.permute.xlu1 %5709  ;;  %v3433_v31 = vsel %vm540_vm10, %v5701_v18, %v5702_v15  ;;  %v4646_v48 = vpack.c.bf16 %v3455_v32, %v3453_v42  ;;  %v3751_v9 = vld [vmem:[%s7250_s5 + $0x8] sm:$0xff]  ;;  %v3753_v15 = vld [vmem:[%s7250_s5 + $0x18] sm:$0xff]  ;;  %v3752_v32 = vld [vmem:[%s7250_s5 + $0x10] sm:$0xff] }
0x101d   : > { %v4644_v33 = vpack.c.bf16 %v3432_v27, %v3430_v20  ;;  %v5715_v34 = vpop.permute.xlu0 %5714  ;;  %v4642_v37 = vpack.c.bf16 %v3433_v31, %v3431_v25  ;;  %v5711_v47 = vunpack.i.l.bf16 %v5710_v28  ;;  %v4648_v60 = vpack.c.bf16 %v3454_v39, %v3452_v40  ;;  %v3750_v31 = vld [vmem:[%s7250_s5] sm:$0xff]  ;;  %v3761_v40 = vld [vmem:[%s7250_s5 + $0x58] sm:$0xff] }
0x101e   : > { %4676 = vmatpush1.bf16.msra.mxu1 %v4675_v26  ;;  %v5712_v61 = vunpack.i.h.bf16 %v5710_v28  ;;  %v5717_v10 = vunpack.i.h.bf16 %v5715_v34  ;;  %v5716_v11 = vunpack.i.l.bf16 %v5715_v34  ;;  %v4689_v28 = vpack.c.bf16 %v3753_v15, %v3751_v9  ;;  %v3757_v34 = vld [vmem:[%s7250_s5 + $0x38] sm:$0xff]  ;;  %v3782_v15 = vld [vmem:[%s7250_s5 + $0x100] sm:$0xff] }
0x101f   : > { %4643 = vmatprep.subr.bf16.mxu0 %v4642_v37  ;;  %4677 = vmatprep.subr.bf16.mxu1 %v5756_v7  ;;  %v3474_v21 = vsel %vm586_vm12, %v5711_v47, %v5696_v46  ;;  %v4117_v37 = vld [vmem:[%s7246_s1 + $0xf8] sm:$0xff]  ;;  %v4691_v39 = vpack.c.bf16 %v3752_v32, %v3750_v31  ;;  %v3756_v46 = vld [vmem:[%s7250_s5 + $0x30] sm:$0xff] }
0x1020   : > { %4645 = vmatpush1.bf16.msra.mxu0 %v4644_v33  ;;  %v5730_v56 = vpop.permute.xlu1 %5729  ;;  %v3497_v23 = vsel %vm609_vm13, %v5716_v11, %v5717_v10  ;;  %v3755_v33 = vld [vmem:[%s7250_s5 + $0x28] sm:$0xff]  ;;  %v4116_v47 = vld [vmem:[%s7246_s1 + $0xf0] sm:$0xff]  ;;  %v3793_v31 = vld [vmem:[%s7250_s5 + $0x158] sm:$0xff] }
0x1021   : > { %v5732_v62 = vunpack.i.h.bf16 %v5730_v56  ;;  %v5731_v63 = vunpack.i.l.bf16 %v5730_v56  ;;  %v5720_v4 = vpop.permute.xlu0 %5719  ;;  %4647 = vmatprep.subr.bf16.mxu0 %v4646_v48  ;;  %v4693_v42 = vpack.c.bf16 %v3757_v34, %v3755_v33  ;;  %v3759_v48 = vld [vmem:[%s7250_s5 + $0x48] sm:$0xff]  ;;  %v3790_v33 = vld [vmem:[%s7250_s5 + $0x140] sm:$0xff]  ;;  %v3792_v34 = vld [vmem:[%s7250_s5 + $0x150] sm:$0xff] }
0x1022   : > { %v5722_v12 = vunpack.i.h.bf16 %v5720_v4  ;;  %v5721_v14 = vunpack.i.l.bf16 %v5720_v4  ;;  %4679 = vmatpush1.bf16.msra.mxu1 %v4678_v54  ;;  %v4697_v56 = vpack.c.bf16 %v3761_v40, %v3759_v48  ;;  %v3799_v48 = vld [vmem:[%s7250_s5 + $0x188] sm:$0xff]  ;;  %v3801_v40 = vld [vmem:[%s7250_s5 + $0x198] sm:$0xff] }
0x1023   : > { %4680 = vmatprep.subr.bf16.mxu1 %v5756_v7  ;;  %v3499_v49 = vsel %vm609_vm13, %v5731_v63, %v5732_v62  ;;  %v4684_v30 = vpack.c.bf16 %v5732_v62, %v5717_v10  ;;  %v3763_v62 = vld [vmem:[%s7250_s5 + $0x68] sm:$0xff] }
0x1024   : > { %v4681_v35 = vpack.c.bf16 %v5722_v12, %v5697_v45  ;;  %v3476_v38 = vsel %vm586_vm12, %v5712_v61, %v5721_v14  ;;  %4649 = vmatpush1.bf16.msra.mxu0 %v4648_v60  ;;  %v5735_v41 = vpop.permute.xlu1 %5734  ;;  %v3477_v44 = vsel %vm586_vm12, %v5721_v14, %v5722_v12  ;;  %v4654_v43 = vpack.c.bf16 %v3499_v49, %v3497_v23  ;;  %v3754_v45 = vld [vmem:[%s7250_s5 + $0x20] sm:$0xff]  ;;  %v3760_v61 = vld [vmem:[%s7250_s5 + $0x50] sm:$0xff]  ;;  %v3767_v14 = vld [vmem:[%s7250_s5 + $0x88] sm:$0xff] }
0x1025   : > { %v4652_v36 = vpack.c.bf16 %v3476_v38, %v3474_v21  ;;  %v5725_v5 = vpop.permute.xlu0 %5724  ;;  %v4650_v13 = vpack.c.bf16 %v3477_v44, %v3475_v16  ;;  %v5737_v50 = vunpack.i.h.bf16 %v5735_v41  ;;  %v5736_v51 = vunpack.i.l.bf16 %v5735_v41  ;;  %v3758_v60 = vld [vmem:[%s7250_s5 + $0x40] sm:$0xff]  ;;  %v3764_v12 = vld [vmem:[%s7250_s5 + $0x70] sm:$0xff]  ;;  %v3769_v21 = vld [vmem:[%s7250_s5 + $0x98] sm:$0xff] }
0x1026   : > { %v5727_v17 = vunpack.i.h.bf16 %v5725_v5  ;;  %v5726_v19 = vunpack.i.l.bf16 %v5725_v5  ;;  %4682 = vmatpush1.bf16.msra.mxu1 %v4681_v35  ;;  %v4695_v54 = vpack.c.bf16 %v3756_v46, %v3754_v45  ;;  %v4699_v4 = vpack.c.bf16 %v3760_v61, %v3758_v60  ;;  %v3766_v38 = vld [vmem:[%s7250_s5 + $0x80] sm:$0xff]  ;;  %v3768_v41 = vld [vmem:[%s7250_s5 + $0x90] sm:$0xff]  ;;  %v3771_v44 = vld [vmem:[%s7250_s5 + $0xa8] sm:$0xff] }
0x1027   : > { %4651 = vmatprep.subr.bf16.mxu0 %v4650_v13  ;;  %4683 = vmatprep.subr.bf16.mxu1 %v5756_v7  ;;  %v3519_v24 = vsel %vm632_vm14, %v5736_v51, %v5737_v50  ;;  %v4705_v35 = vpack.c.bf16 %v3769_v21, %v3767_v14  ;;  %v3773_v49 = vld [vmem:[%s7250_s5 + $0xb8] sm:$0xff]  ;;  %v3770_v13 = vld [vmem:[%s7250_s5 + $0xa0] sm:$0xff]  ;;  %v3800_v61 = vld [vmem:[%s7250_s5 + $0x190] sm:$0xff] }
0x1028   : > { %v3498_v52 = vsel %vm609_vm13, %v5727_v17, %v5731_v63  ;;  %v3496_v53 = vsel %vm609_vm13, %v5726_v19, %v5716_v11  ;;  %4653 = vmatpush1.bf16.msra.mxu0 %v4652_v36  ;;  %v5745_v57 = vpop.permute.xlu1 %5744  ;;  %v3765_v63 = vld [vmem:[%s7250_s5 + $0x78] sm:$0xff]  ;;  %v3762_v11 = vld [vmem:[%s7250_s5 + $0x60] sm:$0xff]  ;;  %v4707_v36 = vpack.c.bf16 %v3768_v41, %v3766_v38  ;;  %v4709_v5 = vpack.c.bf16 %v3773_v49, %v3771_v44  ;;  %v3772_v17 = vld [vmem:[%s7250_s5 + $0xb0] sm:$0xff] }
0x1029   : > { %v4656_v58 = vpack.c.bf16 %v3498_v52, %v3496_v53  ;;  %v5747_v59 = vunpack.i.h.bf16 %v5745_v57  ;;  %v5746_v0 = vunpack.i.l.bf16 %v5745_v57  ;;  %v5740_v1 = vpop.permute.xlu0 %5739  ;;  %4655 = vmatprep.subr.bf16.mxu0 %v4654_v43  ;;  %v4701_v10 = vpack.c.bf16 %v3765_v63, %v3763_v62  ;;  %v3775_v19 = vld [vmem:[%s7250_s5 + $0xc8] sm:$0xff]  ;;  %v3777_v23 = vld [vmem:[%s7250_s5 + $0xd8] sm:$0xff]  ;;  %v3794_v46 = vld [vmem:[%s7250_s5 + $0x160] sm:$0xff] }
0x102a   : > { %v5742_v2 = vunpack.i.h.bf16 %v5740_v1  ;;  %v5741_v6 = vunpack.i.l.bf16 %v5740_v1  ;;  %4685 = vmatpush1.bf16.msra.mxu1 %v4684_v30  ;;  %v4703_v16 = vpack.c.bf16 %v3764_v12, %v3762_v11  ;;  %v4711_v30 = vpack.c.bf16 %v3772_v17, %v3770_v13  ;;  %v3779_v52 = vld [vmem:[%s7250_s5 + $0xe8] sm:$0xff]  ;;  %v3781_v53 = vld [vmem:[%s7250_s5 + $0xf8] sm:$0xff]  ;;  %v3798_v60 = vld [vmem:[%s7250_s5 + $0x180] sm:$0xff] }
0x102b   : > { %v3518_v18 = vsel %vm632_vm14, %v5746_v0, %v5736_v51  ;;  %4686 = vmatprep.subr.bf16.mxu1 %v5756_v7  ;;  %v4114_v7 = vld [vmem:[%s7246_s1 + $0xe0] sm:$0xff]  ;;  %v4713_v43 = vpack.c.bf16 %v3777_v23, %v3775_v19  ;;  %v3776_v51 = vld [vmem:[%s7250_s5 + $0xd0] sm:$0xff]  ;;  %v3783_v1 = vld [vmem:[%s7250_s5 + $0x108] sm:$0xff] }
0x102c   : > { %v4687_v20 = vpack.c.bf16 %v5742_v2, %v5737_v50  ;;  %v3520_v22 = vsel %vm632_vm14, %v5747_v59, %v5741_v6  ;;  %4657 = vmatpush1.bf16.msra.mxu0 %v4656_v58  ;;  %v3521_v25 = vsel %vm632_vm14, %v5741_v6, %v5742_v2  ;;  %v3774_v50 = vld [vmem:[%s7250_s5 + $0xc0] sm:$0xff]  ;;  %v4717_v58 = vpack.c.bf16 %v3781_v53, %v3779_v52  ;;  %v3780_v0 = vld [vmem:[%s7250_s5 + $0xf0] sm:$0xff]  ;;  %v3785_v2 = vld [vmem:[%s7250_s5 + $0x118] sm:$0xff] }
0x102d   : > { %v4660_v26 = vpack.c.bf16 %v3520_v22, %v3518_v18  ;;  %v4658_v27 = vpack.c.bf16 %v3521_v25, %v3519_v24  ;;  %v4715_v57 = vpack.c.bf16 %v3776_v51, %v3774_v50  ;;  %v3778_v59 = vld [vmem:[%s7250_s5 + $0xe0] sm:$0xff]  ;;  %v4721_v9 = vpack.c.bf16 %v3785_v2, %v3783_v1  ;;  %v3784_v18 = vld [vmem:[%s7250_s5 + $0x110] sm:$0xff]  ;;  %v3789_v22 = vld [vmem:[%s7250_s5 + $0x138] sm:$0xff] }
0x102e   : > { %4688 = vmatpush1.bf16.msra.mxu1 %v4687_v20  ;;  %v4719_v6 = vpack.c.bf16 %v3780_v0, %v3778_v59  ;;  %v3787_v20 = vld [vmem:[%s7250_s5 + $0x128] sm:$0xff]  ;;  %v4723_v24 = vpack.c.bf16 %v3784_v18, %v3782_v15  ;;  %v3805_v63 = vld [vmem:[%s7250_s5 + $0x1b8] sm:$0xff]  ;;  %v3802_v11 = vld [vmem:[%s7250_s5 + $0x1a0] sm:$0xff] }
0x102f   : > { %4659 = vmatprep.subr.bf16.mxu0 %v4658_v27  ;;  %v4725_v25 = vpack.c.bf16 %v3789_v22, %v3787_v20  ;;  %v3788_v27 = vld [vmem:[%s7250_s5 + $0x130] sm:$0xff]  ;;  %v3803_v62 = vld [vmem:[%s7250_s5 + $0x1a8] sm:$0xff]  ;;  %v3806_v38 = vld [vmem:[%s7250_s5 + $0x1c0] sm:$0xff] }
0x1030   : > { %4661 = vmatpush1.bf16.msra.mxu0 %v4660_v26  ;;  %v3786_v26 = vld [vmem:[%s7250_s5 + $0x120] sm:$0xff]  ;;  %v3804_v12 = vld [vmem:[%s7250_s5 + $0x1b0] sm:$0xff]  ;;  %v3807_v21 = vld [vmem:[%s7250_s5 + $0x1c8] sm:$0xff] }
0x1031   : > { %3694 = vmatmul.mubr.f32.vlgmr.msra.gmra.mrb[34].mxu1 %v4114_v7  ;;  %4690 = vmatprep.subr.bf16.mxu0 %v4689_v28  ;;  %v3791_v28 = vld [vmem:[%s7250_s5 + $0x148] sm:$0xff]  ;;  %v4727_v32 = vpack.c.bf16 %v3788_v27, %v3786_v26  ;;  %v4743_v14 = vpack.c.bf16 %v3804_v12, %v3802_v11  ;;  %v3808_v41 = vld [vmem:[%s7250_s5 + $0x1d0] sm:$0xff]  ;;  %v3810_v13 = vld [vmem:[%s7250_s5 + $0x1e0] sm:$0xff] }
0x1032   : > { %4123 = vmatprep.mubr.msk.f32.mxu1 %vm659_vm6, %v4117_v37  ;;  %v4747_v44 = vpack.c.bf16 %v3808_v41, %v3806_v38  ;;  %v3811_v49 = vld [vmem:[%s7250_s5 + $0x1e8] sm:$0xff]  ;;  %v3812_v17 = vld [vmem:[%s7250_s5 + $0x1f0] sm:$0xff]  ;;  %v3814_v15 = vld [vmem:[%s7250_s5 + $0x200] sm:$0xff] }
0x1033   : > { %3617 = vmatmul.mubr.f32.vlgmr.msra.gmra.mrb[26].mxu0 %v4114_v7  ;;  %v4729_v7 = vpack.c.bf16 %v3793_v31, %v3791_v28  ;;  %v4751_v19 = vpack.c.bf16 %v3812_v17, %v3810_v13  ;;  %v3815_v23 = vld [vmem:[%s7250_s5 + $0x208] sm:$0xff]  ;;  %v3816_v18 = vld [vmem:[%s7250_s5 + $0x210] sm:$0xff]  ;;  %v3821_v27 = vld [vmem:[%s7250_s5 + $0x238] sm:$0xff] }
0x1034   : > { %4121 = vmatprep.mubr.msk.f32.mxu0 %vm659_vm6, %v4117_v37  ;;  %4692 = vmatpush1.bf16.msra.mxu0 %v4691_v39  ;;  %v3795_v37 = vld [vmem:[%s7250_s5 + $0x168] sm:$0xff]  ;;  %v3797_v39 = vld [vmem:[%s7250_s5 + $0x178] sm:$0xff] }
0x1035   : > { %3699 = vmatmul.mubr.f32.gmra.mrb[36].mxu1 %v4116_v47  ;;  %4694 = vmatprep.subr.bf16.mxu0 %v4693_v42  ;;  %v4731_v42 = vpack.c.bf16 %v3792_v34, %v3790_v33  ;;  %v4733_v45 = vpack.c.bf16 %v3797_v39, %v3795_v37  ;;  %v3819_v26 = vld [vmem:[%s7250_s5 + $0x228] sm:$0xff]  ;;  %v4755_v34 = vpack.c.bf16 %v3816_v18, %v3814_v15 }
0x1037   : > { %3623 = vmatmul.mubr.f32.gmra.mrb[28].mxu0 %v4116_v47  ;;  %v3796_v47 = vld [vmem:[%s7250_s5 + $0x170] sm:$0xff] }
0x1038   : > { %4696 = vmatpush1.bf16.msra.mxu0 %v4695_v54  ;;  %v4735_v54 = vpack.c.bf16 %v3796_v47, %v3794_v46  ;;  %v3820_v46 = vld [vmem:[%s7250_s5 + $0x230] sm:$0xff] }
0x1039   : > { %4698 = vmatprep.subr.bf16.mxu0 %v4697_v56  ;;  %v4737_v56 = vpack.c.bf16 %v3801_v40, %v3799_v48  ;;  %v3544_v22 = vpop.permute.xlu1 %3543 }
0x103a   : > { %v3539_v50 = vpop.permute.xlu0 %3538 }
0x103c   : > { %4700 = vmatpush1.bf16.msra.mxu0 %v4699_v4  ;;  %v4739_v4 = vpack.c.bf16 %v3800_v61, %v3798_v60 }
0x103d   : > { %4702 = vmatprep.subr.bf16.mxu0 %v4701_v10  ;;  %v4741_v10 = vpack.c.bf16 %v3805_v63, %v3803_v62 }
0x1040   : > { %4704 = vmatpush1.bf16.msra.mxu0 %v4703_v16  ;;  %v3809_v16 = vld [vmem:[%s7250_s5 + $0x1d8] sm:$0xff] }
0x1041   : > { %4706 = vmatprep.subr.bf16.mxu0 %v4705_v35  ;;  %v4745_v35 = vpack.c.bf16 %v3809_v16, %v3807_v21 }
0x1044   : > { %4708 = vmatpush1.bf16.msra.mxu0 %v4707_v36  ;;  %v3813_v36 = vld [vmem:[%s7250_s5 + $0x1f8] sm:$0xff] }
0x1045   : > { %4710 = vmatprep.subr.bf16.mxu0 %v4709_v5  ;;  %v4749_v5 = vpack.c.bf16 %v3813_v36, %v3811_v49 }
0x1048   : > { %4712 = vmatpush1.bf16.msra.mxu0 %v4711_v30  ;;  %v3817_v30 = vld [vmem:[%s7250_s5 + $0x218] sm:$0xff] }
0x1049   : > { %4714 = vmatprep.subr.bf16.mxu0 %v4713_v43  ;;  %v4753_v43 = vpack.c.bf16 %v3817_v30, %v3815_v23 }
0x104c   : > { %4716 = vmatpush1.bf16.msra.mxu0 %v4715_v57 }
0x104d   : > { %4718 = vmatprep.subr.bf16.mxu0 %v4717_v58 }
0x1050   : > { %4720 = vmatpush1.bf16.msra.mxu0 %v4719_v6 }
0x1051   : > { %4722 = vmatprep.subr.bf16.mxu0 %v4721_v9 }
0x1054   : > { %4724 = vmatpush1.bf16.msra.mxu0 %v4723_v24 }
0x1055   : > { %4726 = vmatprep.subr.bf16.mxu0 %v4725_v25 }
0x1058   : > { %4728 = vmatpush1.bf16.msra.mxu0 %v4727_v32 }
0x1059   : > { %4730 = vmatprep.subr.bf16.mxu0 %v4729_v7 }
0x105c   : > { %4732 = vmatpush1.bf16.msra.mxu0 %v4731_v42  ;;  %v4757_v42 = vpack.c.bf16 %v3821_v27, %v3819_v26 }
0x105d   : > { %4734 = vmatprep.subr.bf16.mxu0 %v4733_v45  ;;  %v3818_v45 = vld [vmem:[%s7250_s5 + $0x220] sm:$0xff] }
0x1060   : > { %4736 = vmatpush1.bf16.msra.mxu0 %v4735_v54 }
0x1061   : > { %4738 = vmatprep.subr.bf16.mxu0 %v4737_v56  ;;  %v4759_v56 = vpack.c.bf16 %v3820_v46, %v3818_v45 }
0x1064   : > { %4740 = vmatpush1.bf16.msra.mxu0 %v4739_v4 }
0x1065   : > { %4742 = vmatprep.subr.bf16.mxu0 %v4741_v10 }
0x1068   : > { %4744 = vmatpush1.bf16.msra.mxu0 %v4743_v14 }
0x1069   : > { %4746 = vmatprep.subr.bf16.mxu0 %v4745_v35 }
0x106c   : > { %4748 = vmatpush1.bf16.msra.mxu0 %v4747_v44 }
0x106d   : > { %4750 = vmatprep.subr.bf16.mxu0 %v4749_v5 }
0x1070   : > { %4752 = vmatpush1.bf16.msra.mxu0 %v4751_v19 }
0x1071   : > { %4754 = vmatprep.subr.bf16.mxu0 %v4753_v43 }
0x1104   : > { %v3695_v51 = vpop.f32.mrb[34].mxu1 }
0x1105   : > { %v3696_v52 = vadd.f32 %v3695_v51, %v3539_v50  ;;  %v3697_v53 = vpop.f32.mrb[35].mxu1 }
0x1106   : > { %v3618_v57 = vpop.f32.mrb[26].mxu0 }
0x1107   : > { %v3706_v58 = vmax.f32 %v3696_v52, 0.0  ;;  %v3619_v59 = vadd.f32 %v3618_v57, %v3539_v50  ;;  %v3620_v0 = vpop.f32.mrb[27].mxu0 }
0x1108   : > { %v3621_v1 = vadd.f32 %v3620_v0, %v3539_v50  ;;  %v3700_v2 = vpop.f32.mrb[36].mxu1 }
0x1109   : > { %v3712_v6 = vmul.f32 %v3706_v58, %v6154_v55  ;;  %v3704_v9 = vmax.f32 %v3619_v59, 0.0  ;;  %v3702_v20 = vpop.f32.mrb[37].mxu1  ;;  %v3701_v7 = vadd.f32 %v3700_v2, %v3544_v22 }
0x110a   : > { %v3705_v24 = vmax.f32 %v3621_v1, 0.0  ;;  %v3624_v25 = vpop.f32.mrb[28].mxu0 }
0x110b   : > { %v3625_v28 = vadd.f32 %v3624_v25, %v3544_v22  ;;  %3726 = vrot.lane.b32.xlu0 %v3712_v6, %s5759_s8  ;;  %v3626_v31 = vpop.f32.mrb[29].mxu0  ;;  %v3710_v37 = vmul.f32 %v3704_v9, %v6144_v29  ;;  %v3709_v40 = vmax.f32 %v3701_v7, 0.0 }
0x110c   : > { %v3711_v32 = vmul.f32 %v3705_v24, %v6147_v3  ;;  %v3627_v33 = vadd.f32 %v3626_v31, %v3544_v22 }
0x110d   : > { %v3707_v39 = vmax.f32 %v3625_v28, 0.0  ;;  %v3715_v60 = vmul.f32 %v3709_v40, %v6154_v55 }
0x110e   : > { %v3708_v47 = vmax.f32 %v3627_v33, 0.0  ;;  %3724 = vrot.lane.b32.xlu1 %v3711_v32, %s5759_s8  ;;  %3891 = vmatprep.mubr.f32.mxu0 %v3711_v32 }
0x110f   : > { %v3713_v48 = vmul.f32 %v3707_v39, %v6144_v29  ;;  %3722 = vrot.lane.b32.xlu0 %v3710_v37, %s5759_s8  ;;  %3892 = vmatmul.mubr.f32.vlgmr.msra.gmra.mrb[30].mxu0 %v3710_v37 }
0x1110   : > { %v3714_v54 = vmul.f32 %v3708_v47, %v6147_v3  ;;  %4756 = vmatpush1.bf16.msra.mxu0 %v4755_v34 }
0x1111   : > { %4758 = vmatprep.subr.bf16.mxu0 %v4757_v42 }
0x1112   : > { %3728 = vrot.lane.b32.xlu1 %v3713_v48, %s5759_s8  ;;  %3897 = vmatprep.mubr.f32.mxu0 %v3714_v54 }
0x1113   : > { %3730 = vrot.lane.b32.xlu0 %v3714_v54, %s5759_s8  ;;  %3898 = vmatmul.mubr.f32.gmra.mrb[32].mxu0 %v3713_v48 }
0x1114   : > { %4760 = vmatpush1.bf16.msra.mxu0 %v4759_v56  ;;  %3968 = vmatprep.mubr.f32.mxu0 %v5757_v8 }
0x1116   : > { %3732 = vrot.lane.b32.xlu1 %v3715_v60, %s5759_s8  ;;  %s4128_s8 = sshll.u32 %s7254_s22, 5 }
0x1117   : > { %4124 = vmatmul.mubr.msk.f32.vlgmr.msra.gmra.mrb[30].mxu0 %vm3822_vm15, %v3712_v6  ;;  %s248_s30 = scalar_lea.vmem %s7251_s6, %s4128_s8 }
0x1118   : > { %3974 = vmatprep.mubr.f32.mxu0 %v5757_v8 }
0x111b   : > { %4125 = vmatmul.mubr.msk.f32.gmra.mrb[32].mxu0 %vm3822_vm15, %v3715_v60 }
0x117d   : > { %v3727_v29 = vpop.permute.xlu0 %3726 }
0x1180   : > { %v3725_v3 = vpop.permute.xlu1 %3724 }
0x1181   : > { %v3735_v61 = vsel %vm435_vm4, %v3725_v3, %v3727_v29  ;;  %v3723_v62 = vpop.permute.xlu0 %3722 }
0x1182   : > { %3746 = vst.msk [vmem:[#allocation2 + $0x10] sm:$0xff] %vm444_vm5, %v3735_v61 }
0x1183   : > { %3744 = vst.msk [vmem:[#allocation2] sm:$0xff] %vm441_vm3, %v3723_v62 }
0x1184   : > { %v3729_v55 = vpop.permute.xlu1 %3728 }
0x1185   : > { %3747 = vst.msk [vmem:[#allocation2 + $0x18] sm:$0xff] %vm441_vm3, %v3729_v55  ;;  %v3731_v63 = vpop.permute.xlu0 %3730 }
0x1188   : > { %v3733_v4 = vpop.permute.xlu1 %3732 }
0x1189   : > { %v3737_v10 = vsel %vm435_vm4, %v3731_v63, %v3733_v4 }
0x118a   : > { %3749 = vst.msk [vmem:[#allocation2 + $0x28] sm:$0xff] %vm444_vm5, %v3737_v10 }
0x11ea   : > { %v3970_v8 = vpop.f32.mrb[30].mxu0 }
0x11eb   : > { %3981 = vst [vmem:[%s248_s30] sm:$0xff] %v3970_v8  ;;  %v3972_v11 = vpop.f32.mrb[31].mxu0 }
0x11ec   : > { %3982 = vst [vmem:[%s248_s30 + $0x8] sm:$0xff] %v3972_v11 }
0x11ee   : > { %v3976_v12 = vpop.f32.mrb[32].mxu0 }
0x11ef   : > { %3983 = vst [vmem:[%s248_s30 + $0x10] sm:$0xff] %v3976_v12  ;;  %v3978_v14 = vpop.f32.mrb[33].mxu0 }
0x11f0   : > { %3984 = vst [vmem:[%s248_s30 + $0x18] sm:$0xff] %v3978_v14 }
0x11f1 PF: > { %s16_s21 = sadd.s32 1, %s5754_s21  }
0x11f2   : > { %p13_p4 = scmp.ge.s32.totalorder %s16_s21, 4  }
0x11f4   :  { %15 = sbr.rel (!%p13_p4) target bundleno = 1 (0x1), region = 88 }

</bundles_post_ra>
